<compile_context>
chip_gen: v5e
topology: v5e:2x2
jax: 0.10.0
libtpu: 0.0.40
codegen_flags: <defaults>
</compile_context>

<pallas_src>
import jax
import jax.numpy as jnp
import numpy as np
from jax import lax
from jax.experimental import pallas as pl
from jax.experimental.pallas import tpu as pltpu

EPS = 1e-5
_MAX_ROW_TILE = 32   # conv row-tile upper bound


# --------------------------------------------------------------------------- #
# VMEM budgeting / tiling helpers
# --------------------------------------------------------------------------- #
def _vmem_cap_bytes():
    try:
        cap = getattr(pltpu.get_tpu_info(), "vmem_capacity_bytes", None)
        if cap:
            return int(cap)
    except Exception:
        pass
    return 64 << 20                      # conservative fallback (v7x per-core VMEM)


def _vmem_limit(live_bytes):
    """Scoped-VMEM limit sized from the live buffers, clamped per generation."""
    hard_cap = (5 * _vmem_cap_bytes()) // 8    # ~40 MiB on v7x, ~80 MiB on v5e/v6e
    want = int(live_bytes) + (4 << 20)         # headroom for Mosaic-internal scratch
    return int(min(max(want, 8 << 20), hard_cap))


def _pick_row_tile(H):
    """Largest row tile <= _MAX_ROW_TILE that divides H."""
    best = 1
    for cand in range(1, min(H, _MAX_ROW_TILE) + 1):
        if H % cand == 0:
            best = cand
    return best


# --------------------------------------------------------------------------- #
# Kernel 1: 3x3 "same" conv + bias (+ per-image BN partials).  Optionally fuses
#           BN + ReLU of the *previous* stage into the loader, so the padded
#           normalized intermediate never exists in HBM.
# --------------------------------------------------------------------------- #
def _make_conv_kernel(*, fuse_bn_relu):
    def kernel(x_ref, w_ref, b_ref, sc_ref, sh_ref, y_ref, s_ref):
        # x_ref : (H, W, Cin)    un-padded NHWC image of batch n (bf16), resident over t
        # w_ref : (9, Cin, Cout) per-tap weights (bf16)
        # b_ref : (1, Cout)      conv bias (f32)
        # sc_ref/sh_ref : (1, Cin) folded BN scale/shift of the previous stage (f32)
        # y_ref : (th, W, Cout)  conv+bias output tile (bf16, channels on lanes)
        # s_ref : (2, Cout)      per-image [sum, sum_sq] partials (f32), resident over t
        H, W, Cin = x_ref.shape
        th, _, Cout = y_ref.shape
        t = pl.program_id(1)
        nt = pl.num_programs(1)
        row0 = pl.multiple_of(t * th, th)

        def load(start, size):
            v = x_ref[pl.ds(start, size), :, :].astype(jnp.float32)
            if fuse_bn_relu:                       # BN + ReLU fused into the loader
                v = jnp.maximum(v * sc_ref[...] + sh_ref[...], 0.0)
            return v

        # (th+2)-row window with a 1-row halo; halo rows outside the image -> 0
        # (zeroing happens after BN+ReLU, matching zero-padding of the activation).
        top = load(jnp.maximum(row0 - 1, 0), 1) * (t > 0).astype(jnp.float32)
        mid = load(row0, th)
        bot = load(jnp.minimum(row0 + th, H - 1), 1) * (t < nt - 1).astype(jnp.float32)
        win = jnp.concatenate([top, mid, bot], axis=0).astype(jnp.bfloat16)

        # zero-pad the two halo columns -> (th+2, W+2, Cin)
        zc = jnp.zeros((th + 2, 1, Cin), jnp.bfloat16)
        win = jnp.concatenate([zc, win, zc], axis=1)

        # 3x3 conv as 9 accumulated (th*W, Cin) @ (Cin, Cout) MXU dots
        # (no im2col patch materialization; f32 accumulation).
        acc = jnp.zeros((th * W, Cout), jnp.float32)
        for idx in range(9):
            dy, dx = idx // 3, idx % 3
            patch = win[dy:dy + th, dx:dx + W, :].reshape(th * W, Cin)
            acc = acc + jnp.dot(patch, w_ref[idx],
                                preferred_element_type=jnp.float32)
        y = acc + b_ref[...]                                   # (th*W, Cout) f32

        # BN partials in f32 (before the bf16 cast), accumulated across row tiles.
        @pl.when(t == 0)
        def _():
            s_ref[...] = jnp.zeros_like(s_ref)
        s_ref[...] += jnp.concatenate(
            [jnp.sum(y, axis=0, keepdims=True),
             jnp.sum(y * y, axis=0, keepdims=True)], axis=0)

        # bf16 NHWC store: channels stay on the lane axis -> no repack.
        y_ref[...] = y.reshape(th, W, Cout).astype(y_ref.dtype)

    return kernel


def _conv3x3_bn_stats(x_nhwc, w_taps, b_row, sc_row, sh_row, *, th, fuse_bn_relu):
    N, H, W, Cin = x_nhwc.shape
    Cout = w_taps.shape[-1]
    nt = H // th

    # worst-case live VMEM: every block double-buffered + in-kernel temporaries
    live = 2 * (H * W * Cin * 2 + 9 * Cin * Cout * 2
                + (3 * Cin + 3 * Cout) * 4
                + th * W * Cout * 2 + 2 * Cout * 4)
    live += (th + 2) * (W + 2) * Cin * 8 + 2 * th * W * Cout * 4

    return pl.pallas_call(
        _make_conv_kernel(fuse_bn_relu=fuse_bn_relu),
        grid=(N, nt),
        out_shape=(jax.ShapeDtypeStruct((N, H, W, Cout), jnp.bfloat16),
                   jax.ShapeDtypeStruct((N, 2, Cout), jnp.float32)),
        in_specs=[
            # whole image of batch n, resident across the row-tile axis
            pl.BlockSpec((None, H, W, Cin), lambda n, t: (n, 0, 0, 0)),
            pl.BlockSpec((9, Cin, Cout), lambda n, t: (0, 0, 0)),
            pl.BlockSpec((1, Cout), lambda n, t: (0, 0)),
            pl.BlockSpec((1, Cin), lambda n, t: (0, 0)),
            pl.BlockSpec((1, Cin), lambda n, t: (0, 0)),
        ],
        out_specs=(
            pl.BlockSpec((None, th, W, Cout), lambda n, t: (n, t, 0, 0)),
            pl.BlockSpec((None, 2, Cout), lambda n, t: (n, 0, 0)),
        ),
        compiler_params=pltpu.CompilerParams(
            dimension_semantics=("parallel", "arbitrary"),
            vmem_limit_bytes=_vmem_limit(live)),
    )(x_nhwc, w_taps, b_row, sc_row, sh_row)


# --------------------------------------------------------------------------- #
# Kernel 2: final BN + ReLU (elementwise, NHWC, channels on lanes).
# --------------------------------------------------------------------------- #
def _bn_relu_kernel(y_ref, sc_ref, sh_ref, o_ref):
    o_ref[...] = jnp.maximum(
        y_ref[...].astype(jnp.float32) * sc_ref[...] + sh_ref[...], 0.0)


def _bn_relu(y3d, sc_row, sh_row):
    R, W, C = y3d.shape
    # largest row tile dividing R whose (bf16 in + f32 out) block fits a byte budget
    budget = 8 << 20
    per_row = W * C * (2 + 4)
    cap = max(1, min(R, budget // max(per_row, 1)))
    tr = 1
    for cand in range(1, cap + 1):
        if R % cand == 0:
            tr = cand
    live = 2 * (tr * W * C * (2 + 4) + 2 * C * 4)
    return pl.pallas_call(
        _bn_relu_kernel,
        grid=(R // tr,),
        out_shape=jax.ShapeDtypeStruct((R, W, C), jnp.float32),
        in_specs=[
            pl.BlockSpec((tr, W, C), lambda r: (r, 0, 0)),
            pl.BlockSpec((1, C), lambda r: (0, 0)),
            pl.BlockSpec((1, C), lambda r: (0, 0)),
        ],
        out_specs=pl.BlockSpec((tr, W, C), lambda r: (r, 0, 0)),
        compiler_params=pltpu.CompilerParams(
            dimension_semantics=("parallel",),
            vmem_limit_bytes=_vmem_limit(live)),
    )(y3d, sc_row, sh_row)


# --------------------------------------------------------------------------- #
# BN statistics fold (tiny; stays in XLA)
# --------------------------------------------------------------------------- #
def _bn_affine_rows(stats, gamma, beta, count):
    """Reduce per-image (sum, sum_sq) partials -> folded BN scale/shift rows."""
    sums = jnp.sum(stats[:, 0, :], axis=0)
    sqs = jnp.sum(stats[:, 1, :], axis=0)
    mean = sums / count
    # E[x^2]-E[x]^2 in f32, biased (train-mode) variance; fine at these magnitudes.
    var = jnp.maximum(sqs / count - mean * mean, 0.0)
    inv = lax.rsqrt(var + EPS)
    scale = gamma.astype(jnp.float32) * inv
    shift = beta.astype(jnp.float32) - mean * scale
    return scale[None, :], shift[None, :]


@jax.jit
def vgg_block_pallas(x_nchw, params):
    """x_nchw: (N, Cin, H, W) float32.  Returns (N, Cout, H, W) float32."""
    w1, b1, g1, be1, w2, b2, g2, be2 = params
    N, Cin, H, W = x_nchw.shape
    Cmid, Cout = w1.shape[0], w2.shape[0]
    th = _pick_row_tile(H)

    # Layout boundary kept in XLA.
    # TODO(synk): accept NHWC inputs / emit NCHW from the last kernel to drop
    #             these two boundary transposes (one full HBM pass each).
    x_nhwc = jnp.transpose(x_nchw, (0, 2, 3, 1)).astype(jnp.bfloat16)

    # PyTorch OIHW -> (tap, Cin, Cout) bf16: one aligned (Cin, Cout) slab per tap.
    w1_t = jnp.transpose(w1, (2, 3, 1, 0)).reshape(9, Cin, Cmid).astype(jnp.bfloat16)
    w2_t = jnp.transpose(w2, (2, 3, 1, 0)).reshape(9, Cmid, Cout).astype(jnp.bfloat16)
    b1_row = b1.reshape(1, Cmid).astype(jnp.float32)
    b2_row = b2.reshape(1, Cout).astype(jnp.float32)

    one_c = jnp.ones((1, Cin), jnp.float32)
    zero_c = jnp.zeros((1, Cin), jnp.float32)

    # ---- stage 1: conv1 + bias (+ BN1 partial stats) ----
    y1, st1 = _conv3x3_bn_stats(x_nhwc, w1_t, b1_row, one_c, zero_c,
                                th=th, fuse_bn_relu=False)
    sc1, sh1 = _bn_affine_rows(st1, g1, be1, N * H * W)

    # ---- stage 2: conv2 + bias with BN1+ReLU+zero-pad fused into its loader ----
    y2, st2 = _conv3x3_bn_stats(y1, w2_t, b2_row, sc1, sh1,
                                th=th, fuse_bn_relu=True)
    sc2, sh2 = _bn_affine_rows(st2, g2, be2, N * H * W)

    # ---- stage 3: BN2 + ReLU ----
    out = _bn_relu(y2.reshape(N * H, W, Cout), sc2, sh2)
    return jnp.transpose(out.reshape(N, H, W, Cout), (0, 3, 1, 2))


# --------------------------------------------------------------------------- #
# Pure-JAX f32 reference (PyTorch train-mode semantics) + test
# --------------------------------------------------------------------------- #
def vgg_block_ref(x_nchw, params):
    w1, b1, g1, be1, w2, b2, g2, be2 = params

    def conv(x, w, b):
        y = lax.conv_general_dilated(
            x, w, window_strides=(1, 1), padding=((1, 1), (1, 1)),
            dimension_numbers=('NCHW', 'OIHW', 'NCHW'))
        return y + b[None, :, None, None]

    def bn_relu(y, g, be):
        mean = jnp.mean(y, axis=(0, 2, 3), keepdims=True)
        var = jnp.mean((y - mean) ** 2, axis=(0, 2, 3), keepdims=True)
        y_hat = (y - mean) / jnp.sqrt(var + EPS)
        return jnp.maximum(y_hat * g[None, :, None, None]
                           + be[None, :, None, None], 0.0)

    h = bn_relu(conv(x_nchw, w1, b1), g1, be1)
    return bn_relu(conv(h, w2, b2), g2, be2)


def init_params(key, in_channels, mid_channels, out_channels):
    ks = jax.random.split(key, 8)
    w1 = 0.1 * jax.random.normal(ks[0], (mid_channels, in_channels, 3, 3), jnp.float32)
    b1 = 0.1 * jax.random.normal(ks[1], (mid_channels,), jnp.float32)
    g1 = 1.0 + 0.1 * jax.random.normal(ks[2], (mid_channels,), jnp.float32)
    be1 = 0.1 * jax.random.normal(ks[3], (mid_channels,), jnp.float32)
    w2 = 0.1 * jax.random.normal(ks[4], (out_channels, mid_channels, 3, 3), jnp.float32)
    b2 = 0.1 * jax.random.normal(ks[5], (out_channels,), jnp.float32)
    g2 = 1.0 + 0.1 * jax.random.normal(ks[6], (out_channels,), jnp.float32)
    be2 = 0.1 * jax.random.normal(ks[7], (out_channels,), jnp.float32)
    return (w1, b1, g1, be1, w2, b2, g2, be2)


if __name__ == "__main__":
    key = jax.random.PRNGKey(0)
    k_x, k_p = jax.random.split(key)

    N, Cin, Cmid, Cout, H, W = 2, 4, 8, 8, 16, 16
    x = jax.random.normal(k_x, (N, Cin, H, W), jnp.float32)
    params = init_params(k_p, Cin, Cmid, Cout)

    out = jax.block_until_ready(vgg_block_pallas(x, params))
    ref = vgg_block_ref(x, params)

    # bf16 MXU operands + bf16 intermediates (f32 accumulation / f32 BN) vs. an
    # all-f32 reference -> wider tolerance; structural bugs would be O(1) off.
    np.testing.assert_allclose(np.asarray(out), np.asarray(ref),
                               rtol=6e-2, atol=6e-2)
    print("KERNEL_OK")
</pallas_src>

<mosaic_0001>
module attributes {stable_mosaic.version = 11 : i64} {
  func.func @kernel(%arg0: i32, %arg1: i32, %arg2: memref<1x16x16x4xbf16, #tpu.memory_space<vmem>>, %arg3: memref<9x4x8xbf16, #tpu.memory_space<vmem>>, %arg4: memref<1x8xf32, #tpu.memory_space<vmem>>, %arg5: memref<1x4xf32, #tpu.memory_space<vmem>>, %arg6: memref<1x4xf32, #tpu.memory_space<vmem>>, %arg7: memref<1x16x16x8xbf16, #tpu.memory_space<vmem>>, %arg8: memref<1x2x8xf32, #tpu.memory_space<vmem>>) attributes {dimension_semantics = [#tpu.dimension_semantics<parallel>, #tpu.dimension_semantics<arbitrary>], iteration_bounds = array<i64: 2, 1>, scalar_prefetch = 0 : i64, scratch_operands = 0 : i64, tpu.core_type = #tpu.core_type<tc>, window_params = [{transform_indices = @transform_0, window_bounds = array<i64: 1, 16, 16, 4>}, {pipeline_mode = #tpu.pipeline_mode<synchronous>, transform_indices = @transform_1, window_bounds = array<i64: 9, 4, 8>}, {pipeline_mode = #tpu.pipeline_mode<synchronous>, transform_indices = @transform_2, window_bounds = array<i64: 1, 8>}, {pipeline_mode = #tpu.pipeline_mode<synchronous>, transform_indices = @transform_3, window_bounds = array<i64: 1, 4>}, {pipeline_mode = #tpu.pipeline_mode<synchronous>, transform_indices = @transform_4, window_bounds = array<i64: 1, 4>}, {transform_indices = @transform_5, window_bounds = array<i64: 1, 16, 16, 8>}, {transform_indices = @transform_6, window_bounds = array<i64: 1, 2, 8>}]} {
    %c16_i32 = arith.constant 16 : i32
    %0 = arith.muli %arg1, %c16_i32 : i32
    %1 = tpu.assume_multiple %0, 16 : i32
    %c1_i32 = arith.constant 1 : i32
    %2 = arith.subi %1, %c1_i32 : i32
    %c0_i32 = arith.constant 0 : i32
    %3 = arith.maxsi %2, %c0_i32 : i32
    %c0 = arith.constant 0 : index
    %4 = arith.index_cast %3 : i32 to index
    %c0_0 = arith.constant 0 : index
    %c0_1 = arith.constant 0 : index
    %5 = vector.load %arg2[%c0, %4, %c0_0, %c0_1] : memref<1x16x16x4xbf16, #tpu.memory_space<vmem>>, vector<1x1x16x4xbf16>
    %6 = vector.shape_cast %5 : vector<1x1x16x4xbf16> to vector<1x16x4xbf16>
    %7 = arith.extf %6 : vector<1x16x4xbf16> to vector<1x16x4xf32>
    %c0_i32_2 = arith.constant 0 : i32
    %8 = arith.cmpi sgt, %arg1, %c0_i32_2 : i32
    %9 = arith.extui %8 : i1 to i32
    %10 = arith.sitofp %9 : i32 to f32
    %11 = vector.broadcast %10 : f32 to vector<1x16x4xf32>
    %12 = arith.mulf %7, %11 : vector<1x16x4xf32>
    %c0_3 = arith.constant 0 : index
    %13 = arith.index_cast %1 : i32 to index
    %c0_4 = arith.constant 0 : index
    %c0_5 = arith.constant 0 : index
    %14 = vector.load %arg2[%c0_3, %13, %c0_4, %c0_5] : memref<1x16x16x4xbf16, #tpu.memory_space<vmem>>, vector<1x16x16x4xbf16>
    %15 = vector.shape_cast %14 : vector<1x16x16x4xbf16> to vector<16x16x4xbf16>
    %16 = arith.extf %15 : vector<16x16x4xbf16> to vector<16x16x4xf32>
    %c16_i32_6 = arith.constant 16 : i32
    %17 = arith.addi %1, %c16_i32_6 : i32
    %c15_i32 = arith.constant 15 : i32
    %18 = arith.minsi %17, %c15_i32 : i32
    %c0_7 = arith.constant 0 : index
    %19 = arith.index_cast %18 : i32 to index
    %c0_8 = arith.constant 0 : index
    %c0_9 = arith.constant 0 : index
    %20 = vector.load %arg2[%c0_7, %19, %c0_8, %c0_9] : memref<1x16x16x4xbf16, #tpu.memory_space<vmem>>, vector<1x1x16x4xbf16>
    %21 = vector.shape_cast %20 : vector<1x1x16x4xbf16> to vector<1x16x4xbf16>
    %22 = arith.extf %21 : vector<1x16x4xbf16> to vector<1x16x4xf32>
    %c0_i32_10 = arith.constant 0 : i32
    %23 = arith.cmpi slt, %arg1, %c0_i32_10 : i32
    %24 = arith.extui %23 : i1 to i32
    %25 = arith.sitofp %24 : i32 to f32
    %26 = vector.broadcast %25 : f32 to vector<1x16x4xf32>
    %27 = arith.mulf %22, %26 : vector<1x16x4xf32>
    %28 = tpu.concatenate %12, %16, %27 in 0 : vector<1x16x4xf32>, vector<16x16x4xf32>, vector<1x16x4xf32> -> vector<18x16x4xf32>
    %29 = arith.truncf %28 : vector<18x16x4xf32> to vector<18x16x4xbf16>
    %cst = arith.constant 0.000000e+00 : bf16
    %30 = vector.broadcast %cst : bf16 to vector<18x1x4xbf16>
    %31 = tpu.concatenate %30, %29, %30 in 1 : vector<18x1x4xbf16>, vector<18x16x4xbf16>, vector<18x1x4xbf16> -> vector<18x18x4xbf16>
    %cst_11 = arith.constant 0.000000e+00 : f32
    %32 = vector.broadcast %cst_11 : f32 to vector<256x8xf32>
    %33 = vector.extract_strided_slice %31 {offsets = [0, 0, 0], sizes = [16, 16, 4], strides = [1, 1, 1]} : vector<18x18x4xbf16> to vector<16x16x4xbf16>
    %34 = vector.shape_cast %33 : vector<16x16x4xbf16> to vector<256x4xbf16>
    %c0_12 = arith.constant 0 : index
    %c0_13 = arith.constant 0 : index
    %c0_14 = arith.constant 0 : index
    %35 = vector.load %arg3[%c0_12, %c0_13, %c0_14] : memref<9x4x8xbf16, #tpu.memory_space<vmem>>, vector<1x4x8xbf16>
    %36 = vector.shape_cast %35 : vector<1x4x8xbf16> to vector<4x8xbf16>
    %cst_15 = arith.constant dense<0.000000e+00> : vector<256x8xf32>
    %37 = tpu.matmul %34, %36, %cst_15 {dimension_numbers = #tpu.dot_dimension_numbers<[1], [0], [0], [1], [0, 0, 1, 1], [], []>} : vector<256x4xbf16>, vector<4x8xbf16>, vector<256x8xf32> -> vector<256x8xf32>
    %38 = arith.addf %32, %37 : vector<256x8xf32>
    %39 = vector.extract_strided_slice %31 {offsets = [0, 1, 0], sizes = [16, 16, 4], strides = [1, 1, 1]} : vector<18x18x4xbf16> to vector<16x16x4xbf16>
    %40 = vector.shape_cast %39 : vector<16x16x4xbf16> to vector<256x4xbf16>
    %c1 = arith.constant 1 : index
    %c0_16 = arith.constant 0 : index
    %c0_17 = arith.constant 0 : index
    %41 = vector.load %arg3[%c1, %c0_16, %c0_17] : memref<9x4x8xbf16, #tpu.memory_space<vmem>>, vector<1x4x8xbf16>
    %42 = vector.shape_cast %41 : vector<1x4x8xbf16> to vector<4x8xbf16>
    %cst_18 = arith.constant dense<0.000000e+00> : vector<256x8xf32>
    %43 = tpu.matmul %40, %42, %cst_18 {dimension_numbers = #tpu.dot_dimension_numbers<[1], [0], [0], [1], [0, 0, 1, 1], [], []>} : vector<256x4xbf16>, vector<4x8xbf16>, vector<256x8xf32> -> vector<256x8xf32>
    %44 = arith.addf %38, %43 : vector<256x8xf32>
    %45 = vector.extract_strided_slice %31 {offsets = [0, 2, 0], sizes = [16, 16, 4], strides = [1, 1, 1]} : vector<18x18x4xbf16> to vector<16x16x4xbf16>
    %46 = vector.shape_cast %45 : vector<16x16x4xbf16> to vector<256x4xbf16>
    %c2 = arith.constant 2 : index
    %c0_19 = arith.constant 0 : index
    %c0_20 = arith.constant 0 : index
    %47 = vector.load %arg3[%c2, %c0_19, %c0_20] : memref<9x4x8xbf16, #tpu.memory_space<vmem>>, vector<1x4x8xbf16>
    %48 = vector.shape_cast %47 : vector<1x4x8xbf16> to vector<4x8xbf16>
    %cst_21 = arith.constant dense<0.000000e+00> : vector<256x8xf32>
    %49 = tpu.matmul %46, %48, %cst_21 {dimension_numbers = #tpu.dot_dimension_numbers<[1], [0], [0], [1], [0, 0, 1, 1], [], []>} : vector<256x4xbf16>, vector<4x8xbf16>, vector<256x8xf32> -> vector<256x8xf32>
    %50 = arith.addf %44, %49 : vector<256x8xf32>
    %51 = vector.extract_strided_slice %31 {offsets = [1, 0, 0], sizes = [16, 16, 4], strides = [1, 1, 1]} : vector<18x18x4xbf16> to vector<16x16x4xbf16>
    %52 = vector.shape_cast %51 : vector<16x16x4xbf16> to vector<256x4xbf16>
    %c3 = arith.constant 3 : index
    %c0_22 = arith.constant 0 : index
    %c0_23 = arith.constant 0 : index
    %53 = vector.load %arg3[%c3, %c0_22, %c0_23] : memref<9x4x8xbf16, #tpu.memory_space<vmem>>, vector<1x4x8xbf16>
    %54 = vector.shape_cast %53 : vector<1x4x8xbf16> to vector<4x8xbf16>
    %cst_24 = arith.constant dense<0.000000e+00> : vector<256x8xf32>
    %55 = tpu.matmul %52, %54, %cst_24 {dimension_numbers = #tpu.dot_dimension_numbers<[1], [0], [0], [1], [0, 0, 1, 1], [], []>} : vector<256x4xbf16>, vector<4x8xbf16>, vector<256x8xf32> -> vector<256x8xf32>
    %56 = arith.addf %50, %55 : vector<256x8xf32>
    %57 = vector.extract_strided_slice %31 {offsets = [1, 1, 0], sizes = [16, 16, 4], strides = [1, 1, 1]} : vector<18x18x4xbf16> to vector<16x16x4xbf16>
    %58 = vector.shape_cast %57 : vector<16x16x4xbf16> to vector<256x4xbf16>
    %c4 = arith.constant 4 : index
    %c0_25 = arith.constant 0 : index
    %c0_26 = arith.constant 0 : index
    %59 = vector.load %arg3[%c4, %c0_25, %c0_26] : memref<9x4x8xbf16, #tpu.memory_space<vmem>>, vector<1x4x8xbf16>
    %60 = vector.shape_cast %59 : vector<1x4x8xbf16> to vector<4x8xbf16>
    %cst_27 = arith.constant dense<0.000000e+00> : vector<256x8xf32>
    %61 = tpu.matmul %58, %60, %cst_27 {dimension_numbers = #tpu.dot_dimension_numbers<[1], [0], [0], [1], [0, 0, 1, 1], [], []>} : vector<256x4xbf16>, vector<4x8xbf16>, vector<256x8xf32> -> vector<256x8xf32>
    %62 = arith.addf %56, %61 : vector<256x8xf32>
    %63 = vector.extract_strided_slice %31 {offsets = [1, 2, 0], sizes = [16, 16, 4], strides = [1, 1, 1]} : vector<18x18x4xbf16> to vector<16x16x4xbf16>
    %64 = vector.shape_cast %63 : vector<16x16x4xbf16> to vector<256x4xbf16>
    %c5 = arith.constant 5 : index
    %c0_28 = arith.constant 0 : index
    %c0_29 = arith.constant 0 : index
    %65 = vector.load %arg3[%c5, %c0_28, %c0_29] : memref<9x4x8xbf16, #tpu.memory_space<vmem>>, vector<1x4x8xbf16>
    %66 = vector.shape_cast %65 : vector<1x4x8xbf16> to vector<4x8xbf16>
    %cst_30 = arith.constant dense<0.000000e+00> : vector<256x8xf32>
    %67 = tpu.matmul %64, %66, %cst_30 {dimension_numbers = #tpu.dot_dimension_numbers<[1], [0], [0], [1], [0, 0, 1, 1], [], []>} : vector<256x4xbf16>, vector<4x8xbf16>, vector<256x8xf32> -> vector<256x8xf32>
    %68 = arith.addf %62, %67 : vector<256x8xf32>
    %69 = vector.extract_strided_slice %31 {offsets = [2, 0, 0], sizes = [16, 16, 4], strides = [1, 1, 1]} : vector<18x18x4xbf16> to vector<16x16x4xbf16>
    %70 = vector.shape_cast %69 : vector<16x16x4xbf16> to vector<256x4xbf16>
    %c6 = arith.constant 6 : index
    %c0_31 = arith.constant 0 : index
    %c0_32 = arith.constant 0 : index
    %71 = vector.load %arg3[%c6, %c0_31, %c0_32] : memref<9x4x8xbf16, #tpu.memory_space<vmem>>, vector<1x4x8xbf16>
    %72 = vector.shape_cast %71 : vector<1x4x8xbf16> to vector<4x8xbf16>
    %cst_33 = arith.constant dense<0.000000e+00> : vector<256x8xf32>
    %73 = tpu.matmul %70, %72, %cst_33 {dimension_numbers = #tpu.dot_dimension_numbers<[1], [0], [0], [1], [0, 0, 1, 1], [], []>} : vector<256x4xbf16>, vector<4x8xbf16>, vector<256x8xf32> -> vector<256x8xf32>
    %74 = arith.addf %68, %73 : vector<256x8xf32>
    %75 = vector.extract_strided_slice %31 {offsets = [2, 1, 0], sizes = [16, 16, 4], strides = [1, 1, 1]} : vector<18x18x4xbf16> to vector<16x16x4xbf16>
    %76 = vector.shape_cast %75 : vector<16x16x4xbf16> to vector<256x4xbf16>
    %c7 = arith.constant 7 : index
    %c0_34 = arith.constant 0 : index
    %c0_35 = arith.constant 0 : index
    %77 = vector.load %arg3[%c7, %c0_34, %c0_35] : memref<9x4x8xbf16, #tpu.memory_space<vmem>>, vector<1x4x8xbf16>
    %78 = vector.shape_cast %77 : vector<1x4x8xbf16> to vector<4x8xbf16>
    %cst_36 = arith.constant dense<0.000000e+00> : vector<256x8xf32>
    %79 = tpu.matmul %76, %78, %cst_36 {dimension_numbers = #tpu.dot_dimension_numbers<[1], [0], [0], [1], [0, 0, 1, 1], [], []>} : vector<256x4xbf16>, vector<4x8xbf16>, vector<256x8xf32> -> vector<256x8xf32>
    %80 = arith.addf %74, %79 : vector<256x8xf32>
    %81 = vector.extract_strided_slice %31 {offsets = [2, 2, 0], sizes = [16, 16, 4], strides = [1, 1, 1]} : vector<18x18x4xbf16> to vector<16x16x4xbf16>
    %82 = vector.shape_cast %81 : vector<16x16x4xbf16> to vector<256x4xbf16>
    %c8 = arith.constant 8 : index
    %c0_37 = arith.constant 0 : index
    %c0_38 = arith.constant 0 : index
    %83 = vector.load %arg3[%c8, %c0_37, %c0_38] : memref<9x4x8xbf16, #tpu.memory_space<vmem>>, vector<1x4x8xbf16>
    %84 = vector.shape_cast %83 : vector<1x4x8xbf16> to vector<4x8xbf16>
    %cst_39 = arith.constant dense<0.000000e+00> : vector<256x8xf32>
    %85 = tpu.matmul %82, %84, %cst_39 {dimension_numbers = #tpu.dot_dimension_numbers<[1], [0], [0], [1], [0, 0, 1, 1], [], []>} : vector<256x4xbf16>, vector<4x8xbf16>, vector<256x8xf32> -> vector<256x8xf32>
    %86 = arith.addf %80, %85 : vector<256x8xf32>
    %c0_40 = arith.constant 0 : index
    %c0_41 = arith.constant 0 : index
    %87 = vector.load %arg4[%c0_40, %c0_41] : memref<1x8xf32, #tpu.memory_space<vmem>>, vector<1x8xf32>
    %88 = vector.broadcast %87 : vector<1x8xf32> to vector<256x8xf32>
    %89 = arith.addf %86, %88 : vector<256x8xf32>
    %c0_i32_42 = arith.constant 0 : i32
    %90 = arith.cmpi eq, %arg1, %c0_i32_42 : i32
    %91 = arith.extui %90 : i1 to i32
    %c0_i32_43 = arith.constant 0 : i32
    %92 = arith.cmpi ne, %91, %c0_i32_43 : i32
    scf.if %92 {
      %cst_56 = arith.constant 0.000000e+00 : f32
      %110 = vector.broadcast %cst_56 : f32 to vector<2x8xf32>
      %c0_57 = arith.constant 0 : index
      %c0_58 = arith.constant 0 : index
      %c0_59 = arith.constant 0 : index
      %111 = vector.load %arg8[%c0_57, %c0_58, %c0_59] : memref<1x2x8xf32, #tpu.memory_space<vmem>>, vector<1x2x8xf32>
      %112 = vector.shape_cast %111 : vector<1x2x8xf32> to vector<2x8xf32>
      %113 = vector.shape_cast %110 : vector<2x8xf32> to vector<1x2x8xf32>
      tpu.vector_store %arg8[%c0_57, %c0_58, %c0_59], %113 {strides = array<i32>} : memref<1x2x8xf32, #tpu.memory_space<vmem>>, vector<1x2x8xf32>,
    } else {
    }
    %c0_44 = arith.constant 0 : index
    %c0_45 = arith.constant 0 : index
    %c0_46 = arith.constant 0 : index
    %93 = vector.load %arg8[%c0_44, %c0_45, %c0_46] : memref<1x2x8xf32, #tpu.memory_space<vmem>>, vector<1x2x8xf32>
    %94 = vector.shape_cast %93 : vector<1x2x8xf32> to vector<2x8xf32>
    %cst_47 = arith.constant dense<0.000000e+00> : vector<8xf32>
    %95 = vector.multi_reduction <add>, %89, %cst_47 [0] : vector<256x8xf32> to vector<8xf32>
    %96 = vector.shape_cast %95 : vector<8xf32> to vector<1x8xf32>
    %97 = arith.mulf %89, %89 : vector<256x8xf32>
    %cst_48 = arith.constant dense<0.000000e+00> : vector<8xf32>
    %98 = vector.multi_reduction <add>, %97, %cst_48 [0] : vector<256x8xf32> to vector<8xf32>
    %99 = vector.shape_cast %98 : vector<8xf32> to vector<1x8xf32>
    %100 = tpu.concatenate %96, %99 in 0 : vector<1x8xf32>, vector<1x8xf32> -> vector<2x8xf32>
    %101 = arith.addf %94, %100 : vector<2x8xf32>
    %c0_49 = arith.constant 0 : index
    %c0_50 = arith.constant 0 : index
    %c0_51 = arith.constant 0 : index
    %102 = vector.load %arg8[%c0_49, %c0_50, %c0_51] : memref<1x2x8xf32, #tpu.memory_space<vmem>>, vector<1x2x8xf32>
    %103 = vector.shape_cast %102 : vector<1x2x8xf32> to vector<2x8xf32>
    %104 = vector.shape_cast %101 : vector<2x8xf32> to vector<1x2x8xf32>
    tpu.vector_store %arg8[%c0_49, %c0_50, %c0_51], %104 {strides = array<i32>} : memref<1x2x8xf32, #tpu.memory_space<vmem>>, vector<1x2x8xf32>,
    %105 = vector.shape_cast %89 : vector<256x8xf32> to vector<16x16x8xf32>
    %106 = arith.truncf %105 : vector<16x16x8xf32> to vector<16x16x8xbf16>
    %c0_52 = arith.constant 0 : index
    %c0_53 = arith.constant 0 : index
    %c0_54 = arith.constant 0 : index
    %c0_55 = arith.constant 0 : index
    %107 = vector.load %arg7[%c0_52, %c0_53, %c0_54, %c0_55] : memref<1x16x16x8xbf16, #tpu.memory_space<vmem>>, vector<1x16x16x8xbf16>
    %108 = vector.shape_cast %107 : vector<1x16x16x8xbf16> to vector<16x16x8xbf16>
    %109 = vector.shape_cast %106 : vector<16x16x8xbf16> to vector<1x16x16x8xbf16>
    tpu.vector_store %arg7[%c0_52, %c0_53, %c0_54, %c0_55], %109 {strides = array<i32>} : memref<1x16x16x8xbf16, #tpu.memory_space<vmem>>, vector<1x16x16x8xbf16>,
    return
  }
  func.func @transform_0(%arg0: i32, %arg1: i32) -> (i32, i32, i32, i32) {
    %c0_i32 = arith.constant 0 : i32
    %c0_i32_0 = arith.constant 0 : i32
    %c0_i32_1 = arith.constant 0 : i32
    %c0_i32_2 = arith.constant 0 : i32
    return %arg0, %c0_i32, %c0_i32_0, %c0_i32_1 : i32, i32, i32, i32
  }
  func.func @transform_1(%arg0: i32, %arg1: i32) -> (i32, i32, i32) {
    %c0_i32 = arith.constant 0 : i32
    %c0_i32_0 = arith.constant 0 : i32
    %c0_i32_1 = arith.constant 0 : i32
    %c0_i32_2 = arith.constant 0 : i32
    return %c0_i32, %c0_i32_0, %c0_i32_1 : i32, i32, i32
  }
  func.func @transform_2(%arg0: i32, %arg1: i32) -> (i32, i32) {
    %c0_i32 = arith.constant 0 : i32
    %c0_i32_0 = arith.constant 0 : i32
    %c0_i32_1 = arith.constant 0 : i32
    return %c0_i32, %c0_i32_0 : i32, i32
  }
  func.func @transform_3(%arg0: i32, %arg1: i32) -> (i32, i32) {
    %c0_i32 = arith.constant 0 : i32
    %c0_i32_0 = arith.constant 0 : i32
    %c0_i32_1 = arith.constant 0 : i32
    return %c0_i32, %c0_i32_0 : i32, i32
  }
  func.func @transform_4(%arg0: i32, %arg1: i32) -> (i32, i32) {
    %c0_i32 = arith.constant 0 : i32
    %c0_i32_0 = arith.constant 0 : i32
    %c0_i32_1 = arith.constant 0 : i32
    return %c0_i32, %c0_i32_0 : i32, i32
  }
  func.func @transform_5(%arg0: i32, %arg1: i32) -> (i32, i32, i32, i32) {
    %c0_i32 = arith.constant 0 : i32
    %c0_i32_0 = arith.constant 0 : i32
    %c0_i32_1 = arith.constant 0 : i32
    return %arg0, %arg1, %c0_i32, %c0_i32_0 : i32, i32, i32, i32
  }
  func.func @transform_6(%arg0: i32, %arg1: i32) -> (i32, i32, i32) {
    %c0_i32 = arith.constant 0 : i32
    %c0_i32_0 = arith.constant 0 : i32
    %c0_i32_1 = arith.constant 0 : i32
    return %arg0, %c0_i32, %c0_i32_0 : i32, i32, i32
  }
}

module attributes {stable_mosaic.version = 11 : i64} {
  func.func @_bn_relu_kernel(%arg0: i32, %arg1: memref<32x16x8xbf16, #tpu.memory_space<vmem>>, %arg2: memref<1x8xf32, #tpu.memory_space<vmem>>, %arg3: memref<1x8xf32, #tpu.memory_space<vmem>>, %arg4: memref<32x16x8xf32, #tpu.memory_space<vmem>>) attributes {dimension_semantics = [#tpu.dimension_semantics<parallel>], iteration_bounds = array<i64: 1>, scalar_prefetch = 0 : i64, scratch_operands = 0 : i64, tpu.core_type = #tpu.core_type<tc>, window_params = [{transform_indices = @transform_0, window_bounds = array<i64: 32, 16, 8>}, {pipeline_mode = #tpu.pipeline_mode<synchronous>, transform_indices = @transform_1, window_bounds = array<i64: 1, 8>}, {pipeline_mode = #tpu.pipeline_mode<synchronous>, transform_indices = @transform_2, window_bounds = array<i64: 1, 8>}, {transform_indices = @transform_3, window_bounds = array<i64: 32, 16, 8>}]} {
    %c0 = arith.constant 0 : index
    %c0_0 = arith.constant 0 : index
    %c0_1 = arith.constant 0 : index
    %0 = vector.load %arg1[%c0, %c0_0, %c0_1] : memref<32x16x8xbf16, #tpu.memory_space<vmem>>, vector<32x16x8xbf16>
    %1 = arith.extf %0 : vector<32x16x8xbf16> to vector<32x16x8xf32>
    %c0_2 = arith.constant 0 : index
    %c0_3 = arith.constant 0 : index
    %2 = vector.load %arg2[%c0_2, %c0_3] : memref<1x8xf32, #tpu.memory_space<vmem>>, vector<1x8xf32>
    %3 = vector.shape_cast %2 : vector<1x8xf32> to vector<1x1x8xf32>
    %4 = vector.broadcast %3 : vector<1x1x8xf32> to vector<32x16x8xf32>
    %5 = arith.mulf %1, %4 : vector<32x16x8xf32>
    %c0_4 = arith.constant 0 : index
    %c0_5 = arith.constant 0 : index
    %6 = vector.load %arg3[%c0_4, %c0_5] : memref<1x8xf32, #tpu.memory_space<vmem>>, vector<1x8xf32>
    %7 = vector.shape_cast %6 : vector<1x8xf32> to vector<1x1x8xf32>
    %8 = vector.broadcast %7 : vector<1x1x8xf32> to vector<32x16x8xf32>
    %9 = arith.addf %5, %8 : vector<32x16x8xf32>
    %cst = arith.constant 0.000000e+00 : f32
    %10 = vector.broadcast %cst : f32 to vector<32x16x8xf32>
    %11 = arith.maximumf %9, %10 : vector<32x16x8xf32>
    %c0_6 = arith.constant 0 : index
    %c0_7 = arith.constant 0 : index
    %c0_8 = arith.constant 0 : index
    %12 = vector.load %arg4[%c0_6, %c0_7, %c0_8] : memref<32x16x8xf32, #tpu.memory_space<vmem>>, vector<32x16x8xf32>
    tpu.vector_store %arg4[%c0_6, %c0_7, %c0_8], %11 {strides = array<i32>} : memref<32x16x8xf32, #tpu.memory_space<vmem>>, vector<32x16x8xf32>,
    return
  }
  func.func @transform_0(%arg0: i32) -> (i32, i32, i32) {
    %c0_i32 = arith.constant 0 : i32
    %c0_i32_0 = arith.constant 0 : i32
    %c0_i32_1 = arith.constant 0 : i32
    return %arg0, %c0_i32, %c0_i32_0 : i32, i32, i32
  }
  func.func @transform_1(%arg0: i32) -> (i32, i32) {
    %c0_i32 = arith.constant 0 : i32
    %c0_i32_0 = arith.constant 0 : i32
    %c0_i32_1 = arith.constant 0 : i32
    return %c0_i32, %c0_i32_0 : i32, i32
  }
  func.func @transform_2(%arg0: i32) -> (i32, i32) {
    %c0_i32 = arith.constant 0 : i32
    %c0_i32_0 = arith.constant 0 : i32
    %c0_i32_1 = arith.constant 0 : i32
    return %c0_i32, %c0_i32_0 : i32, i32
  }
  func.func @transform_3(%arg0: i32) -> (i32, i32, i32) {
    %c0_i32 = arith.constant 0 : i32
    %c0_i32_0 = arith.constant 0 : i32
    %c0_i32_1 = arith.constant 0 : i32
    return %arg0, %c0_i32, %c0_i32_0 : i32, i32, i32
  }
}

module attributes {stable_mosaic.version = 11 : i64} {
  func.func @kernel(%arg0: i32, %arg1: i32, %arg2: memref<1x16x16x8xbf16, #tpu.memory_space<vmem>>, %arg3: memref<9x8x8xbf16, #tpu.memory_space<vmem>>, %arg4: memref<1x8xf32, #tpu.memory_space<vmem>>, %arg5: memref<1x8xf32, #tpu.memory_space<vmem>>, %arg6: memref<1x8xf32, #tpu.memory_space<vmem>>, %arg7: memref<1x16x16x8xbf16, #tpu.memory_space<vmem>>, %arg8: memref<1x2x8xf32, #tpu.memory_space<vmem>>) attributes {dimension_semantics = [#tpu.dimension_semantics<parallel>, #tpu.dimension_semantics<arbitrary>], iteration_bounds = array<i64: 2, 1>, scalar_prefetch = 0 : i64, scratch_operands = 0 : i64, tpu.core_type = #tpu.core_type<tc>, window_params = [{transform_indices = @transform_0, window_bounds = array<i64: 1, 16, 16, 8>}, {pipeline_mode = #tpu.pipeline_mode<synchronous>, transform_indices = @transform_1, window_bounds = array<i64: 9, 8, 8>}, {pipeline_mode = #tpu.pipeline_mode<synchronous>, transform_indices = @transform_2, window_bounds = array<i64: 1, 8>}, {pipeline_mode = #tpu.pipeline_mode<synchronous>, transform_indices = @transform_3, window_bounds = array<i64: 1, 8>}, {pipeline_mode = #tpu.pipeline_mode<synchronous>, transform_indices = @transform_4, window_bounds = array<i64: 1, 8>}, {transform_indices = @transform_5, window_bounds = array<i64: 1, 16, 16, 8>}, {transform_indices = @transform_6, window_bounds = array<i64: 1, 2, 8>}]} {
    %c16_i32 = arith.constant 16 : i32
    %0 = arith.muli %arg1, %c16_i32 : i32
    %1 = tpu.assume_multiple %0, 16 : i32
    %c1_i32 = arith.constant 1 : i32
    %2 = arith.subi %1, %c1_i32 : i32
    %c0_i32 = arith.constant 0 : i32
    %3 = arith.maxsi %2, %c0_i32 : i32
    %c0 = arith.constant 0 : index
    %4 = arith.index_cast %3 : i32 to index
    %c0_0 = arith.constant 0 : index
    %c0_1 = arith.constant 0 : index
    %5 = vector.load %arg2[%c0, %4, %c0_0, %c0_1] : memref<1x16x16x8xbf16, #tpu.memory_space<vmem>>, vector<1x1x16x8xbf16>
    %6 = vector.shape_cast %5 : vector<1x1x16x8xbf16> to vector<1x16x8xbf16>
    %7 = arith.extf %6 : vector<1x16x8xbf16> to vector<1x16x8xf32>
    %c0_2 = arith.constant 0 : index
    %c0_3 = arith.constant 0 : index
    %8 = vector.load %arg5[%c0_2, %c0_3] : memref<1x8xf32, #tpu.memory_space<vmem>>, vector<1x8xf32>
    %9 = vector.shape_cast %8 : vector<1x8xf32> to vector<1x1x8xf32>
    %10 = vector.broadcast %9 : vector<1x1x8xf32> to vector<1x16x8xf32>
    %11 = arith.mulf %7, %10 : vector<1x16x8xf32>
    %c0_4 = arith.constant 0 : index
    %c0_5 = arith.constant 0 : index
    %12 = vector.load %arg6[%c0_4, %c0_5] : memref<1x8xf32, #tpu.memory_space<vmem>>, vector<1x8xf32>
    %13 = vector.shape_cast %12 : vector<1x8xf32> to vector<1x1x8xf32>
    %14 = vector.broadcast %13 : vector<1x1x8xf32> to vector<1x16x8xf32>
    %15 = arith.addf %11, %14 : vector<1x16x8xf32>
    %cst = arith.constant 0.000000e+00 : f32
    %16 = vector.broadcast %cst : f32 to vector<1x16x8xf32>
    %17 = arith.maximumf %15, %16 : vector<1x16x8xf32>
    %c0_i32_6 = arith.constant 0 : i32
    %18 = arith.cmpi sgt, %arg1, %c0_i32_6 : i32
    %19 = arith.extui %18 : i1 to i32
    %20 = arith.sitofp %19 : i32 to f32
    %21 = vector.broadcast %20 : f32 to vector<1x16x8xf32>
    %22 = arith.mulf %17, %21 : vector<1x16x8xf32>
    %c0_7 = arith.constant 0 : index
    %23 = arith.index_cast %1 : i32 to index
    %c0_8 = arith.constant 0 : index
    %c0_9 = arith.constant 0 : index
    %24 = vector.load %arg2[%c0_7, %23, %c0_8, %c0_9] : memref<1x16x16x8xbf16, #tpu.memory_space<vmem>>, vector<1x16x16x8xbf16>
    %25 = vector.shape_cast %24 : vector<1x16x16x8xbf16> to vector<16x16x8xbf16>
    %26 = arith.extf %25 : vector<16x16x8xbf16> to vector<16x16x8xf32>
    %c0_10 = arith.constant 0 : index
    %c0_11 = arith.constant 0 : index
    %27 = vector.load %arg5[%c0_10, %c0_11] : memref<1x8xf32, #tpu.memory_space<vmem>>, vector<1x8xf32>
    %28 = vector.shape_cast %27 : vector<1x8xf32> to vector<1x1x8xf32>
    %29 = vector.broadcast %28 : vector<1x1x8xf32> to vector<16x16x8xf32>
    %30 = arith.mulf %26, %29 : vector<16x16x8xf32>
    %c0_12 = arith.constant 0 : index
    %c0_13 = arith.constant 0 : index
    %31 = vector.load %arg6[%c0_12, %c0_13] : memref<1x8xf32, #tpu.memory_space<vmem>>, vector<1x8xf32>
    %32 = vector.shape_cast %31 : vector<1x8xf32> to vector<1x1x8xf32>
    %33 = vector.broadcast %32 : vector<1x1x8xf32> to vector<16x16x8xf32>
    %34 = arith.addf %30, %33 : vector<16x16x8xf32>
    %cst_14 = arith.constant 0.000000e+00 : f32
    %35 = vector.broadcast %cst_14 : f32 to vector<16x16x8xf32>
    %36 = arith.maximumf %34, %35 : vector<16x16x8xf32>
    %c16_i32_15 = arith.constant 16 : i32
    %37 = arith.addi %1, %c16_i32_15 : i32
    %c15_i32 = arith.constant 15 : i32
    %38 = arith.minsi %37, %c15_i32 : i32
    %c0_16 = arith.constant 0 : index
    %39 = arith.index_cast %38 : i32 to index
    %c0_17 = arith.constant 0 : index
    %c0_18 = arith.constant 0 : index
    %40 = vector.load %arg2[%c0_16, %39, %c0_17, %c0_18] : memref<1x16x16x8xbf16, #tpu.memory_space<vmem>>, vector<1x1x16x8xbf16>
    %41 = vector.shape_cast %40 : vector<1x1x16x8xbf16> to vector<1x16x8xbf16>
    %42 = arith.extf %41 : vector<1x16x8xbf16> to vector<1x16x8xf32>
    %c0_19 = arith.constant 0 : index
    %c0_20 = arith.constant 0 : index
    %43 = vector.load %arg5[%c0_19, %c0_20] : memref<1x8xf32, #tpu.memory_space<vmem>>, vector<1x8xf32>
    %44 = vector.shape_cast %43 : vector<1x8xf32> to vector<1x1x8xf32>
    %45 = vector.broadcast %44 : vector<1x1x8xf32> to vector<1x16x8xf32>
    %46 = arith.mulf %42, %45 : vector<1x16x8xf32>
    %c0_21 = arith.constant 0 : index
    %c0_22 = arith.constant 0 : index
    %47 = vector.load %arg6[%c0_21, %c0_22] : memref<1x8xf32, #tpu.memory_space<vmem>>, vector<1x8xf32>
    %48 = vector.shape_cast %47 : vector<1x8xf32> to vector<1x1x8xf32>
    %49 = vector.broadcast %48 : vector<1x1x8xf32> to vector<1x16x8xf32>
    %50 = arith.addf %46, %49 : vector<1x16x8xf32>
    %cst_23 = arith.constant 0.000000e+00 : f32
    %51 = vector.broadcast %cst_23 : f32 to vector<1x16x8xf32>
    %52 = arith.maximumf %50, %51 : vector<1x16x8xf32>
    %c0_i32_24 = arith.constant 0 : i32
    %53 = arith.cmpi slt, %arg1, %c0_i32_24 : i32
    %54 = arith.extui %53 : i1 to i32
    %55 = arith.sitofp %54 : i32 to f32
    %56 = vector.broadcast %55 : f32 to vector<1x16x8xf32>
    %57 = arith.mulf %52, %56 : vector<1x16x8xf32>
    %58 = tpu.concatenate %22, %36, %57 in 0 : vector<1x16x8xf32>, vector<16x16x8xf32>, vector<1x16x8xf32> -> vector<18x16x8xf32>
    %59 = arith.truncf %58 : vector<18x16x8xf32> to vector<18x16x8xbf16>
    %cst_25 = arith.constant 0.000000e+00 : bf16
    %60 = vector.broadcast %cst_25 : bf16 to vector<18x1x8xbf16>
    %61 = tpu.concatenate %60, %59, %60 in 1 : vector<18x1x8xbf16>, vector<18x16x8xbf16>, vector<18x1x8xbf16> -> vector<18x18x8xbf16>
    %cst_26 = arith.constant 0.000000e+00 : f32
    %62 = vector.broadcast %cst_26 : f32 to vector<256x8xf32>
    %63 = vector.extract_strided_slice %61 {offsets = [0, 0, 0], sizes = [16, 16, 8], strides = [1, 1, 1]} : vector<18x18x8xbf16> to vector<16x16x8xbf16>
    %64 = vector.shape_cast %63 : vector<16x16x8xbf16> to vector<256x8xbf16>
    %c0_27 = arith.constant 0 : index
    %c0_28 = arith.constant 0 : index
    %c0_29 = arith.constant 0 : index
    %65 = vector.load %arg3[%c0_27, %c0_28, %c0_29] : memref<9x8x8xbf16, #tpu.memory_space<vmem>>, vector<1x8x8xbf16>
    %66 = vector.shape_cast %65 : vector<1x8x8xbf16> to vector<8x8xbf16>
    %cst_30 = arith.constant dense<0.000000e+00> : vector<256x8xf32>
    %67 = tpu.matmul %64, %66, %cst_30 {dimension_numbers = #tpu.dot_dimension_numbers<[1], [0], [0], [1], [0, 0, 1, 1], [], []>} : vector<256x8xbf16>, vector<8x8xbf16>, vector<256x8xf32> -> vector<256x8xf32>
    %68 = arith.addf %62, %67 : vector<256x8xf32>
    %69 = vector.extract_strided_slice %61 {offsets = [0, 1, 0], sizes = [16, 16, 8], strides = [1, 1, 1]} : vector<18x18x8xbf16> to vector<16x16x8xbf16>
    %70 = vector.shape_cast %69 : vector<16x16x8xbf16> to vector<256x8xbf16>
    %c1 = arith.constant 1 : index
    %c0_31 = arith.constant 0 : index
    %c0_32 = arith.constant 0 : index
    %71 = vector.load %arg3[%c1, %c0_31, %c0_32] : memref<9x8x8xbf16, #tpu.memory_space<vmem>>, vector<1x8x8xbf16>
    %72 = vector.shape_cast %71 : vector<1x8x8xbf16> to vector<8x8xbf16>
    %cst_33 = arith.constant dense<0.000000e+00> : vector<256x8xf32>
    %73 = tpu.matmul %70, %72, %cst_33 {dimension_numbers = #tpu.dot_dimension_numbers<[1], [0], [0], [1], [0, 0, 1, 1], [], []>} : vector<256x8xbf16>, vector<8x8xbf16>, vector<256x8xf32> -> vector<256x8xf32>
    %74 = arith.addf %68, %73 : vector<256x8xf32>
    %75 = vector.extract_strided_slice %61 {offsets = [0, 2, 0], sizes = [16, 16, 8], strides = [1, 1, 1]} : vector<18x18x8xbf16> to vector<16x16x8xbf16>
    %76 = vector.shape_cast %75 : vector<16x16x8xbf16> to vector<256x8xbf16>
    %c2 = arith.constant 2 : index
    %c0_34 = arith.constant 0 : index
    %c0_35 = arith.constant 0 : index
    %77 = vector.load %arg3[%c2, %c0_34, %c0_35] : memref<9x8x8xbf16, #tpu.memory_space<vmem>>, vector<1x8x8xbf16>
    %78 = vector.shape_cast %77 : vector<1x8x8xbf16> to vector<8x8xbf16>
    %cst_36 = arith.constant dense<0.000000e+00> : vector<256x8xf32>
    %79 = tpu.matmul %76, %78, %cst_36 {dimension_numbers = #tpu.dot_dimension_numbers<[1], [0], [0], [1], [0, 0, 1, 1], [], []>} : vector<256x8xbf16>, vector<8x8xbf16>, vector<256x8xf32> -> vector<256x8xf32>
    %80 = arith.addf %74, %79 : vector<256x8xf32>
    %81 = vector.extract_strided_slice %61 {offsets = [1, 0, 0], sizes = [16, 16, 8], strides = [1, 1, 1]} : vector<18x18x8xbf16> to vector<16x16x8xbf16>
    %82 = vector.shape_cast %81 : vector<16x16x8xbf16> to vector<256x8xbf16>
    %c3 = arith.constant 3 : index
    %c0_37 = arith.constant 0 : index
    %c0_38 = arith.constant 0 : index
    %83 = vector.load %arg3[%c3, %c0_37, %c0_38] : memref<9x8x8xbf16, #tpu.memory_space<vmem>>, vector<1x8x8xbf16>
    %84 = vector.shape_cast %83 : vector<1x8x8xbf16> to vector<8x8xbf16>
    %cst_39 = arith.constant dense<0.000000e+00> : vector<256x8xf32>
    %85 = tpu.matmul %82, %84, %cst_39 {dimension_numbers = #tpu.dot_dimension_numbers<[1], [0], [0], [1], [0, 0, 1, 1], [], []>} : vector<256x8xbf16>, vector<8x8xbf16>, vector<256x8xf32> -> vector<256x8xf32>
    %86 = arith.addf %80, %85 : vector<256x8xf32>
    %87 = vector.extract_strided_slice %61 {offsets = [1, 1, 0], sizes = [16, 16, 8], strides = [1, 1, 1]} : vector<18x18x8xbf16> to vector<16x16x8xbf16>
    %88 = vector.shape_cast %87 : vector<16x16x8xbf16> to vector<256x8xbf16>
    %c4 = arith.constant 4 : index
    %c0_40 = arith.constant 0 : index
    %c0_41 = arith.constant 0 : index
    %89 = vector.load %arg3[%c4, %c0_40, %c0_41] : memref<9x8x8xbf16, #tpu.memory_space<vmem>>, vector<1x8x8xbf16>
    %90 = vector.shape_cast %89 : vector<1x8x8xbf16> to vector<8x8xbf16>
    %cst_42 = arith.constant dense<0.000000e+00> : vector<256x8xf32>
    %91 = tpu.matmul %88, %90, %cst_42 {dimension_numbers = #tpu.dot_dimension_numbers<[1], [0], [0], [1], [0, 0, 1, 1], [], []>} : vector<256x8xbf16>, vector<8x8xbf16>, vector<256x8xf32> -> vector<256x8xf32>
    %92 = arith.addf %86, %91 : vector<256x8xf32>
    %93 = vector.extract_strided_slice %61 {offsets = [1, 2, 0], sizes = [16, 16, 8], strides = [1, 1, 1]} : vector<18x18x8xbf16> to vector<16x16x8xbf16>
    %94 = vector.shape_cast %93 : vector<16x16x8xbf16> to vector<256x8xbf16>
    %c5 = arith.constant 5 : index
    %c0_43 = arith.constant 0 : index
    %c0_44 = arith.constant 0 : index
    %95 = vector.load %arg3[%c5, %c0_43, %c0_44] : memref<9x8x8xbf16, #tpu.memory_space<vmem>>, vector<1x8x8xbf16>
    %96 = vector.shape_cast %95 : vector<1x8x8xbf16> to vector<8x8xbf16>
    %cst_45 = arith.constant dense<0.000000e+00> : vector<256x8xf32>
    %97 = tpu.matmul %94, %96, %cst_45 {dimension_numbers = #tpu.dot_dimension_numbers<[1], [0], [0], [1], [0, 0, 1, 1], [], []>} : vector<256x8xbf16>, vector<8x8xbf16>, vector<256x8xf32> -> vector<256x8xf32>
    %98 = arith.addf %92, %97 : vector<256x8xf32>
    %99 = vector.extract_strided_slice %61 {offsets = [2, 0, 0], sizes = [16, 16, 8], strides = [1, 1, 1]} : vector<18x18x8xbf16> to vector<16x16x8xbf16>
    %100 = vector.shape_cast %99 : vector<16x16x8xbf16> to vector<256x8xbf16>
    %c6 = arith.constant 6 : index
    %c0_46 = arith.constant 0 : index
    %c0_47 = arith.constant 0 : index
    %101 = vector.load %arg3[%c6, %c0_46, %c0_47] : memref<9x8x8xbf16, #tpu.memory_space<vmem>>, vector<1x8x8xbf16>
    %102 = vector.shape_cast %101 : vector<1x8x8xbf16> to vector<8x8xbf16>
    %cst_48 = arith.constant dense<0.000000e+00> : vector<256x8xf32>
    %103 = tpu.matmul %100, %102, %cst_48 {dimension_numbers = #tpu.dot_dimension_numbers<[1], [0], [0], [1], [0, 0, 1, 1], [], []>} : vector<256x8xbf16>, vector<8x8xbf16>, vector<256x8xf32> -> vector<256x8xf32>
    %104 = arith.addf %98, %103 : vector<256x8xf32>
    %105 = vector.extract_strided_slice %61 {offsets = [2, 1, 0], sizes = [16, 16, 8], strides = [1, 1, 1]} : vector<18x18x8xbf16> to vector<16x16x8xbf16>
    %106 = vector.shape_cast %105 : vector<16x16x8xbf16> to vector<256x8xbf16>
    %c7 = arith.constant 7 : index
    %c0_49 = arith.constant 0 : index
    %c0_50 = arith.constant 0 : index
    %107 = vector.load %arg3[%c7, %c0_49, %c0_50] : memref<9x8x8xbf16, #tpu.memory_space<vmem>>, vector<1x8x8xbf16>
    %108 = vector.shape_cast %107 : vector<1x8x8xbf16> to vector<8x8xbf16>
    %cst_51 = arith.constant dense<0.000000e+00> : vector<256x8xf32>
    %109 = tpu.matmul %106, %108, %cst_51 {dimension_numbers = #tpu.dot_dimension_numbers<[1], [0], [0], [1], [0, 0, 1, 1], [], []>} : vector<256x8xbf16>, vector<8x8xbf16>, vector<256x8xf32> -> vector<256x8xf32>
    %110 = arith.addf %104, %109 : vector<256x8xf32>
    %111 = vector.extract_strided_slice %61 {offsets = [2, 2, 0], sizes = [16, 16, 8], strides = [1, 1, 1]} : vector<18x18x8xbf16> to vector<16x16x8xbf16>
    %112 = vector.shape_cast %111 : vector<16x16x8xbf16> to vector<256x8xbf16>
    %c8 = arith.constant 8 : index
    %c0_52 = arith.constant 0 : index
    %c0_53 = arith.constant 0 : index
    %113 = vector.load %arg3[%c8, %c0_52, %c0_53] : memref<9x8x8xbf16, #tpu.memory_space<vmem>>, vector<1x8x8xbf16>
    %114 = vector.shape_cast %113 : vector<1x8x8xbf16> to vector<8x8xbf16>
    %cst_54 = arith.constant dense<0.000000e+00> : vector<256x8xf32>
    %115 = tpu.matmul %112, %114, %cst_54 {dimension_numbers = #tpu.dot_dimension_numbers<[1], [0], [0], [1], [0, 0, 1, 1], [], []>} : vector<256x8xbf16>, vector<8x8xbf16>, vector<256x8xf32> -> vector<256x8xf32>
    %116 = arith.addf %110, %115 : vector<256x8xf32>
    %c0_55 = arith.constant 0 : index
    %c0_56 = arith.constant 0 : index
    %117 = vector.load %arg4[%c0_55, %c0_56] : memref<1x8xf32, #tpu.memory_space<vmem>>, vector<1x8xf32>
    %118 = vector.broadcast %117 : vector<1x8xf32> to vector<256x8xf32>
    %119 = arith.addf %116, %118 : vector<256x8xf32>
    %c0_i32_57 = arith.constant 0 : i32
    %120 = arith.cmpi eq, %arg1, %c0_i32_57 : i32
    %121 = arith.extui %120 : i1 to i32
    %c0_i32_58 = arith.constant 0 : i32
    %122 = arith.cmpi ne, %121, %c0_i32_58 : i32
    scf.if %122 {
      %cst_71 = arith.constant 0.000000e+00 : f32
      %140 = vector.broadcast %cst_71 : f32 to vector<2x8xf32>
      %c0_72 = arith.constant 0 : index
      %c0_73 = arith.constant 0 : index
      %c0_74 = arith.constant 0 : index
      %141 = vector.load %arg8[%c0_72, %c0_73, %c0_74] : memref<1x2x8xf32, #tpu.memory_space<vmem>>, vector<1x2x8xf32>
      %142 = vector.shape_cast %141 : vector<1x2x8xf32> to vector<2x8xf32>
      %143 = vector.shape_cast %140 : vector<2x8xf32> to vector<1x2x8xf32>
      tpu.vector_store %arg8[%c0_72, %c0_73, %c0_74], %143 {strides = array<i32>} : memref<1x2x8xf32, #tpu.memory_space<vmem>>, vector<1x2x8xf32>,
    } else {
    }
    %c0_59 = arith.constant 0 : index
    %c0_60 = arith.constant 0 : index
    %c0_61 = arith.constant 0 : index
    %123 = vector.load %arg8[%c0_59, %c0_60, %c0_61] : memref<1x2x8xf32, #tpu.memory_space<vmem>>, vector<1x2x8xf32>
    %124 = vector.shape_cast %123 : vector<1x2x8xf32> to vector<2x8xf32>
    %cst_62 = arith.constant dense<0.000000e+00> : vector<8xf32>
    %125 = vector.multi_reduction <add>, %119, %cst_62 [0] : vector<256x8xf32> to vector<8xf32>
    %126 = vector.shape_cast %125 : vector<8xf32> to vector<1x8xf32>
    %127 = arith.mulf %119, %119 : vector<256x8xf32>
    %cst_63 = arith.constant dense<0.000000e+00> : vector<8xf32>
    %128 = vector.multi_reduction <add>, %127, %cst_63 [0] : vector<256x8xf32> to vector<8xf32>
    %129 = vector.shape_cast %128 : vector<8xf32> to vector<1x8xf32>
    %130 = tpu.concatenate %126, %129 in 0 : vector<1x8xf32>, vector<1x8xf32> -> vector<2x8xf32>
    %131 = arith.addf %124, %130 : vector<2x8xf32>
    %c0_64 = arith.constant 0 : index
    %c0_65 = arith.constant 0 : index
    %c0_66 = arith.constant 0 : index
    %132 = vector.load %arg8[%c0_64, %c0_65, %c0_66] : memref<1x2x8xf32, #tpu.memory_space<vmem>>, vector<1x2x8xf32>
    %133 = vector.shape_cast %132 : vector<1x2x8xf32> to vector<2x8xf32>
    %134 = vector.shape_cast %131 : vector<2x8xf32> to vector<1x2x8xf32>
    tpu.vector_store %arg8[%c0_64, %c0_65, %c0_66], %134 {strides = array<i32>} : memref<1x2x8xf32, #tpu.memory_space<vmem>>, vector<1x2x8xf32>,
    %135 = vector.shape_cast %119 : vector<256x8xf32> to vector<16x16x8xf32>
    %136 = arith.truncf %135 : vector<16x16x8xf32> to vector<16x16x8xbf16>
    %c0_67 = arith.constant 0 : index
    %c0_68 = arith.constant 0 : index
    %c0_69 = arith.constant 0 : index
    %c0_70 = arith.constant 0 : index
    %137 = vector.load %arg7[%c0_67, %c0_68, %c0_69, %c0_70] : memref<1x16x16x8xbf16, #tpu.memory_space<vmem>>, vector<1x16x16x8xbf16>
    %138 = vector.shape_cast %137 : vector<1x16x16x8xbf16> to vector<16x16x8xbf16>
    %139 = vector.shape_cast %136 : vector<16x16x8xbf16> to vector<1x16x16x8xbf16>
    tpu.vector_store %arg7[%c0_67, %c0_68, %c0_69, %c0_70], %139 {strides = array<i32>} : memref<1x16x16x8xbf16, #tpu.memory_space<vmem>>, vector<1x16x16x8xbf16>,
    return
  }
  func.func @transform_0(%arg0: i32, %arg1: i32) -> (i32, i32, i32, i32) {
    %c0_i32 = arith.constant 0 : i32
    %c0_i32_0 = arith.constant 0 : i32
    %c0_i32_1 = arith.constant 0 : i32
    %c0_i32_2 = arith.constant 0 : i32
    return %arg0, %c0_i32, %c0_i32_0, %c0_i32_1 : i32, i32, i32, i32
  }
  func.func @transform_1(%arg0: i32, %arg1: i32) -> (i32, i32, i32) {
    %c0_i32 = arith.constant 0 : i32
    %c0_i32_0 = arith.constant 0 : i32
    %c0_i32_1 = arith.constant 0 : i32
    %c0_i32_2 = arith.constant 0 : i32
    return %c0_i32, %c0_i32_0, %c0_i32_1 : i32, i32, i32
  }
  func.func @transform_2(%arg0: i32, %arg1: i32) -> (i32, i32) {
    %c0_i32 = arith.constant 0 : i32
    %c0_i32_0 = arith.constant 0 : i32
    %c0_i32_1 = arith.constant 0 : i32
    return %c0_i32, %c0_i32_0 : i32, i32
  }
  func.func @transform_3(%arg0: i32, %arg1: i32) -> (i32, i32) {
    %c0_i32 = arith.constant 0 : i32
    %c0_i32_0 = arith.constant 0 : i32
    %c0_i32_1 = arith.constant 0 : i32
    return %c0_i32, %c0_i32_0 : i32, i32
  }
  func.func @transform_4(%arg0: i32, %arg1: i32) -> (i32, i32) {
    %c0_i32 = arith.constant 0 : i32
    %c0_i32_0 = arith.constant 0 : i32
    %c0_i32_1 = arith.constant 0 : i32
    return %c0_i32, %c0_i32_0 : i32, i32
  }
  func.func @transform_5(%arg0: i32, %arg1: i32) -> (i32, i32, i32, i32) {
    %c0_i32 = arith.constant 0 : i32
    %c0_i32_0 = arith.constant 0 : i32
    %c0_i32_1 = arith.constant 0 : i32
    return %arg0, %arg1, %c0_i32, %c0_i32_0 : i32, i32, i32, i32
  }
  func.func @transform_6(%arg0: i32, %arg1: i32) -> (i32, i32, i32) {
    %c0_i32 = arith.constant 0 : i32
    %c0_i32_0 = arith.constant 0 : i32
    %c0_i32_1 = arith.constant 0 : i32
    return %arg0, %c0_i32, %c0_i32_0 : i32, i32, i32
  }
}

</mosaic_0001>

<bundles_post_ra>
// kernel: vgg_block_pallas.5
= control target key start
LH: loop header
LB: loop body
LE: loop exit
PB: predicated region body
PF: predicated region fallthrough
CT: control target
= control target key end

     0   :  { %vm342_vm0 = vcmask 64512   ;;  %s1082_s0 = inlined_call_operand.vmem [shape: bf16[32,16,8], index: 0, kind: input, shape index: {}]   ;;  %s1083_s1 = inlined_call_operand.vmem [shape: f32[1,8], index: 1, kind: input, shape index: {}]   ;;  %s1084_s2 = inlined_call_operand.vmem [shape: f32[1,8], index: 2, kind: input, shape index: {}]   ;;  %s1085_s3 = inlined_call_operand.vmem [shape: f32[32,16,8], index: 3, kind: output, shape index: {}]  }
   0x1   :  { %v412_v0 = vld [vmem:[%s1082_s0] sm:$0xff]   ;;  %v539_v5 = vld [vmem:[%s1082_s0 + $0x8] sm:$0xff]   ;;  %v540_v8 = vld [vmem:[%s1082_s0 + $0x10] sm:$0xff]  }
   0x2   :  { %v598_v1 = vld [vmem:[%s1083_s1] ss:$0 sm:$0xff]  ;;  %v413_v2 = vunpack.c.l.bf16 %v412_v0  ;;  %v414_v4 = vunpack.c.h.bf16 %v412_v0  ;;  %v417_v6 = vunpack.c.l.bf16 %v539_v5  ;;  %v418_v7 = vunpack.c.h.bf16 %v539_v5  ;;  %v541_v9 = vld [vmem:[%s1082_s0 + $0x18] sm:$0xff]   ;;  %v543_v31 = vld [vmem:[%s1082_s0 + $0x28] sm:$0xff]  }
   0x3   :  { %v603_v3 = vld [vmem:[%s1084_s2] ss:$0 sm:$0xff]  ;;  %v421_v12 = vunpack.c.l.bf16 %v540_v8  ;;  %v422_v13 = vunpack.c.h.bf16 %v540_v8  ;;  %v425_v16 = vunpack.c.l.bf16 %v541_v9  ;;  %v426_v17 = vunpack.c.h.bf16 %v541_v9  ;;  %v544_v36 = vld [vmem:[%s1082_s0 + $0x30] sm:$0xff]   ;;  %v545_v41 = vld [vmem:[%s1082_s0 + $0x38] sm:$0xff]  }
   0x4   :  { %v146_v10 = vmul.f32 %v598_v1, %v413_v2  ;;  %v147_v11 = vmul.f32 %v598_v1, %v414_v4  ;;  %v148_v14 = vmul.f32 %v598_v1, %v417_v6  ;;  %v149_v15 = vmul.f32 %v598_v1, %v418_v7  ;;  %v542_v26 = vld [vmem:[%s1082_s0 + $0x20] sm:$0xff]   ;;  %v547_v5 = vld [vmem:[%s1082_s0 + $0x48] sm:$0xff]  }
   0x5   :  { %v150_v20 = vmul.f32 %v598_v1, %v421_v12  ;;  %v151_v21 = vmul.f32 %v598_v1, %v422_v13  ;;  %v152_v24 = vmul.f32 %v598_v1, %v425_v16  ;;  %v153_v25 = vmul.f32 %v598_v1, %v426_v17  ;;  %v546_v62 = vld [vmem:[%s1082_s0 + $0x40] sm:$0xff]  }
   0x6   :  { %v214_v18 = vadd.f32 %v603_v3, %v146_v10  ;;  %v215_v19 = vadd.f32 %v603_v3, %v147_v11  ;;  %v216_v22 = vadd.f32 %v603_v3, %v148_v14  ;;  %v217_v23 = vadd.f32 %v603_v3, %v149_v15  ;;  %v548_v10 = vld [vmem:[%s1082_s0 + $0x50] sm:$0xff]   ;;  %v549_v15 = vld [vmem:[%s1082_s0 + $0x58] sm:$0xff]  }
   0x7   :  { %v218_v29 = vadd.f32 %v603_v3, %v150_v20  ;;  %v219_v30 = vadd.f32 %v603_v3, %v151_v21  ;;  %v220_v34 = vadd.f32 %v603_v3, %v152_v24  ;;  %v221_v35 = vadd.f32 %v603_v3, %v153_v25 }
   0x8   :  { %v278_v27 = vmax.f32 %v214_v18, 0.0  ;;  %v279_v28 = vmax.f32 %v215_v19, 0.0  ;;  %v280_v32 = vmax.f32 %v216_v22, 0.0  ;;  %v281_v33 = vmax.f32 %v217_v23, 0.0 }
   0x9   :  { %v282_v37 = vmax.f32 %v218_v29, 0.0  ;;  %v283_v38 = vmax.f32 %v219_v30, 0.0  ;;  %v429_v39 = vunpack.c.l.bf16 %v542_v26  ;;  %v430_v40 = vunpack.c.h.bf16 %v542_v26 }
   0xa   :  { %343 = vst.msk [vmem:[%s1085_s3] sm:$0xff] %vm342_vm0, %v278_v27  ;;  %v284_v42 = vmax.f32 %v220_v34, 0.0  ;;  %v285_v43 = vmax.f32 %v221_v35, 0.0  ;;  %v433_v44 = vunpack.c.l.bf16 %v543_v31  ;;  %v434_v45 = vunpack.c.h.bf16 %v543_v31 }
   0xb   :  { %344 = vst.msk [vmem:[%s1085_s3 + $0x8] sm:$0xff] %vm342_vm0, %v279_v28  ;;  %v154_v46 = vmul.f32 %v598_v1, %v429_v39  ;;  %v155_v47 = vmul.f32 %v598_v1, %v430_v40  ;;  %v437_v48 = vunpack.c.l.bf16 %v544_v36  ;;  %v438_v49 = vunpack.c.h.bf16 %v544_v36  ;;  %v550_v36 = vld [vmem:[%s1082_s0 + $0x60] sm:$0xff]  }
   0xc   :  { %345 = vst.msk [vmem:[%s1085_s3 + $0x10] sm:$0xff] %vm342_vm0, %v280_v32  ;;  %v156_v50 = vmul.f32 %v598_v1, %v433_v44  ;;  %v157_v51 = vmul.f32 %v598_v1, %v434_v45  ;;  %v441_v52 = vunpack.c.l.bf16 %v545_v41  ;;  %v442_v53 = vunpack.c.h.bf16 %v545_v41  ;;  %v551_v41 = vld [vmem:[%s1082_s0 + $0x68] sm:$0xff]  }
   0xd   :  { %346 = vst.msk [vmem:[%s1085_s3 + $0x18] sm:$0xff] %vm342_vm0, %v281_v33  ;;  %v222_v54 = vadd.f32 %v603_v3, %v154_v46  ;;  %v223_v55 = vadd.f32 %v603_v3, %v155_v47  ;;  %v158_v56 = vmul.f32 %v598_v1, %v437_v48  ;;  %v159_v57 = vmul.f32 %v598_v1, %v438_v49  ;;  %v552_v46 = vld [vmem:[%s1082_s0 + $0x70] sm:$0xff]  }
   0xe   :  { %347 = vst.msk [vmem:[%s1085_s3 + $0x20] sm:$0xff] %vm342_vm0, %v282_v37  ;;  %v224_v58 = vadd.f32 %v603_v3, %v156_v50  ;;  %v225_v59 = vadd.f32 %v603_v3, %v157_v51  ;;  %v160_v60 = vmul.f32 %v598_v1, %v441_v52  ;;  %v161_v61 = vmul.f32 %v598_v1, %v442_v53  ;;  %v553_v51 = vld [vmem:[%s1082_s0 + $0x78] sm:$0xff]  }
   0xf   :  { %348 = vst.msk [vmem:[%s1085_s3 + $0x28] sm:$0xff] %vm342_vm0, %v283_v38  ;;  %v286_v63 = vmax.f32 %v222_v54, 0.0  ;;  %v287_v0 = vmax.f32 %v223_v55, 0.0  ;;  %v226_v2 = vadd.f32 %v603_v3, %v158_v56  ;;  %v227_v4 = vadd.f32 %v603_v3, %v159_v57 }
  0x10   :  { %349 = vst.msk [vmem:[%s1085_s3 + $0x30] sm:$0xff] %vm342_vm0, %v284_v42  ;;  %v288_v6 = vmax.f32 %v224_v58, 0.0  ;;  %v289_v7 = vmax.f32 %v225_v59, 0.0  ;;  %v228_v8 = vadd.f32 %v603_v3, %v160_v60  ;;  %v229_v9 = vadd.f32 %v603_v3, %v161_v61 }
  0x11   :  { %350 = vst.msk [vmem:[%s1085_s3 + $0x38] sm:$0xff] %vm342_vm0, %v285_v43  ;;  %v290_v11 = vmax.f32 %v226_v2, 0.0  ;;  %v291_v12 = vmax.f32 %v227_v4, 0.0  ;;  %v445_v13 = vunpack.c.l.bf16 %v546_v62  ;;  %v446_v14 = vunpack.c.h.bf16 %v546_v62 }
  0x12   :  { %351 = vst.msk [vmem:[%s1085_s3 + $0x40] sm:$0xff] %vm342_vm0, %v286_v63  ;;  %v292_v16 = vmax.f32 %v228_v8, 0.0  ;;  %v293_v17 = vmax.f32 %v229_v9, 0.0  ;;  %v449_v18 = vunpack.c.l.bf16 %v547_v5  ;;  %v450_v19 = vunpack.c.h.bf16 %v547_v5 }
  0x13   :  { %352 = vst.msk [vmem:[%s1085_s3 + $0x48] sm:$0xff] %vm342_vm0, %v287_v0  ;;  %v162_v20 = vmul.f32 %v598_v1, %v445_v13  ;;  %v163_v21 = vmul.f32 %v598_v1, %v446_v14  ;;  %v453_v22 = vunpack.c.l.bf16 %v548_v10  ;;  %v454_v23 = vunpack.c.h.bf16 %v548_v10  ;;  %v554_v10 = vld [vmem:[%s1082_s0 + $0x80] sm:$0xff]  }
  0x14   :  { %353 = vst.msk [vmem:[%s1085_s3 + $0x50] sm:$0xff] %vm342_vm0, %v288_v6  ;;  %v164_v24 = vmul.f32 %v598_v1, %v449_v18  ;;  %v165_v25 = vmul.f32 %v598_v1, %v450_v19  ;;  %v457_v26 = vunpack.c.l.bf16 %v549_v15  ;;  %v458_v27 = vunpack.c.h.bf16 %v549_v15  ;;  %v555_v15 = vld [vmem:[%s1082_s0 + $0x88] sm:$0xff]  }
  0x15   :  { %354 = vst.msk [vmem:[%s1085_s3 + $0x58] sm:$0xff] %vm342_vm0, %v289_v7  ;;  %v230_v28 = vadd.f32 %v603_v3, %v162_v20  ;;  %v231_v29 = vadd.f32 %v603_v3, %v163_v21  ;;  %v166_v30 = vmul.f32 %v598_v1, %v453_v22  ;;  %v167_v31 = vmul.f32 %v598_v1, %v454_v23  ;;  %v556_v20 = vld [vmem:[%s1082_s0 + $0x90] sm:$0xff]  }
  0x16   :  { %355 = vst.msk [vmem:[%s1085_s3 + $0x60] sm:$0xff] %vm342_vm0, %v290_v11  ;;  %v232_v32 = vadd.f32 %v603_v3, %v164_v24  ;;  %v233_v33 = vadd.f32 %v603_v3, %v165_v25  ;;  %v168_v34 = vmul.f32 %v598_v1, %v457_v26  ;;  %v169_v35 = vmul.f32 %v598_v1, %v458_v27  ;;  %v557_v25 = vld [vmem:[%s1082_s0 + $0x98] sm:$0xff]  }
  0x17   :  { %356 = vst.msk [vmem:[%s1085_s3 + $0x68] sm:$0xff] %vm342_vm0, %v291_v12  ;;  %v294_v37 = vmax.f32 %v230_v28, 0.0  ;;  %v295_v38 = vmax.f32 %v231_v29, 0.0  ;;  %v234_v39 = vadd.f32 %v603_v3, %v166_v30  ;;  %v235_v40 = vadd.f32 %v603_v3, %v167_v31 }
  0x18   :  { %357 = vst.msk [vmem:[%s1085_s3 + $0x70] sm:$0xff] %vm342_vm0, %v292_v16  ;;  %v296_v42 = vmax.f32 %v232_v32, 0.0  ;;  %v297_v43 = vmax.f32 %v233_v33, 0.0  ;;  %v236_v44 = vadd.f32 %v603_v3, %v168_v34  ;;  %v237_v45 = vadd.f32 %v603_v3, %v169_v35 }
  0x19   :  { %358 = vst.msk [vmem:[%s1085_s3 + $0x78] sm:$0xff] %vm342_vm0, %v293_v17  ;;  %v298_v47 = vmax.f32 %v234_v39, 0.0  ;;  %v299_v48 = vmax.f32 %v235_v40, 0.0  ;;  %v461_v49 = vunpack.c.l.bf16 %v550_v36  ;;  %v462_v50 = vunpack.c.h.bf16 %v550_v36 }
  0x1a   :  { %359 = vst.msk [vmem:[%s1085_s3 + $0x80] sm:$0xff] %vm342_vm0, %v294_v37  ;;  %v300_v52 = vmax.f32 %v236_v44, 0.0  ;;  %v301_v53 = vmax.f32 %v237_v45, 0.0  ;;  %v465_v54 = vunpack.c.l.bf16 %v551_v41  ;;  %v466_v55 = vunpack.c.h.bf16 %v551_v41 }
  0x1b   :  { %360 = vst.msk [vmem:[%s1085_s3 + $0x88] sm:$0xff] %vm342_vm0, %v295_v38  ;;  %v170_v56 = vmul.f32 %v598_v1, %v461_v49  ;;  %v171_v57 = vmul.f32 %v598_v1, %v462_v50  ;;  %v469_v58 = vunpack.c.l.bf16 %v552_v46  ;;  %v470_v59 = vunpack.c.h.bf16 %v552_v46  ;;  %v558_v46 = vld [vmem:[%s1082_s0 + $0xa0] sm:$0xff]  }
  0x1c   :  { %361 = vst.msk [vmem:[%s1085_s3 + $0x90] sm:$0xff] %vm342_vm0, %v296_v42  ;;  %v172_v60 = vmul.f32 %v598_v1, %v465_v54  ;;  %v173_v61 = vmul.f32 %v598_v1, %v466_v55  ;;  %v473_v62 = vunpack.c.l.bf16 %v553_v51  ;;  %v474_v63 = vunpack.c.h.bf16 %v553_v51  ;;  %v559_v51 = vld [vmem:[%s1082_s0 + $0xa8] sm:$0xff]  }
  0x1d   :  { %362 = vst.msk [vmem:[%s1085_s3 + $0x98] sm:$0xff] %vm342_vm0, %v297_v43  ;;  %v238_v0 = vadd.f32 %v603_v3, %v170_v56  ;;  %v239_v2 = vadd.f32 %v603_v3, %v171_v57  ;;  %v174_v4 = vmul.f32 %v598_v1, %v469_v58  ;;  %v175_v5 = vmul.f32 %v598_v1, %v470_v59  ;;  %v560_v56 = vld [vmem:[%s1082_s0 + $0xb0] sm:$0xff]  }
  0x1e   :  { %363 = vst.msk [vmem:[%s1085_s3 + $0xa0] sm:$0xff] %vm342_vm0, %v298_v47  ;;  %v240_v6 = vadd.f32 %v603_v3, %v172_v60  ;;  %v241_v7 = vadd.f32 %v603_v3, %v173_v61  ;;  %v176_v8 = vmul.f32 %v598_v1, %v473_v62  ;;  %v177_v9 = vmul.f32 %v598_v1, %v474_v63  ;;  %v561_v61 = vld [vmem:[%s1082_s0 + $0xb8] sm:$0xff]  }
  0x1f   :  { %364 = vst.msk [vmem:[%s1085_s3 + $0xa8] sm:$0xff] %vm342_vm0, %v299_v48  ;;  %v302_v11 = vmax.f32 %v238_v0, 0.0  ;;  %v303_v12 = vmax.f32 %v239_v2, 0.0  ;;  %v242_v13 = vadd.f32 %v603_v3, %v174_v4  ;;  %v243_v14 = vadd.f32 %v603_v3, %v175_v5 }
  0x20   :  { %365 = vst.msk [vmem:[%s1085_s3 + $0xb0] sm:$0xff] %vm342_vm0, %v300_v52  ;;  %v304_v16 = vmax.f32 %v240_v6, 0.0  ;;  %v305_v17 = vmax.f32 %v241_v7, 0.0  ;;  %v244_v18 = vadd.f32 %v603_v3, %v176_v8  ;;  %v245_v19 = vadd.f32 %v603_v3, %v177_v9 }
  0x21   :  { %366 = vst.msk [vmem:[%s1085_s3 + $0xb8] sm:$0xff] %vm342_vm0, %v301_v53  ;;  %v306_v21 = vmax.f32 %v242_v13, 0.0  ;;  %v307_v22 = vmax.f32 %v243_v14, 0.0  ;;  %v477_v23 = vunpack.c.l.bf16 %v554_v10  ;;  %v478_v24 = vunpack.c.h.bf16 %v554_v10 }
  0x22   :  { %367 = vst.msk [vmem:[%s1085_s3 + $0xc0] sm:$0xff] %vm342_vm0, %v302_v11  ;;  %v308_v26 = vmax.f32 %v244_v18, 0.0  ;;  %v309_v27 = vmax.f32 %v245_v19, 0.0  ;;  %v481_v28 = vunpack.c.l.bf16 %v555_v15  ;;  %v482_v29 = vunpack.c.h.bf16 %v555_v15 }
  0x23   :  { %368 = vst.msk [vmem:[%s1085_s3 + $0xc8] sm:$0xff] %vm342_vm0, %v303_v12  ;;  %v178_v30 = vmul.f32 %v598_v1, %v477_v23  ;;  %v179_v31 = vmul.f32 %v598_v1, %v478_v24  ;;  %v485_v32 = vunpack.c.l.bf16 %v556_v20  ;;  %v486_v33 = vunpack.c.h.bf16 %v556_v20  ;;  %v562_v20 = vld [vmem:[%s1082_s0 + $0xc0] sm:$0xff]  }
  0x24   :  { %369 = vst.msk [vmem:[%s1085_s3 + $0xd0] sm:$0xff] %vm342_vm0, %v304_v16  ;;  %v180_v34 = vmul.f32 %v598_v1, %v481_v28  ;;  %v181_v35 = vmul.f32 %v598_v1, %v482_v29  ;;  %v489_v36 = vunpack.c.l.bf16 %v557_v25  ;;  %v490_v37 = vunpack.c.h.bf16 %v557_v25  ;;  %v563_v25 = vld [vmem:[%s1082_s0 + $0xc8] sm:$0xff]  }
  0x25   :  { %370 = vst.msk [vmem:[%s1085_s3 + $0xd8] sm:$0xff] %vm342_vm0, %v305_v17  ;;  %v246_v38 = vadd.f32 %v603_v3, %v178_v30  ;;  %v247_v39 = vadd.f32 %v603_v3, %v179_v31  ;;  %v182_v40 = vmul.f32 %v598_v1, %v485_v32  ;;  %v183_v41 = vmul.f32 %v598_v1, %v486_v33  ;;  %v564_v30 = vld [vmem:[%s1082_s0 + $0xd0] sm:$0xff]  }
  0x26   :  { %371 = vst.msk [vmem:[%s1085_s3 + $0xe0] sm:$0xff] %vm342_vm0, %v306_v21  ;;  %v248_v42 = vadd.f32 %v603_v3, %v180_v34  ;;  %v249_v43 = vadd.f32 %v603_v3, %v181_v35  ;;  %v184_v44 = vmul.f32 %v598_v1, %v489_v36  ;;  %v185_v45 = vmul.f32 %v598_v1, %v490_v37  ;;  %v565_v35 = vld [vmem:[%s1082_s0 + $0xd8] sm:$0xff]  }
  0x27   :  { %372 = vst.msk [vmem:[%s1085_s3 + $0xe8] sm:$0xff] %vm342_vm0, %v307_v22  ;;  %v310_v47 = vmax.f32 %v246_v38, 0.0  ;;  %v311_v48 = vmax.f32 %v247_v39, 0.0  ;;  %v250_v49 = vadd.f32 %v603_v3, %v182_v40  ;;  %v251_v50 = vadd.f32 %v603_v3, %v183_v41 }
  0x28   :  { %373 = vst.msk [vmem:[%s1085_s3 + $0xf0] sm:$0xff] %vm342_vm0, %v308_v26  ;;  %v312_v52 = vmax.f32 %v248_v42, 0.0  ;;  %v313_v53 = vmax.f32 %v249_v43, 0.0  ;;  %v252_v54 = vadd.f32 %v603_v3, %v184_v44  ;;  %v253_v55 = vadd.f32 %v603_v3, %v185_v45 }
  0x29   :  { %374 = vst.msk [vmem:[%s1085_s3 + $0xf8] sm:$0xff] %vm342_vm0, %v309_v27  ;;  %v314_v57 = vmax.f32 %v250_v49, 0.0  ;;  %v315_v58 = vmax.f32 %v251_v50, 0.0  ;;  %v493_v59 = vunpack.c.l.bf16 %v558_v46  ;;  %v494_v60 = vunpack.c.h.bf16 %v558_v46 }
  0x2a   :  { %375 = vst.msk [vmem:[%s1085_s3 + $0x100] sm:$0xff] %vm342_vm0, %v310_v47  ;;  %v316_v62 = vmax.f32 %v252_v54, 0.0  ;;  %v317_v63 = vmax.f32 %v253_v55, 0.0  ;;  %v497_v0 = vunpack.c.l.bf16 %v559_v51  ;;  %v498_v2 = vunpack.c.h.bf16 %v559_v51 }
  0x2b   :  { %376 = vst.msk [vmem:[%s1085_s3 + $0x108] sm:$0xff] %vm342_vm0, %v311_v48  ;;  %v186_v4 = vmul.f32 %v598_v1, %v493_v59  ;;  %v187_v5 = vmul.f32 %v598_v1, %v494_v60  ;;  %v501_v6 = vunpack.c.l.bf16 %v560_v56  ;;  %v502_v7 = vunpack.c.h.bf16 %v560_v56  ;;  %v566_v56 = vld [vmem:[%s1082_s0 + $0xe0] sm:$0xff]  }
  0x2c   :  { %377 = vst.msk [vmem:[%s1085_s3 + $0x110] sm:$0xff] %vm342_vm0, %v312_v52  ;;  %v188_v8 = vmul.f32 %v598_v1, %v497_v0  ;;  %v189_v9 = vmul.f32 %v598_v1, %v498_v2  ;;  %v505_v10 = vunpack.c.l.bf16 %v561_v61  ;;  %v506_v11 = vunpack.c.h.bf16 %v561_v61  ;;  %v567_v61 = vld [vmem:[%s1082_s0 + $0xe8] sm:$0xff]  }
  0x2d   :  { %378 = vst.msk [vmem:[%s1085_s3 + $0x118] sm:$0xff] %vm342_vm0, %v313_v53  ;;  %v254_v12 = vadd.f32 %v603_v3, %v186_v4  ;;  %v255_v13 = vadd.f32 %v603_v3, %v187_v5  ;;  %v190_v14 = vmul.f32 %v598_v1, %v501_v6  ;;  %v191_v15 = vmul.f32 %v598_v1, %v502_v7  ;;  %v568_v4 = vld [vmem:[%s1082_s0 + $0xf0] sm:$0xff]  }
  0x2e   :  { %379 = vst.msk [vmem:[%s1085_s3 + $0x120] sm:$0xff] %vm342_vm0, %v314_v57  ;;  %v256_v16 = vadd.f32 %v603_v3, %v188_v8  ;;  %v257_v17 = vadd.f32 %v603_v3, %v189_v9  ;;  %v192_v18 = vmul.f32 %v598_v1, %v505_v10  ;;  %v193_v19 = vmul.f32 %v598_v1, %v506_v11  ;;  %v569_v9 = vld [vmem:[%s1082_s0 + $0xf8] sm:$0xff]  }
  0x2f   :  { %380 = vst.msk [vmem:[%s1085_s3 + $0x128] sm:$0xff] %vm342_vm0, %v315_v58  ;;  %v318_v21 = vmax.f32 %v254_v12, 0.0  ;;  %v319_v22 = vmax.f32 %v255_v13, 0.0  ;;  %v258_v23 = vadd.f32 %v603_v3, %v190_v14  ;;  %v259_v24 = vadd.f32 %v603_v3, %v191_v15 }
  0x30   :  { %381 = vst.msk [vmem:[%s1085_s3 + $0x130] sm:$0xff] %vm342_vm0, %v316_v62  ;;  %v320_v26 = vmax.f32 %v256_v16, 0.0  ;;  %v321_v27 = vmax.f32 %v257_v17, 0.0  ;;  %v260_v28 = vadd.f32 %v603_v3, %v192_v18  ;;  %v261_v29 = vadd.f32 %v603_v3, %v193_v19 }
  0x31   :  { %382 = vst.msk [vmem:[%s1085_s3 + $0x138] sm:$0xff] %vm342_vm0, %v317_v63  ;;  %v322_v31 = vmax.f32 %v258_v23, 0.0  ;;  %v323_v32 = vmax.f32 %v259_v24, 0.0  ;;  %v509_v33 = vunpack.c.l.bf16 %v562_v20  ;;  %v510_v34 = vunpack.c.h.bf16 %v562_v20 }
  0x32   :  { %383 = vst.msk [vmem:[%s1085_s3 + $0x140] sm:$0xff] %vm342_vm0, %v318_v21  ;;  %v324_v36 = vmax.f32 %v260_v28, 0.0  ;;  %v325_v37 = vmax.f32 %v261_v29, 0.0  ;;  %v513_v38 = vunpack.c.l.bf16 %v563_v25  ;;  %v514_v39 = vunpack.c.h.bf16 %v563_v25 }
  0x33   :  { %384 = vst.msk [vmem:[%s1085_s3 + $0x148] sm:$0xff] %vm342_vm0, %v319_v22  ;;  %v194_v40 = vmul.f32 %v598_v1, %v509_v33  ;;  %v195_v41 = vmul.f32 %v598_v1, %v510_v34  ;;  %v517_v42 = vunpack.c.l.bf16 %v564_v30  ;;  %v518_v43 = vunpack.c.h.bf16 %v564_v30 }
  0x34   :  { %385 = vst.msk [vmem:[%s1085_s3 + $0x150] sm:$0xff] %vm342_vm0, %v320_v26  ;;  %v196_v44 = vmul.f32 %v598_v1, %v513_v38  ;;  %v197_v45 = vmul.f32 %v598_v1, %v514_v39  ;;  %v521_v46 = vunpack.c.l.bf16 %v565_v35  ;;  %v522_v47 = vunpack.c.h.bf16 %v565_v35 }
  0x35   :  { %386 = vst.msk [vmem:[%s1085_s3 + $0x158] sm:$0xff] %vm342_vm0, %v321_v27  ;;  %v262_v48 = vadd.f32 %v603_v3, %v194_v40  ;;  %v263_v49 = vadd.f32 %v603_v3, %v195_v41  ;;  %v198_v50 = vmul.f32 %v598_v1, %v517_v42  ;;  %v199_v51 = vmul.f32 %v598_v1, %v518_v43 }
  0x36   :  { %387 = vst.msk [vmem:[%s1085_s3 + $0x160] sm:$0xff] %vm342_vm0, %v322_v31  ;;  %v264_v52 = vadd.f32 %v603_v3, %v196_v44  ;;  %v265_v53 = vadd.f32 %v603_v3, %v197_v45  ;;  %v200_v54 = vmul.f32 %v598_v1, %v521_v46  ;;  %v201_v55 = vmul.f32 %v598_v1, %v522_v47 }
  0x37   :  { %388 = vst.msk [vmem:[%s1085_s3 + $0x168] sm:$0xff] %vm342_vm0, %v323_v32  ;;  %v326_v57 = vmax.f32 %v262_v48, 0.0  ;;  %v327_v58 = vmax.f32 %v263_v49, 0.0  ;;  %v266_v59 = vadd.f32 %v603_v3, %v198_v50  ;;  %v267_v60 = vadd.f32 %v603_v3, %v199_v51 }
  0x38   :  { %389 = vst.msk [vmem:[%s1085_s3 + $0x170] sm:$0xff] %vm342_vm0, %v324_v36  ;;  %v328_v62 = vmax.f32 %v264_v52, 0.0  ;;  %v329_v63 = vmax.f32 %v265_v53, 0.0  ;;  %v268_v0 = vadd.f32 %v603_v3, %v200_v54  ;;  %v269_v2 = vadd.f32 %v603_v3, %v201_v55 }
  0x39   :  { %390 = vst.msk [vmem:[%s1085_s3 + $0x178] sm:$0xff] %vm342_vm0, %v325_v37  ;;  %v330_v5 = vmax.f32 %v266_v59, 0.0  ;;  %v331_v6 = vmax.f32 %v267_v60, 0.0  ;;  %v525_v7 = vunpack.c.l.bf16 %v566_v56  ;;  %v526_v8 = vunpack.c.h.bf16 %v566_v56 }
  0x3a   :  { %391 = vst.msk [vmem:[%s1085_s3 + $0x180] sm:$0xff] %vm342_vm0, %v326_v57  ;;  %v332_v10 = vmax.f32 %v268_v0, 0.0  ;;  %v333_v11 = vmax.f32 %v269_v2, 0.0  ;;  %v529_v12 = vunpack.c.l.bf16 %v567_v61  ;;  %v530_v13 = vunpack.c.h.bf16 %v567_v61 }
  0x3b   :  { %392 = vst.msk [vmem:[%s1085_s3 + $0x188] sm:$0xff] %vm342_vm0, %v327_v58  ;;  %v202_v14 = vmul.f32 %v598_v1, %v525_v7  ;;  %v203_v15 = vmul.f32 %v598_v1, %v526_v8  ;;  %v533_v16 = vunpack.c.l.bf16 %v568_v4  ;;  %v534_v17 = vunpack.c.h.bf16 %v568_v4 }
  0x3c   :  { %393 = vst.msk [vmem:[%s1085_s3 + $0x190] sm:$0xff] %vm342_vm0, %v328_v62  ;;  %v204_v18 = vmul.f32 %v598_v1, %v529_v12  ;;  %v205_v19 = vmul.f32 %v598_v1, %v530_v13  ;;  %v537_v20 = vunpack.c.l.bf16 %v569_v9  ;;  %v538_v21 = vunpack.c.h.bf16 %v569_v9 }
  0x3d   :  { %394 = vst.msk [vmem:[%s1085_s3 + $0x198] sm:$0xff] %vm342_vm0, %v329_v63  ;;  %v270_v22 = vadd.f32 %v603_v3, %v202_v14  ;;  %v271_v23 = vadd.f32 %v603_v3, %v203_v15  ;;  %v206_v24 = vmul.f32 %v598_v1, %v533_v16  ;;  %v207_v25 = vmul.f32 %v598_v1, %v534_v17 }
  0x3e   :  { %395 = vst.msk [vmem:[%s1085_s3 + $0x1a0] sm:$0xff] %vm342_vm0, %v330_v5  ;;  %v272_v26 = vadd.f32 %v603_v3, %v204_v18  ;;  %v273_v27 = vadd.f32 %v603_v3, %v205_v19  ;;  %v208_v28 = vmul.f32 %v598_v1, %v537_v20  ;;  %v209_v29 = vmul.f32 %v598_v1, %v538_v21 }
  0x3f   :  { %396 = vst.msk [vmem:[%s1085_s3 + $0x1a8] sm:$0xff] %vm342_vm0, %v331_v6  ;;  %v334_v30 = vmax.f32 %v270_v22, 0.0  ;;  %v335_v31 = vmax.f32 %v271_v23, 0.0  ;;  %v274_v32 = vadd.f32 %v603_v3, %v206_v24  ;;  %v275_v33 = vadd.f32 %v603_v3, %v207_v25 }
  0x40   :  { %397 = vst.msk [vmem:[%s1085_s3 + $0x1b0] sm:$0xff] %vm342_vm0, %v332_v10  ;;  %v336_v34 = vmax.f32 %v272_v26, 0.0  ;;  %v337_v35 = vmax.f32 %v273_v27, 0.0  ;;  %v276_v1 = vadd.f32 %v603_v3, %v208_v28  ;;  %v277_v36 = vadd.f32 %v603_v3, %v209_v29 }
  0x41   :  { %398 = vst.msk [vmem:[%s1085_s3 + $0x1b8] sm:$0xff] %vm342_vm0, %v333_v11  ;;  %v338_v37 = vmax.f32 %v274_v32, 0.0  ;;  %v339_v38 = vmax.f32 %v275_v33, 0.0 }
  0x42   :  { %399 = vst.msk [vmem:[%s1085_s3 + $0x1c0] sm:$0xff] %vm342_vm0, %v334_v30  ;;  %v340_v39 = vmax.f32 %v276_v1, 0.0  ;;  %v341_v3 = vmax.f32 %v277_v36, 0.0 }
  0x43   :  { %400 = vst.msk [vmem:[%s1085_s3 + $0x1c8] sm:$0xff] %vm342_vm0, %v335_v31 }
  0x44   :  { %401 = vst.msk [vmem:[%s1085_s3 + $0x1d0] sm:$0xff] %vm342_vm0, %v336_v34 }
  0x45   :  { %402 = vst.msk [vmem:[%s1085_s3 + $0x1d8] sm:$0xff] %vm342_vm0, %v337_v35 }
  0x46   :  { %403 = vst.msk [vmem:[%s1085_s3 + $0x1e0] sm:$0xff] %vm342_vm0, %v338_v37 }
  0x47   :  { %404 = vst.msk [vmem:[%s1085_s3 + $0x1e8] sm:$0xff] %vm342_vm0, %v339_v38 }
  0x48   :  { %405 = vst.msk [vmem:[%s1085_s3 + $0x1f0] sm:$0xff] %vm342_vm0, %v340_v39 }
  0x49   :  { %406 = vst.msk [vmem:[%s1085_s3 + $0x1f8] sm:$0xff] %vm342_vm0, %v341_v3 }

// kernel: vgg_block_pallas.3
= control target key start
LH: loop header
LB: loop body
LE: loop exit
PB: predicated region body
PF: predicated region fallthrough
CT: control target
= control target key end

     0   :  { %s2993_s21 = smov 0   ;;  %s2995_s22 = smov 0   ;;  %s4073_s0 = inlined_call_operand.vmem [shape: bf16[2,16,16,4], index: 0, kind: input, shape index: {}]   ;;  %s4074_s1 = inlined_call_operand.vmem [shape: bf16[9,4,8], index: 1, kind: input, shape index: {}]   ;;  %s4075_s2 = inlined_call_operand.vmem [shape: f32[1,8], index: 2, kind: input, shape index: {}]   ;;  %s4076_s3 = inlined_call_operand.vmem [shape: f32[1,4], index: 3, kind: input, shape index: {}]   ;;  %s4077_s4 = inlined_call_operand.vmem [shape: f32[1,4], index: 4, kind: input, shape index: {}]   ;;  %s4078_s5 = inlined_call_operand.vmem [shape: bf16[2,16,16,8], index: 5, kind: output, shape index: {0}]   ;;  %s4079_s6 = inlined_call_operand.vmem [shape: f32[2,2,8], index: 6, kind: output, shape index: {1}]  }
   0x1   :  { %s2997_s23 = smov 0  }
   0x2 LB: > { %s29_s3 = sadd.s32 1, %s2951_s22  ;;  %p2651_p0 = scmp.ge.s32.totalorder %s2955_s23, 1  ;;  %s2955_s23 = sphi %s2997_s23, %s17_s23   ;;  %s2951_s22 = sphi %s2995_s22, %s4181_s22   ;;  %s2947_s21 = sphi %s2993_s21, %s4180_s21  }
   0x3   : > { %p31_p1 = scmp.ge.s32.totalorder %s29_s3, 2  ;;  %p229_p2 = scmp.lt.s32.totalorder %s2955_s23, 3 }
   0x5   : > { %s4183_s3 = smov (%p31_p1, %s29_s3), 0  ;;  %p230_p3 = pnand %p2651_p0, %p229_p2 }
   0x7   : > { %233 = sbr.rel (%p230_p3) target bundleno = 784 (0x310), region = 40 }
   0xc   : > { %v2659_v0 = vld [vmem:[%s4074_s1 + $0x2] sm:$0x3]  ;;  %vm961_vm0 = vcmask 1041408   ;;  %p268_p4 = scmp.lt.s32.totalorder %s2947_s21, 1  ;;  %v2692_v2 = vld [vmem:[%s4074_s1 + $0x4] sm:$0x3] }
   0xd   : > { %v963_v1 = vsel %vm961_vm0, %v2659_v0, 0  ;;  %v2709_v3 = vld [vmem:[%s4074_s1 + $0x6] sm:$0x3]  ;;  %v1310_v4 = vsel %vm961_vm0, %v2692_v2, 0  ;;  %v716_v6 = vld [vmem:[%s4074_s1] sm:$0x3] }
   0xe   : > { %2903 = vmatpush.bf16.msra.mxu1 %v963_v1  ;;  %2904 = vmatpush.bf16.msra.mxu2 %v963_v1  ;;  %s4185_s21 = smov (!%p268_p4, %s2947_s21), 1  ;;  %v1439_v5 = vsel %vm961_vm0, %v2709_v3, 0  ;;  %v2726_v7 = vld [vmem:[%s4074_s1 + $0x8] sm:$0x3]  ;;  %v1087_v8 = vsel %vm961_vm0, %v716_v6, 0  ;;  %vm677_vm1 = vcmask 1040384  }
   0xf   : > { %2905 = vmatpush.bf16.msra.mxu3 %v963_v1  ;;  %972 = vmatpush.bf16.msra.mxu0 %v963_v1  ;;  %s2813_s9 = sshll.u32 %s4185_s21, 7  ;;  %v1579_v9 = vsel %vm961_vm0, %v2726_v7, 0  ;;  %vm678_vm2 = vsmask.f32 256  ;;  %vm717_vm3 = vsmask.f32 7424 }
  0x10   : > { %s3039_s12 = scalar_lea.vmem %s4073_s0, %s2813_s9  ;;  %vm3059_vm4 = vmand %vm677_vm1, %vm678_vm2  ;;  %v4106_v60 = vmov 0  ;;  %vm912_vm5 = vcmask 31744   ;;  %vm1210_vm6 = vcmask 1046528   ;;  %s3803_s27 = scalar_lea.vmem %s4078_s5, %s2813_s9  ;;  %vm2490_vm7 = vcmask 60416  }
  0x11   : > { %v2889_v10 = vld [vmem:[%s3039_s12 + $0x18] sm:$0xff]   ;;  %v2816_v17 = vld [vmem:[%s3039_s12] sm:$0xff]   ;;  %v4107_v60 = vsel %vm3059_vm4, 4294967295, %v4106_v60  ;;  %vm2282_vm8 = vcmask 64512   ;;  %s2656_s28 = sshll.u32 %s4185_s21, 1  ;;  %vm2279_vm9 = vcmask 58368  }
  0x12   : > { %1319 = vmatpush.bf16.msrb.mxu2 %v1310_v4  ;;  %1096 = vmatpush.bf16.msrb.mxu1 %v1087_v8  ;;  %v2893_v11 = vld [vmem:[%s3039_s12 + $0x38] sm:$0xff]   ;;  %v2833_v13 = vunpack.c.l.bf16 %v2889_v10  ;;  %v2834_v14 = vunpack.c.h.bf16 %v2889_v10  ;;  %v3045_v20 = vunpack.c.l.bf16 %v2816_v17  ;;  %v3047_v21 = vunpack.c.h.bf16 %v2816_v17  ;;  %v2890_v30 = vld [vmem:[%s3039_s12 + $0x20] sm:$0xff]   ;;  %4108 = vst [vmem:[#allocation2_spill] sm:$0xff] %v4107_v60  ;;  %s4028_s7 = scalar_lea.vmem %s4079_s6, %s2656_s28 }
  0x13   : > { %1448 = vmatpush.bf16.msrb.mxu3 %v1439_v5  ;;  %1588 = vmatpush.bf16.msrb.mxu0 %v1579_v9  ;;  %v2897_v12 = vld [vmem:[%s3039_s12 + $0x58] sm:$0xff]   ;;  %v2849_v15 = vunpack.c.l.bf16 %v2893_v11  ;;  %v2850_v16 = vunpack.c.h.bf16 %v2893_v11  ;;  %v3053_v35 = vld [vmem:[%s3039_s12 + $0x40] sm:$0xff]   ;;  %v2837_v42 = vunpack.c.l.bf16 %v2890_v30  ;;  %v2838_v43 = vunpack.c.h.bf16 %v2890_v30 }
  0x14   : > { %v2865_v18 = vunpack.c.l.bf16 %v2897_v12  ;;  %v2866_v19 = vunpack.c.h.bf16 %v2897_v12  ;;  %v397_v22 = vpack.c.bf16 %v2833_v13, %v2833_v13  ;;  %v398_v23 = vpack.c.bf16 %v2834_v14, %v2834_v14 }
  0x15   : > { %v405_v24 = vpack.c.bf16 %v2849_v15, %v2849_v15  ;;  %v406_v25 = vpack.c.bf16 %v2850_v16, %v2850_v16  ;;  %v304_v28 = vmul.f32 0.0, %v3045_v20  ;;  %v305_v29 = vmul.f32 0.0, %v3047_v21 }
  0x16   : > { %v413_v26 = vpack.c.bf16 %v2865_v18, %v2865_v18  ;;  %v414_v27 = vpack.c.bf16 %v2866_v19, %v2866_v19  ;;  %v469_v31 = vunpack.c.l.b16 %v397_v22  ;;  %v470_v32 = vunpack.c.l.b16 %v398_v23 }
  0x17   : > { %v477_v33 = vunpack.c.l.b16 %v405_v24  ;;  %v478_v34 = vunpack.c.l.b16 %v406_v25  ;;  %v389_v38 = vpack.c.bf16 %v304_v28, %v304_v28  ;;  %v390_v39 = vpack.c.bf16 %v305_v29, %v305_v29 }
  0x18   : > { %v485_v36 = vunpack.c.l.b16 %v413_v26  ;;  %v486_v37 = vunpack.c.l.b16 %v414_v27  ;;  %v501_v40 = vpack.c.b16 %v470_v32, %v469_v31  ;;  %v2853_v47 = vunpack.c.l.bf16 %v3053_v35 }
  0x19   : > { %v505_v41 = vpack.c.b16 %v478_v34, %v477_v33  ;;  %v461_v45 = vunpack.c.l.b16 %v389_v38  ;;  %v462_v46 = vunpack.c.l.b16 %v390_v39  ;;  %v399_v55 = vpack.c.bf16 %v2837_v42, %v2837_v42  ;;  %v2898_v39 = vld [vmem:[%s3039_s12 + $0x60] sm:$0xff]  }
  0x1a   : > { %v509_v44 = vpack.c.b16 %v486_v37, %v485_v36  ;;  %v544_v48 = vshrl.u32 %v501_v40, 16  ;;  %v547_v49 = vshll.u32 %v501_v40, 16  ;;  %v400_v58 = vpack.c.bf16 %v2838_v43, %v2838_v43 }
  0x1b   : > { %v572_v50 = vshrl.u32 %v505_v41, 16  ;;  %v575_v51 = vshll.u32 %v505_v41, 16  ;;  %v497_v54 = vpack.c.b16 %v462_v46, %v461_v45  ;;  %v2854_v59 = vunpack.c.h.bf16 %v3053_v35 }
  0x1c   : > { %v600_v52 = vshrl.u32 %v509_v44, 16  ;;  %v603_v53 = vshll.u32 %v509_v44, 16  ;;  %v546_v56 = vrot.slane %v544_v48, 7  ;;  %v471_v0 = vunpack.c.l.b16 %v399_v55  ;;  %v2891_v48 = vld [vmem:[%s3039_s12 + $0x28] sm:$0xff]  }
  0x1d   : > { %v574_v57 = vrot.slane %v572_v50, 7  ;;  %v516_v62 = vshrl.u32 %v497_v54, 16  ;;  %v519_v63 = vshll.u32 %v497_v54, 16  ;;  %v472_v29 = vunpack.c.l.b16 %v400_v58 }
  0x1e   : > { %v602_v61 = vrot.slane %v600_v52, 7  ;;  %v549_v1 = vor.u32 %v547_v49, %v546_v56  ;;  %v3065_v2 = vsel %vm3059_vm4, %v546_v56, 0  ;;  %v407_v30 = vpack.c.bf16 %v2853_v47, %v2853_v47 }
  0x1f   : > { %v577_v3 = vor.u32 %v575_v51, %v574_v57  ;;  %v3069_v4 = vsel %vm3059_vm4, %v574_v57, 0  ;;  %v774_v5 = vshll.u32 %v3065_v2, 16  ;;  %v518_v12 = vrot.slane %v516_v62, 7 }
  0x20   : > { %v822_v6 = vshll.u32 %v3069_v4, 16  ;;  %v605_v7 = vor.u32 %v603_v53, %v602_v61  ;;  %v3075_v8 = vsel %vm3059_vm4, %v602_v61, 0  ;;  %v3079_v9 = vsel %vm3059_vm4, 0, %v549_v1 }
  0x21   : > { %v3083_v10 = vsel %vm3059_vm4, 0, %v577_v3  ;;  %v870_v11 = vshll.u32 %v3075_v8, 16  ;;  %v767_v13 = vshrl.u32 %v3079_v9, 16  ;;  %v769_v14 = vshll.u32 %v3079_v9, 16 }
  0x22   : > { %4109 = vst [vmem:[#allocation3_spill] sm:$0xff] %v3083_v10  ;;  %v776_v15 = vrot.slane %v774_v5, 1  ;;  %v815_v16 = vshrl.u32 %v3083_v10, 16  ;;  %v817_v17 = vshll.u32 %v3083_v10, 16  ;;  %v824_v18 = vrot.slane %v822_v6, 1 }
  0x23   : > { %v3092_v19 = vsel %vm3059_vm4, 0, %v605_v7  ;;  %v872_v22 = vrot.slane %v870_v11, 1  ;;  %v771_v23 = vrot.slane %v769_v14, 1  ;;  %v521_v26 = vor.u32 %v519_v63, %v518_v12 }
  0x24   : > { %v863_v24 = vshrl.u32 %v3092_v19, 16  ;;  %v865_v25 = vshll.u32 %v3092_v19, 16  ;;  %v819_v27 = vrot.slane %v817_v17, 1  ;;  %v3098_v28 = vsel %vm3059_vm4, %v518_v12, 0 }
  0x25   : > { %v772_v31 = vor.u32 %v771_v23, %v767_v13  ;;  %v3102_v33 = vsel %vm3059_vm4, 0, %v521_v26  ;;  %v726_v34 = vshll.u32 %v3098_v28, 16  ;;  %v502_v38 = vpack.c.b16 %v472_v29, %v471_v0  ;;  %v2895_v13 = vld [vmem:[%s3039_s12 + $0x48] sm:$0xff]  }
  0x26   : > { %v867_v32 = vrot.slane %v865_v25, 1  ;;  %v820_v35 = vor.u32 %v819_v27, %v815_v16  ;;  %v719_v36 = vshrl.u32 %v3102_v33, 16  ;;  %v721_v37 = vshll.u32 %v3102_v33, 16 }
  0x27   : > { %v3109_v40 = vsel %vm717_vm3, %v772_v31, %v776_v15  ;;  %v728_v42 = vrot.slane %v726_v34, 1  ;;  %v408_v43 = vpack.c.bf16 %v2854_v59, %v2854_v59  ;;  %v551_v46 = vshrl.u32 %v502_v38, 16 }
  0x28   : > { %4110 = vst [vmem:[#allocation4_spill] sm:$0xff] %v3109_v40  ;;  %v868_v41 = vor.u32 %v867_v32, %v863_v24  ;;  %2664 = vmatmul.msk.bf16.vlgmr.msra.gmra.mxu1 %vm912_vm5, %v3109_v40  ;;  %v3114_v44 = vsel %vm717_vm3, %v820_v35, %v824_v18  ;;  %v723_v45 = vrot.slane %v721_v37, 1  ;;  %v554_v47 = vshll.u32 %v502_v38, 16 }
  0x29   : > { %4111 = vst [vmem:[#allocation5_spill] sm:$0xff] %v3114_v44  ;;  %2668 = vmatmul.msk.bf16.vlgmr.msra.gmra.mxu2 %vm912_vm5, %v3114_v44  ;;  %v479_v50 = vunpack.c.l.b16 %v407_v30  ;;  %v480_v51 = vunpack.c.l.b16 %v408_v43  ;;  %v2869_v52 = vunpack.c.l.bf16 %v2898_v39  ;;  %v553_v54 = vrot.slane %v551_v46, 7 }
  0x2a   : > { %v3120_v49 = vsel %vm717_vm3, %v868_v41, %v872_v22  ;;  %v724_v53 = vor.u32 %v723_v45, %v719_v36  ;;  %v2870_v55 = vunpack.c.h.bf16 %v2898_v39  ;;  %v391_v56 = vpack.c.bf16 %v3045_v20, %v3045_v20 }
  0x2b   : > { %2672 = vmatmul.msk.bf16.vlgmr.msra.gmra.mxu3 %vm912_vm5, %v3120_v49  ;;  %v506_v57 = vpack.c.b16 %v480_v51, %v479_v50  ;;  %v415_v58 = vpack.c.bf16 %v2869_v52, %v2869_v52  ;;  %v392_v59 = vpack.c.bf16 %v3047_v21, %v3047_v21  ;;  %v2841_v61 = vunpack.c.l.bf16 %v2891_v48 }
  0x2c   : > { %v729_v62 = vsel %vm717_vm3, %v724_v53, %v728_v42  ;;  %v556_v63 = vor.u32 %v554_v47, %v553_v54  ;;  %v3131_v0 = vsel %vm3059_vm4, %v553_v54, 0  ;;  %v416_v1 = vpack.c.bf16 %v2870_v55, %v2870_v55 }
  0x2d   : > { %2660 = vmatmul.msk.bf16.vlgmr.msra.gmra.mxu0 %vm912_vm5, %v729_v62  ;;  %v786_v3 = vshll.u32 %v3131_v0, 16  ;;  %v579_v20 = vshrl.u32 %v506_v57, 16  ;;  %v582_v5 = vshll.u32 %v506_v57, 16  ;;  %v487_v6 = vunpack.c.l.b16 %v415_v58 }
  0x2e   : > { %v3137_v7 = vsel %vm3059_vm4, 0, %v556_v63  ;;  %v488_v21 = vunpack.c.l.b16 %v416_v1  ;;  %v463_v11 = vunpack.c.l.b16 %v391_v56  ;;  %v464_v12 = vunpack.c.l.b16 %v392_v59 }
  0x2f   : > { %4112 = vst [vmem:[#allocation6_spill] sm:$0xff] %v3137_v7  ;;  %v779_v14 = vshrl.u32 %v3137_v7, 16  ;;  %v781_v15 = vshll.u32 %v3137_v7, 16  ;;  %v788_v16 = vrot.slane %v786_v3, 1  ;;  %v581_v17 = vrot.slane %v579_v20, 7 }
  0x30   : > { %v510_v18 = vpack.c.b16 %v488_v21, %v487_v6  ;;  %v498_v22 = vpack.c.b16 %v464_v12, %v463_v11  ;;  %v2842_v23 = vunpack.c.h.bf16 %v2891_v48  ;;  %v401_v24 = vpack.c.bf16 %v2841_v61, %v2841_v61 }
  0x31   : > { %v783_v25 = vrot.slane %v781_v15, 1  ;;  %v584_v26 = vor.u32 %v582_v5, %v581_v17  ;;  %v3144_v27 = vsel %vm3059_vm4, %v581_v17, 0  ;;  %v2857_v29 = vunpack.c.l.bf16 %v2895_v13  ;;  %v2899_v5 = vld [vmem:[%s3039_s12 + $0x68] sm:$0xff]  }
  0x32   : > { %v834_v30 = vshll.u32 %v3144_v27, 16  ;;  %v607_v31 = vshrl.u32 %v510_v18, 16  ;;  %v610_v32 = vshll.u32 %v510_v18, 16  ;;  %v523_v34 = vshrl.u32 %v498_v22, 16 }
  0x33   : > { %v784_v35 = vor.u32 %v783_v25, %v779_v14  ;;  %v3149_v36 = vsel %vm3059_vm4, 0, %v584_v26  ;;  %v526_v37 = vshll.u32 %v498_v22, 16  ;;  %v402_v38 = vpack.c.bf16 %v2842_v23, %v2842_v23 }
  0x34   : > { %v827_v39 = vshrl.u32 %v3149_v36, 16  ;;  %v829_v41 = vshll.u32 %v3149_v36, 16  ;;  %v836_v42 = vrot.slane %v834_v30, 1  ;;  %v609_v43 = vrot.slane %v607_v31, 7 }
  0x35   : > { %v3154_v45 = vsel %vm717_vm3, %v784_v35, %v788_v16  ;;  %v525_v46 = vrot.slane %v523_v34, 7  ;;  %v473_v47 = vunpack.c.l.b16 %v401_v24  ;;  %v474_v48 = vunpack.c.l.b16 %v402_v38 }
  0x36   : > { %4113 = vst [vmem:[#allocation7_spill] sm:$0xff] %v3154_v45  ;;  %v831_v50 = vrot.slane %v829_v41, 1  ;;  %v612_v51 = vor.u32 %v610_v32, %v609_v43  ;;  %v3158_v52 = vsel %vm3059_vm4, %v609_v43, 0  ;;  %v2858_v53 = vunpack.c.h.bf16 %v2895_v13  ;;  %v2887_v13 = vld [vmem:[%s3039_s12 + $0x8] sm:$0xff]  }
  0x37   : > { %v882_v54 = vshll.u32 %v3158_v52, 16  ;;  %v528_v55 = vor.u32 %v526_v37, %v525_v46  ;;  %v3163_v56 = vsel %vm3059_vm4, %v525_v46, 0  ;;  %v503_v57 = vpack.c.b16 %v474_v48, %v473_v47  ;;  %v2892_v48 = vld [vmem:[%s3039_s12 + $0x30] sm:$0xff]  }
  0x38   : > { %2665 = vmatmul.msk.bf16.gmra.mxu1 %vm912_vm5, %v3154_v45  ;;  %v832_v58 = vor.u32 %v831_v50, %v827_v39  ;;  %v3169_v59 = vsel %vm3059_vm4, 0, %v612_v51  ;;  %v738_v61 = vshll.u32 %v3163_v56, 16  ;;  %v409_v62 = vpack.c.bf16 %v2857_v29, %v2857_v29 }
  0x39   : > { %v875_v63 = vshrl.u32 %v3169_v59, 16  ;;  %v877_v1 = vshll.u32 %v3169_v59, 16  ;;  %v884_v3 = vrot.slane %v882_v54, 1  ;;  %v3176_v20 = vsel %vm3059_vm4, 0, %v528_v55 }
  0x3a   : > { %v3180_v6 = vsel %vm717_vm3, %v832_v58, %v836_v42  ;;  %v731_v21 = vshrl.u32 %v3176_v20, 16  ;;  %v733_v11 = vshll.u32 %v3176_v20, 16  ;;  %v740_v12 = vrot.slane %v738_v61, 1 }
  0x3b   : > { %4114 = vst [vmem:[#allocation8_spill] sm:$0xff] %v3180_v6  ;;  %2669 = vmatmul.msk.bf16.gmra.mxu2 %vm912_vm5, %v3180_v6  ;;  %v879_v14 = vrot.slane %v877_v1, 1  ;;  %v558_v15 = vshrl.u32 %v503_v57, 16  ;;  %v561_v16 = vshll.u32 %v503_v57, 16  ;;  %v410_v17 = vpack.c.bf16 %v2858_v53, %v2858_v53 }
  0x3c   : > { %v735_v18 = vrot.slane %v733_v11, 1  ;;  %v481_v22 = vunpack.c.l.b16 %v409_v62  ;;  %v2873_v23 = vunpack.c.l.bf16 %v2899_v5  ;;  %v2874_v24 = vunpack.c.h.bf16 %v2899_v5 }
  0x3d   : > { %v880_v25 = vor.u32 %v879_v14, %v875_v63  ;;  %v560_v26 = vrot.slane %v558_v15, 7  ;;  %v482_v29 = vunpack.c.l.b16 %v410_v17  ;;  %v2825_v30 = vunpack.c.l.bf16 %v2887_v13 }
  0x3e   : > { %v736_v31 = vor.u32 %v735_v18, %v731_v21  ;;  %v417_v32 = vpack.c.bf16 %v2873_v23, %v2873_v23  ;;  %v418_v34 = vpack.c.bf16 %v2874_v24, %v2874_v24  ;;  %v2826_v35 = vunpack.c.h.bf16 %v2887_v13  ;;  %v2896_v13 = vld [vmem:[%s3039_s12 + $0x50] sm:$0xff]  }
  0x3f   : > { %v3188_v37 = vsel %vm717_vm3, %v880_v25, %v884_v3  ;;  %v563_v38 = vor.u32 %v561_v16, %v560_v26  ;;  %v3192_v39 = vsel %vm3059_vm4, %v560_v26, 0  ;;  %v507_v41 = vpack.c.b16 %v482_v29, %v481_v22 }
  0x40   : > { %2673 = vmatmul.msk.bf16.gmra.mxu3 %vm912_vm5, %v3188_v37  ;;  %v3197_v42 = vsel %vm717_vm3, %v736_v31, %v740_v12  ;;  %v798_v43 = vshll.u32 %v3192_v39, 16  ;;  %v489_v46 = vunpack.c.l.b16 %v417_v32  ;;  %v490_v47 = vunpack.c.l.b16 %v418_v34 }
  0x41   : > { %2661 = vmatmul.msk.bf16.gmra.mxu0 %vm912_vm5, %v3197_v42  ;;  %v3205_v50 = vsel %vm3059_vm4, 0, %v563_v38  ;;  %v586_v51 = vshrl.u32 %v507_v41, 16  ;;  %v589_v53 = vshll.u32 %v507_v41, 16  ;;  %v393_v54 = vpack.c.bf16 %v2825_v30, %v2825_v30  ;;  %v2900_v38 = vld [vmem:[%s3039_s12 + $0x70] sm:$0xff]  }
  0x42   : > { %4115 = vst [vmem:[#allocation9_spill] sm:$0xff] %v3205_v50  ;;  %v791_v55 = vshrl.u32 %v3205_v50, 16  ;;  %v793_v57 = vshll.u32 %v3205_v50, 16  ;;  %v800_v58 = vrot.slane %v798_v43, 1  ;;  %v511_v61 = vpack.c.b16 %v490_v47, %v489_v46 }
  0x43   : > { %v588_v62 = vrot.slane %v586_v51, 7  ;;  %v394_v63 = vpack.c.bf16 %v2826_v35, %v2826_v35  ;;  %v465_v1 = vunpack.c.l.b16 %v393_v54  ;;  %v2845_v3 = vunpack.c.l.bf16 %v2892_v48 }
  0x44   : > { %v795_v5 = vrot.slane %v793_v57, 1  ;;  %v614_v21 = vshrl.u32 %v511_v61, 16  ;;  %v617_v11 = vshll.u32 %v511_v61, 16  ;;  %v2846_v12 = vunpack.c.h.bf16 %v2892_v48 }
  0x45   : > { %v591_v14 = vor.u32 %v589_v53, %v588_v62  ;;  %v3212_v15 = vsel %vm3059_vm4, %v588_v62, 0  ;;  %v466_v16 = vunpack.c.l.b16 %v394_v63  ;;  %v403_v17 = vpack.c.bf16 %v2845_v3, %v2845_v3 }
  0x46   : > { %v796_v18 = vor.u32 %v795_v5, %v791_v55  ;;  %v846_v22 = vshll.u32 %v3212_v15, 16  ;;  %v616_v23 = vrot.slane %v614_v21, 7  ;;  %v404_v24 = vpack.c.bf16 %v2846_v12, %v2846_v12 }
  0x47   : > { %v3217_v25 = vsel %vm3059_vm4, 0, %v591_v14  ;;  %v499_v26 = vpack.c.b16 %v466_v16, %v465_v1  ;;  %v475_v29 = vunpack.c.l.b16 %v403_v17  ;;  %v2861_v30 = vunpack.c.l.bf16 %v2896_v13 }
  0x48   : > { %v3220_v31 = vsel %vm717_vm3, %v796_v18, %v800_v58  ;;  %v839_v32 = vshrl.u32 %v3217_v25, 16  ;;  %v841_v34 = vshll.u32 %v3217_v25, 16  ;;  %v848_v35 = vrot.slane %v846_v22, 1 }
  0x49   : > { %4116 = vst [vmem:[#allocation10_spill] sm:$0xff] %v3220_v31  ;;  %2666 = vmatmul.msk.bf16.gmra.mxu1 %vm912_vm5, %v3220_v31  ;;  %v619_v41 = vor.u32 %v617_v11, %v616_v23  ;;  %v3229_v43 = vsel %vm3059_vm4, %v616_v23, 0  ;;  %v530_v46 = vshrl.u32 %v499_v26, 16  ;;  %v533_v47 = vshll.u32 %v499_v26, 16  ;;  %v2888_v26 = vld [vmem:[%s3039_s12 + $0x10] sm:$0xff]  }
  0x4a   : > { %v843_v48 = vrot.slane %v841_v34, 1  ;;  %v894_v51 = vshll.u32 %v3229_v43, 16  ;;  %v476_v53 = vunpack.c.l.b16 %v404_v24  ;;  %v2862_v54 = vunpack.c.h.bf16 %v2896_v13 }
  0x4b   : > { %v3234_v55 = vsel %vm3059_vm4, 0, %v619_v41  ;;  %v532_v57 = vrot.slane %v530_v46, 7  ;;  %v411_v58 = vpack.c.bf16 %v2861_v30, %v2861_v30  ;;  %v2877_v61 = vunpack.c.l.bf16 %v2900_v38 }
  0x4c   : > { %v844_v62 = vor.u32 %v843_v48, %v839_v32  ;;  %v887_v63 = vshrl.u32 %v3234_v55, 16  ;;  %v889_v1 = vshll.u32 %v3234_v55, 16  ;;  %v896_v3 = vrot.slane %v894_v51, 1 }
  0x4d   : > { %v535_v5 = vor.u32 %v533_v47, %v532_v57  ;;  %v3240_v21 = vsel %vm3059_vm4, %v532_v57, 0  ;;  %v504_v11 = vpack.c.b16 %v476_v53, %v475_v29  ;;  %v412_v12 = vpack.c.bf16 %v2862_v54, %v2862_v54 }
  0x4e   : > { %v3243_v13 = vsel %vm717_vm3, %v844_v62, %v848_v35  ;;  %v891_v14 = vrot.slane %v889_v1, 1  ;;  %v750_v16 = vshll.u32 %v3240_v21, 16  ;;  %v483_v17 = vunpack.c.l.b16 %v411_v58 }
  0x4f   : > { %2670 = vmatmul.msk.bf16.gmra.mxu2 %vm912_vm5, %v3243_v13  ;;  %v3250_v18 = vsel %vm3059_vm4, 0, %v535_v5  ;;  %v565_v22 = vshrl.u32 %v504_v11, 16  ;;  %v568_v23 = vshll.u32 %v504_v11, 16  ;;  %v484_v24 = vunpack.c.l.b16 %v412_v12 }
  0x50   : > { %v892_v29 = vor.u32 %v891_v14, %v887_v63  ;;  %v743_v30 = vshrl.u32 %v3250_v18, 16  ;;  %v745_v32 = vshll.u32 %v3250_v18, 16  ;;  %v752_v34 = vrot.slane %v750_v16, 1 }
  0x51   : > { %v567_v35 = vrot.slane %v565_v22, 7  ;;  %v508_v41 = vpack.c.b16 %v484_v24, %v483_v17  ;;  %v2878_v46 = vunpack.c.h.bf16 %v2900_v38  ;;  %v419_v47 = vpack.c.bf16 %v2877_v61, %v2877_v61 }
  0x52   : > { %v3256_v48 = vsel %vm717_vm3, %v892_v29, %v896_v3  ;;  %v747_v51 = vrot.slane %v745_v32, 1  ;;  %v2829_v53 = vunpack.c.l.bf16 %v2888_v26  ;;  %v2830_v54 = vunpack.c.h.bf16 %v2888_v26 }
  0x53   : > { %2674 = vmatmul.msk.bf16.gmra.mxu3 %vm912_vm5, %v3256_v48  ;;  %v570_v57 = vor.u32 %v568_v23, %v567_v35  ;;  %v3262_v58 = vsel %vm3059_vm4, %v567_v35, 0  ;;  %v593_v62 = vshrl.u32 %v508_v41, 16  ;;  %v596_v63 = vshll.u32 %v508_v41, 16 }
  0x54   : > { %v748_v1 = vor.u32 %v747_v51, %v743_v30  ;;  %v810_v38 = vshll.u32 %v3262_v58, 16  ;;  %v420_v61 = vpack.c.bf16 %v2878_v46, %v2878_v46  ;;  %v491_v5 = vunpack.c.l.b16 %v419_v47  ;;  %v2760_v47 = vld [vmem:[%s4074_s1 + $0xc] sm:$0x3] }
  0x55   : > { %v3267_v3 = vsel %vm3059_vm4, 0, %v570_v57  ;;  %v595_v11 = vrot.slane %v593_v62, 7  ;;  %v395_v12 = vpack.c.bf16 %v2829_v53, %v2829_v53  ;;  %v396_v14 = vpack.c.bf16 %v2830_v54, %v2830_v54 }
  0x56   : > { %4117 = vst [vmem:[#allocation11_spill] sm:$0xff] %v3267_v3  ;;  %v3270_v16 = vsel %vm717_vm3, %v748_v1, %v752_v34  ;;  %v803_v17 = vshrl.u32 %v3267_v3, 16  ;;  %v805_v22 = vshll.u32 %v3267_v3, 16  ;;  %v492_v26 = vunpack.c.l.b16 %v420_v61  ;;  %v2743_v61 = vld [vmem:[%s4074_s1 + $0xa] sm:$0x3] }
  0x57   : > { %2662 = vmatmul.msk.bf16.gmra.mxu0 %vm912_vm5, %v3270_v16  ;;  %v598_v23 = vor.u32 %v596_v63, %v595_v11  ;;  %v3278_v24 = vsel %vm3059_vm4, %v595_v11, 0  ;;  %v467_v29 = vunpack.c.l.b16 %v395_v12  ;;  %v812_v32 = vrot.slane %v810_v38, 1  ;;  %v2777_v38 = vld [vmem:[%s4074_s1 + $0xe] sm:$0x3] }
  0x58   : > { %v807_v30 = vrot.slane %v805_v22, 1  ;;  %v858_v35 = vshll.u32 %v3278_v24, 16  ;;  %v468_v34 = vunpack.c.l.b16 %v396_v14  ;;  %v512_v46 = vpack.c.b16 %v492_v26, %v491_v5 }
  0x59   : > { %v3283_v41 = vsel %vm3059_vm4, 0, %v598_v23  ;;  %v1842_v12 = vsel %vm961_vm0, %v2760_v47, 0  ;;  %v1982_v14 = vsel %vm961_vm0, %v2777_v38, 0 }
  0x5a   : > { %v808_v51 = vor.u32 %v807_v30, %v803_v17  ;;  %v851_v53 = vshrl.u32 %v3283_v41, 16  ;;  %v853_v54 = vshll.u32 %v3283_v41, 16  ;;  %v860_v57 = vrot.slane %v858_v35, 1  ;;  %v2794_v17 = vld [vmem:[%s4074_s1 + $0x10] sm:$0x3]  ;;  %1851 = vmatpush.bf16.msra.mxu2 %v1842_v12  ;;  %1991 = vmatpush.bf16.msra.mxu3 %v1982_v14 }
  0x5b   : > { %v621_v62 = vshrl.u32 %v512_v46, 16  ;;  %v624_v63 = vshll.u32 %v512_v46, 16  ;;  %v500_v1 = vpack.c.b16 %v468_v34, %v467_v29  ;;  %v1713_v29 = vsel %vm961_vm0, %v2743_v61, 0 }
  0x5c   : > { %v3297_v5 = vsel %vm717_vm3, %v808_v51, %v812_v32  ;;  %v855_v11 = vrot.slane %v853_v54, 1  ;;  %1722 = vmatpush.bf16.msra.mxu1 %v1713_v29  ;;  %v2116_v32 = vsel %vm961_vm0, %v2794_v17, 0 }
  0x5d   : > { %4118 = vst [vmem:[#allocation12_spill] sm:$0xff] %v3297_v5  ;;  %2667 = vmatmul.msk.bf16.gmra.mxu1 %vm912_vm5, %v3297_v5  ;;  %v623_v22 = vrot.slane %v621_v62, 7  ;;  %v537_v23 = vshrl.u32 %v500_v1, 16  ;;  %v540_v26 = vshll.u32 %v500_v1, 16  ;;  %2125 = vmatpush.bf16.msra.mxu0 %v2116_v32  ;;  %v1211_v32 = vrot.slane %v3102_v33, 1 }
  0x5e   : > { %v856_v30 = vor.u32 %v855_v11, %v851_v53 }
  0x5f   : > { %v626_v35 = vor.u32 %v624_v63, %v623_v22  ;;  %v3310_v34 = vsel %vm3059_vm4, %v623_v22, 0  ;;  %v539_v46 = vrot.slane %v537_v23, 7 }
  0x60   : > { %v3313_v47 = vsel %vm717_vm3, %v856_v30, %v860_v57  ;;  %v906_v51 = vshll.u32 %v3310_v34, 16 }
  0x61   : > { %2671 = vmatmul.msk.bf16.gmra.mxu2 %vm912_vm5, %v3313_v47  ;;  %v3320_v53 = vsel %vm3059_vm4, 0, %v626_v35  ;;  %v542_v54 = vor.u32 %v540_v26, %v539_v46  ;;  %v701_v62 = vsel %vm3059_vm4, %v539_v46, 0  ;;  %v1212_v35 = vrot.slane %v3098_v28, 1 }
  0x62   : > { %v899_v63 = vshrl.u32 %v3320_v53, 16  ;;  %v901_v1 = vshll.u32 %v3320_v53, 16  ;;  %v762_v38 = vshll.u32 %v701_v62, 16  ;;  %v908_v11 = vrot.slane %v906_v51, 1 }
  0x63   : > { %v3328_v57 = vsel %vm3059_vm4, 0, %v542_v54  ;;  %v1213_v46 = vsel %vm1210_vm6, %v1211_v32, %v1212_v35  ;;  %v1214_v51 = vrot.slane %v3176_v20, 1  ;;  %v1215_v54 = vrot.slane %v3163_v56, 1 }
  0x64   : > { %v903_v61 = vrot.slane %v901_v1, 1  ;;  %v755_v12 = vshrl.u32 %v3328_v57, 16  ;;  %v757_v14 = vshll.u32 %v3328_v57, 16  ;;  %v764_v23 = vrot.slane %v762_v38, 1 }
  0x65   : > { %v3357_v28 = vsel %vm1210_vm6, %v1214_v51, %v1215_v54  ;;  %v1223_v38 = vrot.slane %v3079_v9, 1  ;;  %v1226_v32 = vrot.slane %v3137_v7, 1  ;;  %v1227_v35 = vrot.slane %v3131_v0, 1 }
  0x66   : > { %v904_v17 = vor.u32 %v903_v61, %v899_v63  ;;  %v759_v22 = vrot.slane %v757_v14, 1  ;;  %v1218_v63 = vrot.slane %v3240_v21, 1 }
  0x67   : > { %v3424_v51 = vsel %vm1210_vm6, %v1226_v32, %v1227_v35 }
  0x68   : > { %v3333_v26 = vsel %vm717_vm3, %v904_v17, %v908_v11  ;;  %v760_v29 = vor.u32 %v759_v22, %v755_v12  ;;  %4122 = vst [vmem:[#allocation16_spill] sm:$0xff] %v3424_v51 }
  0x69   : > { %2675 = vmatmul.msk.bf16.gmra.mxu3 %vm912_vm5, %v3333_v26 }
  0x6a   : > { %v3338_v30 = vsel %vm717_vm3, %v760_v29, %v764_v23 }
  0x6b   : > { %2663 = vmatmul.msk.bf16.gmra.mxu0 %vm912_vm5, %v3338_v30 }
  0x6d   : > { %2676 = vmatmul.msk.bf16.vlgmr.msrb.gmra.mxu1 %vm912_vm5, %v3102_v33  ;;  %v1217_v33 = vrot.slane %v3250_v18, 1 }
  0x6f   : > { %v3370_v56 = vsel %vm1210_vm6, %v1217_v33, %v1218_v63 }
  0x71   : > { %2693 = vmatmul.msk.bf16.vlgmr.msrb.gmra.mxu2 %vm912_vm5, %v1213_v46 }
  0x79   : > { %2710 = vmatmul.msk.bf16.vlgmr.msrb.gmra.mxu3 %vm912_vm5, %v3176_v20 }
  0x7b   : > { %2727 = vmatmul.msk.bf16.vlgmr.msrb.gmra.mxu0 %vm912_vm5, %v3197_v42  ;;  %v1221_v42 = vrot.slane %v701_v62, 1  ;;  %v1224_v62 = vrot.slane %v3065_v2, 1 }
  0x7d   : > { %2677 = vmatmul.msk.bf16.gmra.mxu1 %vm912_vm5, %v3176_v20  ;;  %v1220_v20 = vrot.slane %v3328_v57, 1  ;;  %v3401_v14 = vsel %vm1210_vm6, %v1223_v38, %v1224_v62  ;;  %v1229_v38 = vrot.slane %v3205_v50, 1  ;;  %v1230_v62 = vrot.slane %v3192_v39, 1 }
  0x7e   : > { %4119 = vst [vmem:[#allocation13_spill] sm:$0xff] %v3401_v14 }
  0x7f   : > { %v3382_v21 = vsel %vm1210_vm6, %v1220_v20, %v1221_v42  ;;  %v3447_v35 = vsel %vm1210_vm6, %v1229_v38, %v1230_v62  ;;  %v1232_v38 = vrot.slane %v3267_v3, 1  ;;  %v1233_v62 = vrot.slane %v3262_v58, 1 }
  0x80   : > { %4125 = vst [vmem:[#allocation19_spill] sm:$0xff] %v3447_v35 }
  0x81   : > { %2694 = vmatmul.msk.bf16.gmra.mxu2 %vm912_vm5, %v3357_v28 }
  0x89   : > { %2711 = vmatmul.msk.bf16.gmra.mxu3 %vm912_vm5, %v3250_v18 }
  0x8b   : > { %2728 = vmatmul.msk.bf16.gmra.mxu0 %vm912_vm5, %v3270_v16 }
  0x8d   : > { %2678 = vmatmul.msk.bf16.gmra.mxu1 %vm912_vm5, %v3250_v18 }
  0x91   : > { %2695 = vmatmul.msk.bf16.gmra.mxu2 %vm912_vm5, %v3370_v56 }
  0x99   : > { %2712 = vmatmul.msk.bf16.gmra.mxu3 %vm912_vm5, %v3328_v57 }
  0x9b   : > { %2729 = vmatmul.msk.bf16.gmra.mxu0 %vm912_vm5, %v3338_v30 }
  0x9d   : > { %2679 = vmatmul.msk.bf16.gmra.mxu1 %vm912_vm5, %v3328_v57 }
  0xa1   : > { %2696 = vmatmul.msk.bf16.gmra.mxu2 %vm912_vm5, %v3382_v21 }
  0xa5   : > { %v3386_v1 = vpop.f32.mrf.mxu1 }
  0xa9   : > { %2713 = vmatmul.msk.bf16.gmra.mxu3 %vm912_vm5, %v3079_v9 }
  0xaa   : > { %v974_v61 = vpop.f32.mrf.mxu0 }
  0xab   : > { %2730 = vmatmul.msk.bf16.gmra.mxu0 %vm912_vm5, %v3109_v40 }
  0xac   : > { %v3394_v11 = vpop.f32.mrf.mxu2 }
  0xad   : > { %2680 = vmatmul.msk.bf16.gmra.mxu1 %vm912_vm5, %v3079_v9  ;;  %v3398_v12 = vpop.f32.mrf.mxu1 }
  0xae   : > { %v3403_v17 = vpop.f32.mrf.mxu3 }
  0xaf   : > { %4120 = vst [vmem:[#allocation14_spill] sm:$0xff] %v3403_v17 }
  0xb1   : > { %2697 = vmatmul.msk.bf16.gmra.mxu2 %vm912_vm5, %v3401_v14 }
  0xb2   : > { %v976_v23 = vpop.f32.mrf.mxu0 }
  0xb4   : > { %v3407_v2 = vpop.f32.mrf.mxu2 }
  0xb5   : > { %v3409_v22 = vpop.f32.mrf.mxu1 }
  0xb6   : > { %v3413_v29 = vpop.f32.mrf.mxu3 }
  0xb7   : > { %4121 = vst [vmem:[#allocation15_spill] sm:$0xff] %v3413_v29 }
  0xb9   : > { %2714 = vmatmul.msk.bf16.gmra.mxu3 %vm912_vm5, %v3137_v7 }
  0xbb   : > { %2731 = vmatmul.msk.bf16.gmra.mxu0 %vm912_vm5, %v3154_v45 }
  0xbd   : > { %2681 = vmatmul.msk.bf16.gmra.mxu1 %vm912_vm5, %v3137_v7  ;;  %v3421_v46 = vpop.f32.mrf.mxu1 }
  0xbe   : > { %v3426_v54 = vpop.f32.mrf.mxu2  ;;  %v979_v33 = vpop.f32.mrf.mxu0 }
  0xc1   : > { %2698 = vmatmul.msk.bf16.gmra.mxu2 %vm912_vm5, %v3424_v51 }
  0xc3   : > { %v3430_v63 = vpop.f32.mrf.mxu3 }
  0xc4   : > { %4123 = vst [vmem:[#allocation17_spill] sm:$0xff] %v3430_v63 }
  0xc6   : > { %v3432_v0 = vpop.f32.mrf.mxu1  ;;  %v3434_v20 = vpop.f32.mrf.mxu2 }
  0xc7   : > { %v981_v42 = vpop.f32.mrf.mxu0 }
  0xc9   : > { %2715 = vmatmul.msk.bf16.gmra.mxu3 %vm912_vm5, %v3205_v50 }
  0xcb   : > { %2732 = vmatmul.msk.bf16.gmra.mxu0 %vm912_vm5, %v3220_v31  ;;  %v3444_v32 = vpop.f32.mrf.mxu3 }
  0xcc   : > { %4124 = vst [vmem:[#allocation18_spill] sm:$0xff] %v3444_v32 }
  0xcd   : > { %2682 = vmatmul.msk.bf16.gmra.mxu1 %vm912_vm5, %v3205_v50 }
  0xce   : > { %v3449_v63 = vpop.f32.mrf.mxu1 }
  0xd1   : > { %2699 = vmatmul.msk.bf16.gmra.mxu2 %vm912_vm5, %v3447_v35 }
  0xd2   : > { %v3453_v29 = vpop.f32.mrf.mxu2 }
  0xd3   : > { %4126 = vst [vmem:[#allocation20_spill] sm:$0xff] %v3453_v29 }
  0xd4   : > { %v984_v17 = vpop.f32.mrf.mxu0 }
  0xd6   : > { %v3455_v39 = vpop.f32.mrf.mxu3 }
  0xd7   : > { %4127 = vst [vmem:[#allocation21_spill] sm:$0xff] %v3455_v39  ;;  %v3472_v39 = vsel %vm1210_vm6, %v1232_v38, %v1233_v62  ;;  %v1236_v38 = vrot.slane %v3069_v4, 1 }
  0xd8   : > { %4129 = vst [vmem:[#allocation23_spill] sm:$0xff] %v3472_v39 }
  0xd9   : > { %2716 = vmatmul.msk.bf16.gmra.mxu3 %vm912_vm5, %v3267_v3 }
  0xda   : > { %v3459_v31 = vpop.f32.mrf.mxu2  ;;  %v3461_v50 = vpop.f32.mrf.mxu1 }
  0xdb   : > { %4128 = vst [vmem:[#allocation22_spill] sm:$0xff] %v3459_v31  ;;  %2733 = vmatmul.msk.bf16.gmra.mxu0 %vm912_vm5, %v3297_v5 }
  0xdc   : > { %v3469_v32 = vpop.f32.mrf.mxu0 }
  0xdd   : > { %2683 = vmatmul.msk.bf16.gmra.mxu1 %vm912_vm5, %v3267_v3  ;;  %v1235_v3 = vrot.slane %v3083_v10, 1 }
  0xde   : > { %v3476_v35 = vpop.f32.mrf.mxu3 }
  0xdf   : > { %4130 = vst [vmem:[#allocation24_spill] sm:$0xff] %v3476_v35 }
  0xe1   : > { %2700 = vmatmul.msk.bf16.gmra.mxu2 %vm912_vm5, %v3472_v39 }
  0xe2   : > { %v3478_v51 = vpop.f32.mrf.mxu1 }
  0xe4   : > { %v3480_v45 = vpop.f32.mrf.mxu2 }
  0xe5   : > { %4131 = vst [vmem:[#allocation25_spill] sm:$0xff] %v3480_v45  ;;  %v3497_v45 = vsel %vm1210_vm6, %v1235_v3, %v1236_v38  ;;  %v1239_v3 = vrot.slane %v3144_v27, 1 }
  0xe6   : > { %4134 = vst [vmem:[#allocation28_spill] sm:$0xff] %v3497_v45 }
  0xe8   : > { %v3482_v58 = vpop.f32.mrf.mxu0 }
  0xe9   : > { %2717 = vmatmul.msk.bf16.gmra.mxu3 %vm912_vm5, %v3083_v10 }
  0xea   : > { %v1098_v5 = vpop.f32.mrf.mxu1 }
  0xeb   : > { %2734 = vmatmul.msk.bf16.gmra.mxu0 %vm912_vm5, %v3114_v44  ;;  %v1099_v62 = vadd.f32 %v1098_v5, %v974_v61 }
  0xec   : > { %v3490_v39 = vpop.f32.mrf.mxu3  ;;  %v3492_v35 = vpop.f32.mrf.mxu2 }
  0xed   : > { %4132 = vst [vmem:[#allocation26_spill] sm:$0xff] %v3490_v39  ;;  %2684 = vmatmul.msk.bf16.gmra.mxu1 %vm912_vm5, %v3083_v10  ;;  %v1238_v10 = vrot.slane %v3149_v36, 1 }
  0xee   : > { %4133 = vst [vmem:[#allocation27_spill] sm:$0xff] %v3492_v35 }
  0xf0   : > { %v3499_v7 = vpop.f32.mrf.mxu0 }
  0xf1   : > { %2701 = vmatmul.msk.bf16.gmra.mxu2 %vm912_vm5, %v3497_v45 }
  0xf2   : > { %v1100_v4 = vpop.f32.mrf.mxu1 }
  0xf3   : > { %v1101_v31 = vadd.f32 %v1100_v4, %v976_v23 }
  0xf4   : > { %v3503_v14 = vpop.f32.mrf.mxu3  ;;  %v1321_v5 = vpop.f32.mrf.mxu2 }
  0xf5   : > { %4135 = vst [vmem:[#allocation29_spill] sm:$0xff] %v3503_v14  ;;  %v1401_v61 = vadd.f32 %v1321_v5, %v1099_v62  ;;  %v3514_v62 = vsel %vm1210_vm6, %v1238_v10, %v1239_v3 }
  0xf8   : > { %v1590_v39 = vpop.f32.mrf.mxu0 }
  0xf9   : > { %2718 = vmatmul.msk.bf16.gmra.mxu3 %vm912_vm5, %v3149_v36 }
  0xfa   : > { %v1103_v44 = vpop.f32.mrf.mxu1 }
  0xfb   : > { %2735 = vmatmul.msk.bf16.gmra.mxu0 %vm912_vm5, %v3180_v6  ;;  %v1104_v38 = vadd.f32 %v1103_v44, %v979_v33 }
  0xfc   : > { %v1450_v45 = vpop.f32.mrf.mxu3  ;;  %v1323_v35 = vpop.f32.mrf.mxu2 }
  0xfd   : > { %v1530_v23 = vadd.f32 %v1450_v45, %v1401_v61  ;;  %v1402_v4 = vadd.f32 %v1323_v35, %v1101_v31  ;;  %2685 = vmatmul.msk.bf16.gmra.mxu1 %vm912_vm5, %v3149_v36  ;;  %v1241_v35 = vrot.slane %v3217_v25, 1 }
  0xff   : > { %v3516_v5 = vadd.f32 %v1590_v39, %v1530_v23  ;;  %v1242_v39 = vrot.slane %v3212_v15, 1 }
 0x100   : > { %v1592_v14 = vpop.f32.mrf.mxu0 }
 0x101   : > { %2702 = vmatmul.msk.bf16.gmra.mxu2 %vm912_vm5, %v3514_v62 }
 0x102   : > { %v1105_v27 = vpop.f32.mrf.mxu1 }
 0x103   : > { %v1106_v40 = vadd.f32 %v1105_v27, %v981_v42 }
 0x104   : > { %v1452_v6 = vpop.f32.mrf.mxu3  ;;  %v1326_v44 = vpop.f32.mrf.mxu2 }
 0x105   : > { %v1531_v33 = vadd.f32 %v1452_v6, %v1402_v4  ;;  %v1403_v29 = vadd.f32 %v1326_v44, %v1104_v38 }
 0x107   : > { %v3520_v45 = vadd.f32 %v1592_v14, %v1531_v33  ;;  %v3531_v14 = vsel %vm1210_vm6, %v1241_v35, %v1242_v39  ;;  %v1245_v39 = vrot.slane %v3278_v24, 1 }
 0x108   : > { %v1595_v31 = vpop.f32.mrf.mxu0 }
 0x109   : > { %2719 = vmatmul.msk.bf16.gmra.mxu3 %vm912_vm5, %v3217_v25 }
 0x10a   : > { %v1108_v10 = vpop.f32.mrf.mxu1 }
 0x10b   : > { %2736 = vmatmul.msk.bf16.gmra.mxu0 %vm912_vm5, %v3243_v13  ;;  %v1109_v61 = vadd.f32 %v1108_v10, %v984_v17 }
 0x10c   : > { %v1455_v42 = vpop.f32.mrf.mxu3  ;;  %v1328_v3 = vpop.f32.mrf.mxu2 }
 0x10d   : > { %v1532_v23 = vadd.f32 %v1455_v42, %v1403_v29  ;;  %v1404_v6 = vadd.f32 %v1328_v3, %v1106_v40  ;;  %2686 = vmatmul.msk.bf16.gmra.mxu1 %vm912_vm5, %v3217_v25 }
 0x10f   : > { %v3533_v38 = vadd.f32 %v1595_v31, %v1532_v23  ;;  %v1244_v31 = vrot.slane %v3283_v41, 1 }
 0x110   : > { %v1597_v4 = vpop.f32.mrf.mxu0 }
 0x111   : > { %2703 = vmatmul.msk.bf16.gmra.mxu2 %vm912_vm5, %v3531_v14 }
 0x112   : > { %v1110_v15 = vpop.f32.mrf.mxu1 }
 0x113   : > { %v1111_v27 = vadd.f32 %v1110_v15, %v3469_v32 }
 0x114   : > { %v1457_v17 = vpop.f32.mrf.mxu3  ;;  %v1331_v44 = vpop.f32.mrf.mxu2 }
 0x115   : > { %v1533_v33 = vadd.f32 %v1457_v17, %v1404_v6  ;;  %v1405_v29 = vadd.f32 %v1331_v44, %v1109_v61  ;;  %v3550_v6 = vsel %vm1210_vm6, %v1244_v31, %v1245_v39  ;;  %v1248_v39 = vrot.slane %v3075_v8, 1 }
 0x117   : > { %v3538_v40 = vadd.f32 %v1597_v4, %v1533_v33 }
 0x118   : > { %v1600_v10 = vpop.f32.mrf.mxu0 }
 0x119   : > { %2720 = vmatmul.msk.bf16.gmra.mxu3 %vm912_vm5, %v3283_v41 }
 0x11a   : > { %v1113_v35 = vpop.f32.mrf.mxu1 }
 0x11b   : > { %2737 = vmatmul.msk.bf16.gmra.mxu0 %vm912_vm5, %v3313_v47  ;;  %v1114_v32 = vadd.f32 %v1113_v35, %v3482_v58 }
 0x11c   : > { %v1460_v42 = vpop.f32.mrf.mxu3  ;;  %v1333_v3 = vpop.f32.mrf.mxu2 }
 0x11d   : > { %v1534_v23 = vadd.f32 %v1460_v42, %v1405_v29  ;;  %v1406_v61 = vadd.f32 %v1333_v3, %v1111_v27  ;;  %2687 = vmatmul.msk.bf16.gmra.mxu1 %vm912_vm5, %v3283_v41 }
 0x11f   : > { %v3552_v4 = vadd.f32 %v1600_v10, %v1534_v23  ;;  %v1247_v10 = vrot.slane %v3092_v19, 1 }
 0x120   : > { %v1602_v15 = vpop.f32.mrf.mxu0 }
 0x121   : > { %2704 = vmatmul.msk.bf16.gmra.mxu2 %vm912_vm5, %v3550_v6 }
 0x122   : > { %v1115_v24 = vpop.f32.mrf.mxu1 }
 0x123   : > { %v1116_v17 = vadd.f32 %v1115_v24, %v3499_v7 }
 0x124   : > { %v1462_v58 = vpop.f32.mrf.mxu3  ;;  %v1336_v44 = vpop.f32.mrf.mxu2 }
 0x125   : > { %v1535_v33 = vadd.f32 %v1462_v58, %v1406_v61  ;;  %v1407_v29 = vadd.f32 %v1336_v44, %v1114_v32  ;;  %v3568_v32 = vsel %vm1210_vm6, %v1247_v10, %v1248_v39  ;;  %v1251_v39 = vrot.slane %v3158_v52, 1 }
 0x127   : > { %v3557_v27 = vadd.f32 %v1602_v15, %v1535_v33 }
 0x128   : > { %v1605_v35 = vpop.f32.mrf.mxu0 }
 0x129   : > { %2721 = vmatmul.msk.bf16.gmra.mxu3 %vm912_vm5, %v3092_v19 }
 0x12a   : > { %v1118_v31 = vpop.f32.mrf.mxu1 }
 0x12b   : > { %2738 = vmatmul.msk.bf16.gmra.mxu0 %vm912_vm5, %v3120_v49  ;;  %v1119_v24 = vadd.f32 %v1118_v31, %v3386_v1 }
 0x12c   : > { %v1465_v42 = vpop.f32.mrf.mxu3  ;;  %v1338_v7 = vpop.f32.mrf.mxu2 }
 0x12d   : > { %v1536_v3 = vadd.f32 %v1465_v42, %v1407_v29  ;;  %v1408_v23 = vadd.f32 %v1338_v7, %v1116_v17  ;;  %2688 = vmatmul.msk.bf16.gmra.mxu1 %vm912_vm5, %v3092_v19  ;;  %v2901_v7 = vld [vmem:[%s3039_s12 + $0x78] sm:$0xff]  }
 0x12f   : > { %v3570_v61 = vadd.f32 %v1605_v35, %v1536_v3  ;;  %v1250_v35 = vrot.slane %v3169_v59, 1 }
 0x130   : > { %v1607_v15 = vpop.f32.mrf.mxu0 }
 0x131   : > { %2705 = vmatmul.msk.bf16.gmra.mxu2 %vm912_vm5, %v3568_v32 }
 0x132   : > { %v1120_v8 = vpop.f32.mrf.mxu1 }
 0x133   : > { %v1121_v1 = vadd.f32 %v1120_v8, %v3398_v12 }
 0x134   : > { %v1467_v58 = vpop.f32.mrf.mxu3  ;;  %v1341_v44 = vpop.f32.mrf.mxu2 }
 0x135   : > { %v1537_v33 = vadd.f32 %v1467_v58, %v1408_v23  ;;  %v1409_v17 = vadd.f32 %v1341_v44, %v1119_v24  ;;  %v3587_v24 = vunpack.c.l.bf16 %v2901_v7  ;;  %v3589_v58 = vunpack.c.h.bf16 %v2901_v7 }
 0x136   : > { %v3592_v44 = vsel %vm1210_vm6, %v1250_v35, %v1251_v39 }
 0x137   : > { %v3575_v29 = vadd.f32 %v1607_v15, %v1537_v33  ;;  %4137 = vst [vmem:[#allocation31_spill] sm:$0xff] %v3587_v24  ;;  %v421_v12 = vpack.c.bf16 %v3587_v24, %v3587_v24  ;;  %v422_v8 = vpack.c.bf16 %v3589_v58, %v3589_v58 }
 0x138   : > { %v1610_v42 = vpop.f32.mrf.mxu0  ;;  %4138 = vst [vmem:[#allocation32_spill] sm:$0xff] %v3589_v58  ;;  %v1254_v58 = vrot.slane %v3229_v43, 1 }
 0x139   : > { %4136 = vst [vmem:[#allocation30_spill] sm:$0xff] %v3575_v29  ;;  %2722 = vmatmul.msk.bf16.gmra.mxu3 %vm912_vm5, %v3169_v59  ;;  %v493_v39 = vunpack.c.l.b16 %v421_v12 }
 0x13a   : > { %v1123_v10 = vpop.f32.mrf.mxu1  ;;  %4139 = vst [vmem:[#allocation33_spill] sm:$0xff] %v3592_v44 }
 0x13b   : > { %2739 = vmatmul.msk.bf16.gmra.mxu0 %vm912_vm5, %v3188_v37 }
 0x13c   : > { %v1470_v31 = vpop.f32.mrf.mxu3  ;;  %v1343_v3 = vpop.f32.mrf.mxu2 }
 0x13d   : > { %v1538_v23 = vadd.f32 %v1470_v31, %v1409_v17  ;;  %v1410_v15 = vadd.f32 %v1343_v3, %v1121_v1  ;;  %2689 = vmatmul.msk.bf16.gmra.mxu1 %vm912_vm5, %v3169_v59  ;;  %v1124_v1 = vadd.f32 %v1123_v10, %v3409_v22 }
 0x13f   : > { %v3594_v52 = vadd.f32 %v1610_v42, %v1538_v23  ;;  %v494_v42 = vunpack.c.l.b16 %v422_v8 }
 0x140   : > { %v1612_v33 = vpop.f32.mrf.mxu0 }
 0x141   : > { %4140 = vst [vmem:[#allocation34_spill] sm:$0xff] %v3594_v52  ;;  %2706 = vmatmul.msk.bf16.gmra.mxu2 %vm912_vm5, %v3592_v44  ;;  %v513_v29 = vpack.c.b16 %v494_v42, %v493_v39  ;;  %v1253_v44 = vrot.slane %v3234_v55, 1 }
 0x142   : > { %v1125_v17 = vpop.f32.mrf.mxu1 }
 0x143   : > { %v1126_v22 = vadd.f32 %v1125_v17, %v3421_v46  ;;  %v628_v8 = vshrl.u32 %v513_v29, 16 }
 0x144   : > { %v1472_v7 = vpop.f32.mrf.mxu3  ;;  %v1346_v31 = vpop.f32.mrf.mxu2 }
 0x145   : > { %v1539_v3 = vadd.f32 %v1472_v7, %v1410_v15  ;;  %v1411_v35 = vadd.f32 %v1346_v31, %v1124_v1  ;;  %v3615_v1 = vsel %vm1210_vm6, %v1253_v44, %v1254_v58  ;;  %v630_v43 = vrot.slane %v628_v8, 7 }
 0x147   : > { %v3603_v23 = vadd.f32 %v1612_v33, %v1539_v3  ;;  %v631_v3 = vshll.u32 %v513_v29, 16  ;;  %v1256_v29 = vrot.slane %v3320_v53, 1 }
 0x148   : > { %v1615_v52 = vpop.f32.mrf.mxu0 }
 0x149   : > { %2723 = vmatmul.msk.bf16.gmra.mxu3 %vm912_vm5, %v3234_v55 }
 0x14a   : > { %v1128_v24 = vpop.f32.mrf.mxu1 }
 0x14b   : > { %2740 = vmatmul.msk.bf16.gmra.mxu0 %vm912_vm5, %v3256_v48  ;;  %v1129_v17 = vadd.f32 %v1128_v24, %v3432_v0  ;;  %v1257_v0 = vrot.slane %v3310_v34, 1 }
 0x14c   : > { %v1475_v10 = vpop.f32.mrf.mxu3  ;;  %v1348_v15 = vpop.f32.mrf.mxu2 }
 0x14d   : > { %v1540_v12 = vadd.f32 %v1475_v10, %v1411_v35  ;;  %v1412_v33 = vadd.f32 %v1348_v15, %v1126_v22  ;;  %2690 = vmatmul.msk.bf16.gmra.mxu1 %vm912_vm5, %v3234_v55  ;;  %v633_v10 = vor.u32 %v631_v3, %v630_v43  ;;  %v3643_v34 = vsel %vm1210_vm6, %v1256_v29, %v1257_v0 }
 0x14f   : > { %v3617_v7 = vadd.f32 %v1615_v52, %v1540_v12  ;;  %v3628_v44 = vsel %vm3059_vm4, 0, %v633_v10 }
 0x150   : > { %v1617_v31 = vpop.f32.mrf.mxu0  ;;  %v1564_v8 = vshll.u32 %v3628_v44, 16 }
 0x151   : > { %2707 = vmatmul.msk.bf16.gmra.mxu2 %vm912_vm5, %v3615_v1 }
 0x152   : > { %v1130_v46 = vpop.f32.mrf.mxu1 }
 0x153   : > { %v1131_v24 = vadd.f32 %v1130_v46, %v3449_v63  ;;  %v1562_v63 = vshrl.u32 %v3628_v44, 16  ;;  %v1566_v46 = vrot.slane %v1564_v8, 1 }
 0x154   : > { %v1477_v35 = vpop.f32.mrf.mxu3  ;;  %v1351_v39 = vpop.f32.mrf.mxu2 }
 0x155   : > { %v1541_v42 = vadd.f32 %v1477_v35, %v1412_v33  ;;  %v1413_v22 = vadd.f32 %v1351_v39, %v1129_v17  ;;  %v3640_v17 = vsel %vm3059_vm4, %v630_v43, 0  ;;  %v1567_v43 = vor.u32 %v1566_v46, %v1562_v63 }
 0x157   : > { %v3622_v15 = vadd.f32 %v1617_v31, %v1541_v42  ;;  %v1569_v42 = vshll.u32 %v3640_v17, 16 }
 0x158   : > { %v1620_v58 = vpop.f32.mrf.mxu0 }
 0x159   : > { %2724 = vmatmul.msk.bf16.gmra.mxu3 %vm912_vm5, %v3320_v53 }
 0x15a   : > { %v1133_v52 = vpop.f32.mrf.mxu1 }
 0x15b   : > { %2741 = vmatmul.msk.bf16.gmra.mxu0 %vm912_vm5, %v3333_v26  ;;  %v1134_v10 = vadd.f32 %v1133_v52, %v3461_v50 }
 0x15c   : > { %v1480_v12 = vpop.f32.mrf.mxu3  ;;  %v1353_v33 = vpop.f32.mrf.mxu2 }
 0x15d   : > { %v1542_v31 = vadd.f32 %v1480_v12, %v1413_v22  ;;  %v1414_v3 = vadd.f32 %v1353_v33, %v1131_v24  ;;  %2691 = vmatmul.msk.bf16.gmra.mxu1 %vm912_vm5, %v3320_v53  ;;  %v1571_v12 = vrot.slane %v1569_v42, 1 }
 0x15f   : > { %v3645_v35 = vadd.f32 %v1620_v58, %v1542_v31  ;;  %v3655_v60 = vsel %vm717_vm3, %v1567_v43, %v1571_v12 }
 0x160   : > { %v1622_v39 = vpop.f32.mrf.mxu0 }
 0x161   : > { %2708 = vmatmul.msk.bf16.gmra.mxu2 %vm912_vm5, %v3643_v34 }
 0x162   : > { %v1135_v22 = vpop.f32.mrf.mxu1 }
 0x163   : > { %v1136_v50 = vadd.f32 %v1135_v22, %v3478_v51 }
 0x164   : > { %v1482_v24 = vpop.f32.mrf.mxu3  ;;  %v1356_v33 = vpop.f32.mrf.mxu2 }
 0x165   : > { %v1543_v29 = vadd.f32 %v1482_v24, %v1414_v3  ;;  %v1415_v0 = vadd.f32 %v1356_v33, %v1134_v10 }
 0x167   : > { %v3652_v58 = vadd.f32 %v1622_v39, %v1543_v29 }
 0x168   : > { %v1625_v31 = vpop.f32.mrf.mxu0 }
 0x169   : > { %2725 = vmatmul.msk.bf16.gmra.mxu3 %vm912_vm5, %v3628_v44 }
 0x16a   : > { %v1138_v8 = vpop.f32.mrf.mxu1 }
 0x16b   : > { %2742 = vmatmul.msk.bf16.gmra.mxu0 %vm912_vm5, %v3655_v60  ;;  %v1139_v24 = vadd.f32 %v1138_v8, %v3394_v11 }
 0x16c   : > { %v1485_v52 = vpop.f32.mrf.mxu3  ;;  %v1358_v63 = vpop.f32.mrf.mxu2 }
 0x16d   : > { %v1544_v46 = vadd.f32 %v1485_v52, %v1415_v0  ;;  %v1416_v3 = vadd.f32 %v1358_v63, %v1136_v50  ;;  %2744 = vmatmul.msk.bf16.vlgmr.msra.gmra.mxu1 %vm912_vm5, %v3357_v28 }
 0x16f   : > { %v3664_v39 = vadd.f32 %v1625_v31, %v1544_v46 }
 0x170   : > { %v1627_v42 = vpop.f32.mrf.mxu0 }
 0x171   : > { %2761 = vmatmul.msk.bf16.vlgmr.msra.gmra.mxu2 %vm912_vm5, %v3250_v18 }
 0x172   : > { %v1140_v10 = vpop.f32.mrf.mxu1 }
 0x173   : > { %v1141_v0 = vadd.f32 %v1140_v10, %v3407_v2 }
 0x174   : > { %v1487_v43 = vpop.f32.mrf.mxu3  ;;  %v1361_v12 = vpop.f32.mrf.mxu2 }
 0x175   : > { %v1545_v33 = vadd.f32 %v1487_v43, %v1416_v3  ;;  %v1417_v51 = vadd.f32 %v1361_v12, %v1139_v24 }
 0x177   : > { %v3669_v22 = vadd.f32 %v1627_v42, %v1545_v33 }
 0x178   : > { %v1630_v29 = vpop.f32.mrf.mxu0 }
 0x179   : > { %2778 = vmatmul.msk.bf16.vlgmr.msra.gmra.mxu3 %vm912_vm5, %v3270_v16 }
 0x17a   : > { %v1143_v28 = vpop.f32.mrf.mxu1 }
 0x17b   : > { %2795 = vmatmul.msk.bf16.vlgmr.msra.gmra.mxu0 %vm912_vm5, %v3370_v56  ;;  %v1144_v63 = vadd.f32 %v1143_v28, %v3426_v54  ;;  %v4141_v28 = vld [vmem:[#allocation20_spill] sm:$0xff] }
 0x17c   : > { %v1490_v18 = vpop.f32.mrf.mxu3  ;;  %v1363_v31 = vpop.f32.mrf.mxu2 }
 0x17d   : > { %v1546_v50 = vadd.f32 %v1490_v18, %v1417_v51  ;;  %v1418_v11 = vadd.f32 %v1363_v31, %v1141_v0  ;;  %2745 = vmatmul.msk.bf16.gmra.mxu1 %vm912_vm5, %v3370_v56 }
 0x17f   : > { %v3678_v8 = vadd.f32 %v1630_v29, %v1546_v50 }
 0x180   : > { %v1632_v52 = vpop.f32.mrf.mxu0 }
 0x181   : > { %2762 = vmatmul.msk.bf16.gmra.mxu2 %vm912_vm5, %v3328_v57 }
 0x182   : > { %v1145_v16 = vpop.f32.mrf.mxu1 }
 0x183   : > { %v1146_v43 = vadd.f32 %v1145_v16, %v3434_v20  ;;  %v4142_v16 = vld [vmem:[#allocation4_spill] sm:$0xff] }
 0x184   : > { %v1492_v46 = vpop.f32.mrf.mxu3  ;;  %v1366_v3 = vpop.f32.mrf.mxu2 }
 0x185   : > { %v1547_v42 = vadd.f32 %v1492_v46, %v1418_v11  ;;  %v1419_v2 = vadd.f32 %v1366_v3, %v1144_v63  ;;  %v4143_v63 = vld [vmem:[#allocation13_spill] sm:$0xff]  ;;  %v4144_v46 = vld [vmem:[#allocation22_spill] sm:$0xff] }
 0x187   : > { %v3683_v10 = vadd.f32 %v1632_v52, %v1547_v42 }
 0x188   : > { %v1635_v24 = vpop.f32.mrf.mxu0 }
 0x189   : > { %2779 = vmatmul.msk.bf16.gmra.mxu3 %vm912_vm5, %v3338_v30 }
 0x18a   : > { %v1148_v56 = vpop.f32.mrf.mxu1 }
 0x18b   : > { %2796 = vmatmul.msk.bf16.gmra.mxu0 %vm912_vm5, %v3382_v21  ;;  %v1149_v0 = vadd.f32 %v1148_v56, %v4141_v28 }
 0x18c   : > { %v1495_v57 = vpop.f32.mrf.mxu3  ;;  %v1368_v12 = vpop.f32.mrf.mxu2 }
 0x18d   : > { %v1548_v33 = vadd.f32 %v1495_v57, %v1419_v2  ;;  %v1420_v54 = vadd.f32 %v1368_v12, %v1146_v43  ;;  %2746 = vmatmul.msk.bf16.gmra.mxu1 %vm912_vm5, %v3382_v21  ;;  %v4145_v57 = vld [vmem:[#allocation6_spill] sm:$0xff] }
 0x18f   : > { %v3692_v51 = vadd.f32 %v1635_v24, %v1548_v33  ;;  %v4146_v33 = vld [vmem:[#allocation25_spill] sm:$0xff] }
 0x190   : > { %v1637_v29 = vpop.f32.mrf.mxu0 }
 0x191   : > { %2763 = vmatmul.msk.bf16.gmra.mxu2 %vm912_vm5, %v3079_v9 }
 0x192   : > { %v1150_v30 = vpop.f32.mrf.mxu1 }
 0x193   : > { %v1151_v3 = vadd.f32 %v1150_v30, %v4144_v46 }
 0x194   : > { %v1497_v18 = vpop.f32.mrf.mxu3  ;;  %v1371_v31 = vpop.f32.mrf.mxu2 }
 0x195   : > { %v1549_v50 = vadd.f32 %v1497_v18, %v1420_v54  ;;  %v1421_v20 = vadd.f32 %v1371_v31, %v1149_v0 }
 0x197   : > { %v3697_v11 = vadd.f32 %v1637_v29, %v1549_v50  ;;  %v4147_v50 = vld [vmem:[#allocation7_spill] sm:$0xff] }
 0x198   : > { %v1640_v52 = vpop.f32.mrf.mxu0 }
 0x199   : > { %2780 = vmatmul.msk.bf16.gmra.mxu3 %vm912_vm5, %v4142_v16  ;;  %v4149_v16 = vld [vmem:[#allocation27_spill] sm:$0xff] }
 0x19a   : > { %v1153_v21 = vpop.f32.mrf.mxu1 }
 0x19b   : > { %2797 = vmatmul.msk.bf16.gmra.mxu0 %vm912_vm5, %v4143_v63  ;;  %v1154_v54 = vadd.f32 %v1153_v21, %v4146_v33 }
 0x19c   : > { %v1500_v9 = vpop.f32.mrf.mxu3  ;;  %v1373_v42 = vpop.f32.mrf.mxu2 }
 0x19d   : > { %v1550_v2 = vadd.f32 %v1500_v9, %v1421_v20  ;;  %v1422_v24 = vadd.f32 %v1373_v42, %v1151_v3  ;;  %2747 = vmatmul.msk.bf16.gmra.mxu1 %vm912_vm5, %v4143_v63 }
 0x19f   : > { %v3706_v56 = vadd.f32 %v1640_v52, %v1550_v2  ;;  %v4148_v52 = vld [vmem:[#allocation16_spill] sm:$0xff] }
 0x1a0   : > { %v1642_v43 = vpop.f32.mrf.mxu0 }
 0x1a1   : > { %2764 = vmatmul.msk.bf16.gmra.mxu2 %vm912_vm5, %v4145_v57  ;;  %v4151_v57 = vld [vmem:[#allocation14_spill] sm:$0xff] }
 0x1a2   : > { %v1155_v12 = vpop.f32.mrf.mxu1 }
 0x1a3   : > { %v1156_v63 = vadd.f32 %v1155_v12, %v4149_v16  ;;  %v4154_v16 = vld [vmem:[#allocation15_spill] sm:$0xff] }
 0x1a4   : > { %v1502_v29 = vpop.f32.mrf.mxu3  ;;  %v1376_v28 = vpop.f32.mrf.mxu2 }
 0x1a5   : > { %v1551_v0 = vadd.f32 %v1502_v29, %v1422_v24  ;;  %v1423_v30 = vadd.f32 %v1376_v28, %v1154_v54  ;;  %v4150_v24 = vld [vmem:[#allocation9_spill] sm:$0xff] }
 0x1a7   : > { %v3711_v18 = vadd.f32 %v1642_v43, %v1551_v0 }
 0x1a8   : > { %v1645_v31 = vpop.f32.mrf.mxu0 }
 0x1a9   : > { %2781 = vmatmul.msk.bf16.gmra.mxu3 %vm912_vm5, %v4147_v50  ;;  %v4152_v50 = vld [vmem:[#allocation10_spill] sm:$0xff] }
 0x1aa   : > { %v1158_v20 = vpop.f32.mrf.mxu1 }
 0x1ab   : > { %2798 = vmatmul.msk.bf16.gmra.mxu0 %vm912_vm5, %v4148_v52  ;;  %v1159_v33 = vadd.f32 %v1158_v20, %v4151_v57 }
 0x1ac   : > { %v1505_v46 = vpop.f32.mrf.mxu3  ;;  %v1378_v3 = vpop.f32.mrf.mxu2 }
 0x1ad   : > { %v1552_v9 = vadd.f32 %v1505_v46, %v1423_v30  ;;  %v1424_v21 = vadd.f32 %v1378_v3, %v1156_v63  ;;  %2748 = vmatmul.msk.bf16.gmra.mxu1 %vm912_vm5, %v4148_v52 }
 0x1af   : > { %v3720_v42 = vadd.f32 %v1645_v31, %v1552_v9  ;;  %v4153_v31 = vld [vmem:[#allocation19_spill] sm:$0xff] }
 0x1b0   : > { %v1647_v2 = vpop.f32.mrf.mxu0 }
 0x1b1   : > { %2765 = vmatmul.msk.bf16.gmra.mxu2 %vm912_vm5, %v4150_v24  ;;  %v4156_v24 = vld [vmem:[#allocation11_spill] sm:$0xff] }
 0x1b2   : > { %v1160_v43 = vpop.f32.mrf.mxu1 }
 0x1b3   : > { %v1161_v63 = vadd.f32 %v1160_v43, %v4154_v16 }
 0x1b4   : > { %v1507_v54 = vpop.f32.mrf.mxu3  ;;  %v1381_v29 = vpop.f32.mrf.mxu2 }
 0x1b5   : > { %v1553_v28 = vadd.f32 %v1507_v54, %v1424_v21  ;;  %v1425_v12 = vadd.f32 %v1381_v29, %v1159_v33  ;;  %v4157_v33 = vld [vmem:[#allocation17_spill] sm:$0xff] }
 0x1b7   : > { %v3725_v0 = vadd.f32 %v1647_v2, %v1553_v28 }
 0x1b8   : > { %v1650_v30 = vpop.f32.mrf.mxu0 }
 0x1b9   : > { %2782 = vmatmul.msk.bf16.gmra.mxu3 %vm912_vm5, %v4152_v50 }
 0x1ba   : > { %v1163_v52 = vpop.f32.mrf.mxu1 }
 0x1bb   : > { %2799 = vmatmul.msk.bf16.gmra.mxu0 %vm912_vm5, %v4153_v31  ;;  %v1164_v54 = vadd.f32 %v1163_v52, %v4157_v33  ;;  %v4163_v33 = vld [vmem:[#allocation3_spill] sm:$0xff] }
 0x1bc   : > { %v1510_v46 = vpop.f32.mrf.mxu3  ;;  %v1383_v3 = vpop.f32.mrf.mxu2 }
 0x1bd   : > { %v1554_v9 = vadd.f32 %v1510_v46, %v1425_v12  ;;  %v1426_v20 = vadd.f32 %v1383_v3, %v1161_v63  ;;  %2749 = vmatmul.msk.bf16.gmra.mxu1 %vm912_vm5, %v4153_v31  ;;  %v4159_v63 = vld [vmem:[#allocation12_spill] sm:$0xff]  ;;  %v4161_v46 = vld [vmem:[#allocation18_spill] sm:$0xff] }
 0x1bf   : > { %v3734_v21 = vadd.f32 %v1650_v30, %v1554_v9  ;;  %v4160_v30 = vld [vmem:[#allocation23_spill] sm:$0xff] }
 0x1c0   : > { %v1652_v2 = vpop.f32.mrf.mxu0 }
 0x1c1   : > { %4155 = vst [vmem:[#allocation20_spill] sm:$0xff] %v3734_v21  ;;  %2766 = vmatmul.msk.bf16.gmra.mxu2 %vm912_vm5, %v4156_v24 }
 0x1c2   : > { %v1165_v57 = vpop.f32.mrf.mxu1 }
 0x1c3   : > { %v1166_v3 = vadd.f32 %v1165_v57, %v4161_v46 }
 0x1c4   : > { %v1512_v29 = vpop.f32.mrf.mxu3  ;;  %v1386_v28 = vpop.f32.mrf.mxu2 }
 0x1c5   : > { %v1555_v50 = vadd.f32 %v1512_v29, %v1426_v20  ;;  %v1427_v43 = vadd.f32 %v1386_v28, %v1164_v54  ;;  %v4164_v29 = vld [vmem:[#allocation21_spill] sm:$0xff] }
 0x1c7   : > { %v3739_v16 = vadd.f32 %v1652_v2, %v1555_v50 }
 0x1c8   : > { %v1655_v12 = vpop.f32.mrf.mxu0 }
 0x1c9   : > { %4158 = vst [vmem:[#allocation4_spill] sm:$0xff] %v3739_v16  ;;  %2783 = vmatmul.msk.bf16.gmra.mxu3 %vm912_vm5, %v4159_v63 }
 0x1ca   : > { %v1168_v31 = vpop.f32.mrf.mxu1 }
 0x1cb   : > { %2800 = vmatmul.msk.bf16.gmra.mxu0 %vm912_vm5, %v4160_v30  ;;  %v1169_v28 = vadd.f32 %v1168_v31, %v4164_v29  ;;  %v4168_v29 = vld [vmem:[#allocation26_spill] sm:$0xff] }
 0x1cc   : > { %v1515_v9 = vpop.f32.mrf.mxu3  ;;  %v1388_v24 = vpop.f32.mrf.mxu2 }
 0x1cd   : > { %v1556_v21 = vadd.f32 %v1515_v9, %v1427_v43  ;;  %v1428_v52 = vadd.f32 %v1388_v24, %v1166_v3  ;;  %2750 = vmatmul.msk.bf16.gmra.mxu1 %vm912_vm5, %v4160_v30  ;;  %v4165_v3 = vld [vmem:[#allocation5_spill] sm:$0xff] }
 0x1cf   : > { %v3748_v20 = vadd.f32 %v1655_v12, %v1556_v21  ;;  %v4166_v21 = vld [vmem:[#allocation28_spill] sm:$0xff] }
 0x1d0   : > { %v1657_v2 = vpop.f32.mrf.mxu0  ;;  %v4167_v12 = vld [vmem:[#allocation24_spill] sm:$0xff] }
 0x1d1   : > { %4162 = vst [vmem:[#allocation13_spill] sm:$0xff] %v3748_v20  ;;  %2767 = vmatmul.msk.bf16.gmra.mxu2 %vm912_vm5, %v4163_v33 }
 0x1d2   : > { %v1170_v54 = vpop.f32.mrf.mxu1 }
 0x1d3   : > { %v1171_v9 = vadd.f32 %v1170_v54, %v4167_v12 }
 0x1d4   : > { %v1517_v50 = vpop.f32.mrf.mxu3  ;;  %v1391_v63 = vpop.f32.mrf.mxu2 }
 0x1d5   : > { %v1557_v16 = vadd.f32 %v1517_v50, %v1428_v52  ;;  %v1429_v57 = vadd.f32 %v1391_v63, %v1169_v28 }
 0x1d7   : > { %v3753_v46 = vadd.f32 %v1657_v2, %v1557_v16 }
 0x1d8   : > { %v1660_v43 = vpop.f32.mrf.mxu0 }
 0x1d9   : > { %2784 = vmatmul.msk.bf16.gmra.mxu3 %vm912_vm5, %v4165_v3 }
 0x1da   : > { %v1173_v30 = vpop.f32.mrf.mxu1 }
 0x1db   : > { %2801 = vmatmul.msk.bf16.gmra.mxu0 %vm912_vm5, %v4166_v21  ;;  %v1174_v28 = vadd.f32 %v1173_v30, %v4168_v29 }
 0x1dc   : > { %v1520_v24 = vpop.f32.mrf.mxu3  ;;  %v1393_v33 = vpop.f32.mrf.mxu2 }
 0x1dd   : > { %v1558_v20 = vadd.f32 %v1520_v24, %v1429_v57  ;;  %v1430_v31 = vadd.f32 %v1393_v33, %v1171_v9  ;;  %2751 = vmatmul.msk.bf16.gmra.mxu1 %vm912_vm5, %v4166_v21  ;;  %v4169_v9 = vld [vmem:[#allocation8_spill] sm:$0xff] }
 0x1df   : > { %v3762_v52 = vadd.f32 %v1660_v43, %v1558_v20  ;;  %v4170_v20 = vld [vmem:[#allocation29_spill] sm:$0xff] }
 0x1e0   : > { %v1662_v16 = vpop.f32.mrf.mxu0 }
 0x1e1   : > { %2768 = vmatmul.msk.bf16.gmra.mxu2 %vm912_vm5, %v3149_v36 }
 0x1e2   : > { %v1175_v2 = vpop.f32.mrf.mxu1 }
 0x1e3   : > { %v1176_v43 = vadd.f32 %v1175_v2, %v4170_v20 }
 0x1e4   : > { %v1522_v50 = vpop.f32.mrf.mxu3  ;;  %v1396_v63 = vpop.f32.mrf.mxu2 }
 0x1e5   : > { %v1559_v3 = vadd.f32 %v1522_v50, %v1430_v31  ;;  %v1431_v54 = vadd.f32 %v1396_v63, %v1174_v28 }
 0x1e7   : > { %v3767_v12 = vadd.f32 %v1662_v16, %v1559_v3 }
 0x1e8   : > { %v1665_v57 = vpop.f32.mrf.mxu0 }
 0x1e9   : > { %2785 = vmatmul.msk.bf16.gmra.mxu3 %vm912_vm5, %v4169_v9 }
 0x1ea   : > { %v1724_v21 = vpop.f32.mrf.mxu1 }
 0x1eb   : > { %2802 = vmatmul.msk.bf16.gmra.mxu0 %vm912_vm5, %v3514_v62  ;;  %v1804_v3 = vadd.f32 %v1724_v21, %v3516_v5 }
 0x1ec   : > { %v1525_v36 = vpop.f32.mrf.mxu3  ;;  %v1398_v24 = vpop.f32.mrf.mxu2 }
 0x1ed   : > { %v1560_v33 = vadd.f32 %v1525_v36, %v1431_v54  ;;  %v1432_v30 = vadd.f32 %v1398_v24, %v1176_v43  ;;  %2752 = vmatmul.msk.bf16.gmra.mxu1 %vm912_vm5, %v3514_v62  ;;  %v3790_v43 = vld [vmem:[%s4075_s2] ss:$0 sm:$0xff] }
 0x1ef   : > { %v3776_v31 = vadd.f32 %v1665_v57, %v1560_v33 }
 0x1f0   : > { %v1667_v16 = vpop.f32.mrf.mxu0 }
 0x1f1   : > { %2769 = vmatmul.msk.bf16.gmra.mxu2 %vm912_vm5, %v3217_v25 }
 0x1f2   : > { %v1726_v29 = vpop.f32.mrf.mxu1 }
 0x1f3   : > { %v1805_v21 = vadd.f32 %v1726_v29, %v3520_v45 }
 0x1f4   : > { %v1527_v28 = vpop.f32.mrf.mxu3  ;;  %v1853_v50 = vpop.f32.mrf.mxu2 }
 0x1f5   : > { %v1561_v63 = vadd.f32 %v1527_v28, %v1432_v30  ;;  %v1933_v62 = vadd.f32 %v1853_v50, %v1804_v3 }
 0x1f7   : > { %v3781_v2 = vadd.f32 %v1667_v16, %v1561_v63 }
 0x1f8   : > { %v2127_v9 = vpop.f32.mrf.mxu0 }
 0x1f9   : > { %2786 = vmatmul.msk.bf16.gmra.mxu3 %vm912_vm5, %v3243_v13 }
 0x1fa   : > { %v1729_v54 = vpop.f32.mrf.mxu1 }
 0x1fb   : > { %2803 = vmatmul.msk.bf16.gmra.mxu0 %vm912_vm5, %v3531_v14  ;;  %v1806_v28 = vadd.f32 %v1729_v54, %v3533_v38 }
 0x1fc   : > { %v1993_v57 = vpop.f32.mrf.mxu3  ;;  %v1855_v25 = vpop.f32.mrf.mxu2 }
 0x1fd   : > { %v2073_v20 = vadd.f32 %v1993_v57, %v1933_v62  ;;  %2753 = vmatmul.msk.bf16.gmra.mxu1 %vm912_vm5, %v3531_v14  ;;  %v1934_v24 = vadd.f32 %v1855_v25, %v1805_v21 }
 0x1ff   : > { %v2207_v5 = vadd.f32 %v2127_v9, %v2073_v20 }
 0x200   : > { %v2129_v13 = vpop.f32.mrf.mxu0 }
 0x201   : > { %v2243_v36 = vadd.f32 %v3790_v43, %v2207_v5  ;;  %2770 = vmatmul.msk.bf16.gmra.mxu2 %vm912_vm5, %v3283_v41 }
 0x202   : > { %v1731_v33 = vpop.f32.mrf.mxu1 }
 0x203   : > { %v2458_v14 = vpack.c.bf16 %v2243_v36, %v2243_v36  ;;  %v2352_v50 = vmul.f32 %v2243_v36, %v2243_v36  ;;  %v2283_v62 = vsel %vm2282_vm8, %v2243_v36, 0.0 }
 0x204   : > { %v1995_v30 = vpop.f32.mrf.mxu3  ;;  %v1858_v16 = vpop.f32.mrf.mxu2 }
 0x205   : > { %2491 = vst.msk [vmem:[%s3803_s27] sm:$0xf] %vm2490_vm7, %v2458_v14  ;;  %v2074_v45 = vadd.f32 %v1995_v30, %v1934_v24  ;;  %v1935_v3 = vadd.f32 %v1858_v16, %v1806_v28  ;;  %v2384_v21 = vsel %vm2282_vm8, %v2352_v50, 0.0  ;;  %v1807_v14 = vadd.f32 %v1731_v33, %v3538_v40 }
 0x207   : > { %v2208_v29 = vadd.f32 %v2129_v13, %v2074_v45 }
 0x208   : > { %v2132_v41 = vpop.f32.mrf.mxu0 }
 0x209   : > { %v2244_v63 = vadd.f32 %v3790_v43, %v2208_v29  ;;  %2787 = vmatmul.msk.bf16.gmra.mxu3 %vm912_vm5, %v3313_v47 }
 0x20a   : > { %v1734_v9 = vpop.f32.mrf.mxu1 }
 0x20b   : > { %v2284_v57 = vsel %vm2282_vm8, %v2244_v63, 0.0  ;;  %v2353_v25 = vmul.f32 %v2244_v63, %v2244_v63  ;;  %v2459_v20 = vpack.c.bf16 %v2244_v63, %v2244_v63  ;;  %2804 = vmatmul.msk.bf16.gmra.mxu0 %vm912_vm5, %v3550_v6 }
 0x20c   : > { %v2285_v38 = vadd.f32 %v2284_v57, %v2283_v62  ;;  %v1998_v54 = vpop.f32.mrf.mxu3  ;;  %v1860_v5 = vpop.f32.mrf.mxu2 }
 0x20d   : > { %v2385_v13 = vsel %vm2282_vm8, %v2353_v25, 0.0  ;;  %2492 = vst.msk [vmem:[%s3803_s27 + $0x4] sm:$0xf] %vm2490_vm7, %v2459_v20  ;;  %v2075_v47 = vadd.f32 %v1998_v54, %v1935_v3  ;;  %2754 = vmatmul.msk.bf16.gmra.mxu1 %vm912_vm5, %v3550_v6  ;;  %v1936_v45 = vadd.f32 %v1860_v5, %v1807_v14  ;;  %v1808_v25 = vadd.f32 %v1734_v9, %v3552_v4 }
 0x20e   : > { %v2386_v36 = vadd.f32 %v2385_v13, %v2384_v21 }
 0x20f   : > { %v2209_v24 = vadd.f32 %v2132_v41, %v2075_v47 }
 0x210   : > { %v2134_v30 = vpop.f32.mrf.mxu0 }
 0x211   : > { %v2245_v16 = vadd.f32 %v3790_v43, %v2209_v24  ;;  %2771 = vmatmul.msk.bf16.gmra.mxu2 %vm912_vm5, %v3092_v19 }
 0x212   : > { %v1736_v29 = vpop.f32.mrf.mxu1 }
 0x213   : > { %v2286_v28 = vsel %vm2282_vm8, %v2245_v16, 0.0  ;;  %v2354_v50 = vmul.f32 %v2245_v16, %v2245_v16  ;;  %v2460_v63 = vpack.c.bf16 %v2245_v16, %v2245_v16 }
 0x214   : > { %v2287_v3 = vadd.f32 %v2286_v28, %v2285_v38  ;;  %v2000_v62 = vpop.f32.mrf.mxu3  ;;  %v1863_v6 = vpop.f32.mrf.mxu2 }
 0x215   : > { %v2387_v57 = vsel %vm2282_vm8, %v2354_v50, 0.0  ;;  %2493 = vst.msk [vmem:[%s3803_s27 + $0x8] sm:$0xf] %vm2490_vm7, %v2460_v63  ;;  %v2076_v40 = vadd.f32 %v2000_v62, %v1936_v45  ;;  %v1937_v54 = vadd.f32 %v1863_v6, %v1808_v25 }
 0x216   : > { %v2388_v33 = vadd.f32 %v2387_v57, %v2386_v36 }
 0x217   : > { %v2210_v41 = vadd.f32 %v2134_v30, %v2076_v40  ;;  %v1809_v30 = vadd.f32 %v1736_v29, %v3557_v27 }
 0x218   : > { %v2137_v20 = vpop.f32.mrf.mxu0 }
 0x219   : > { %v2246_v19 = vadd.f32 %v3790_v43, %v2210_v41  ;;  %2788 = vmatmul.msk.bf16.gmra.mxu3 %vm912_vm5, %v3120_v49 }
 0x21a   : > { %v1739_v38 = vpop.f32.mrf.mxu1 }
 0x21b   : > { %v2288_v5 = vsel %vm2282_vm8, %v2246_v19, 0.0  ;;  %v2355_v21 = vmul.f32 %v2246_v19, %v2246_v19  ;;  %v2461_v13 = vpack.c.bf16 %v2246_v19, %v2246_v19  ;;  %2805 = vmatmul.msk.bf16.gmra.mxu0 %vm912_vm5, %v3568_v32  ;;  %v1810_v41 = vadd.f32 %v1739_v38, %v3570_v61 }
 0x21c   : > { %v2289_v47 = vadd.f32 %v2288_v5, %v2287_v3  ;;  %v2003_v36 = vpop.f32.mrf.mxu3  ;;  %v1865_v24 = vpop.f32.mrf.mxu2 }
 0x21d   : > { %v2389_v4 = vsel %vm2282_vm8, %v2355_v21, 0.0  ;;  %2494 = vst.msk [vmem:[%s3803_s27 + $0xc] sm:$0xf] %vm2490_vm7, %v2461_v13  ;;  %v2077_v9 = vadd.f32 %v2003_v36, %v1937_v54  ;;  %2755 = vmatmul.msk.bf16.gmra.mxu1 %vm912_vm5, %v3568_v32  ;;  %v1938_v28 = vadd.f32 %v1865_v24, %v1809_v30  ;;  %v4171_v13 = vld [vmem:[#allocation33_spill] sm:$0xff] }
 0x21e   : > { %v2390_v49 = vadd.f32 %v2389_v4, %v2388_v33 }
 0x21f   : > { %v2211_v14 = vadd.f32 %v2137_v20, %v2077_v9  ;;  %v4172_v9 = vld [vmem:[#allocation30_spill] sm:$0xff] }
 0x220   : > { %v2139_v16 = vpop.f32.mrf.mxu0 }
 0x221   : > { %v2247_v45 = vadd.f32 %v3790_v43, %v2211_v14  ;;  %2772 = vmatmul.msk.bf16.gmra.mxu2 %vm912_vm5, %v3169_v59 }
 0x222   : > { %v1741_v50 = vpop.f32.mrf.mxu1 }
 0x223   : > { %v2290_v63 = vsel %vm2282_vm8, %v2247_v45, 0.0  ;;  %v2356_v3 = vmul.f32 %v2247_v45, %v2247_v45  ;;  %v2462_v62 = vpack.c.bf16 %v2247_v45, %v2247_v45 }
 0x224   : > { %v2291_v6 = vadd.f32 %v2290_v63, %v2289_v47  ;;  %v2005_v57 = vpop.f32.mrf.mxu3  ;;  %v1868_v32 = vpop.f32.mrf.mxu2 }
 0x225   : > { %v2391_v40 = vsel %vm2282_vm8, %v2356_v3, 0.0  ;;  %2495 = vst.msk [vmem:[%s3803_s27 + $0x10] sm:$0xf] %vm2490_vm7, %v2462_v62  ;;  %v2078_v27 = vadd.f32 %v2005_v57, %v1938_v28  ;;  %v1939_v20 = vadd.f32 %v1868_v32, %v1810_v41 }
 0x226   : > { %v2392_v29 = vadd.f32 %v2391_v40, %v2390_v49  ;;  %v1811_v49 = vadd.f32 %v1741_v50, %v4172_v9 }
 0x227   : > { %v2212_v33 = vadd.f32 %v2139_v16, %v2078_v27 }
 0x228   : > { %v2142_v25 = vpop.f32.mrf.mxu0 }
 0x229   : > { %v2248_v59 = vadd.f32 %v3790_v43, %v2212_v33  ;;  %2789 = vmatmul.msk.bf16.gmra.mxu3 %vm912_vm5, %v3188_v37 }
 0x22a   : > { %v1744_v19 = vpop.f32.mrf.mxu1 }
 0x22b   : > { %v2292_v54 = vsel %vm2282_vm8, %v2248_v59, 0.0  ;;  %v2357_v5 = vmul.f32 %v2248_v59, %v2248_v59  ;;  %v2463_v21 = vpack.c.bf16 %v2248_v59, %v2248_v59  ;;  %2806 = vmatmul.msk.bf16.gmra.mxu0 %vm912_vm5, %v4171_v13 }
 0x22c   : > { %v2293_v47 = vadd.f32 %v2292_v54, %v2291_v6  ;;  %v2008_v36 = vpop.f32.mrf.mxu3  ;;  %v1870_v24 = vpop.f32.mrf.mxu2 }
 0x22d   : > { %v2393_v61 = vsel %vm2282_vm8, %v2357_v5, 0.0  ;;  %2496 = vst.msk [vmem:[%s3803_s27 + $0x14] sm:$0xf] %vm2490_vm7, %v2463_v21  ;;  %v2079_v38 = vadd.f32 %v2008_v36, %v1939_v20  ;;  %2756 = vmatmul.msk.bf16.gmra.mxu1 %vm912_vm5, %v4171_v13  ;;  %v1940_v16 = vadd.f32 %v1870_v24, %v1811_v49  ;;  %v4174_v20 = vld [vmem:[#allocation31_spill] sm:$0xff] }
 0x22e   : > { %v2394_v37 = vadd.f32 %v2393_v61, %v2392_v29  ;;  %v4173_v29 = vld [vmem:[#allocation34_spill] sm:$0xff]  ;;  %v387_v54 = vmul.f32 0.0, %v4174_v20 }
 0x22f   : > { %v2213_v4 = vadd.f32 %v2142_v25, %v2079_v38  ;;  %v1812_v33 = vadd.f32 %v1744_v19, %v4173_v29 }
 0x230   : > { %v2144_v14 = vpop.f32.mrf.mxu0 }
 0x231   : > { %v2249_v30 = vadd.f32 %v3790_v43, %v2213_v4  ;;  %2773 = vmatmul.msk.bf16.gmra.mxu2 %vm912_vm5, %v3234_v55  ;;  %v423_v4 = vpack.c.bf16 %v387_v54, %v387_v54 }
 0x232   : > { %v1746_v45 = vpop.f32.mrf.mxu1 }
 0x233   : > { %v2294_v28 = vsel %vm2282_vm8, %v2249_v30, 0.0  ;;  %v2358_v63 = vmul.f32 %v2249_v30, %v2249_v30  ;;  %v2464_v3 = vpack.c.bf16 %v2249_v30, %v2249_v30  ;;  %v1813_v49 = vadd.f32 %v1746_v45, %v3603_v23 }
 0x234   : > { %v2295_v62 = vadd.f32 %v2294_v28, %v2293_v47  ;;  %v2010_v6 = vpop.f32.mrf.mxu3  ;;  %v1873_v57 = vpop.f32.mrf.mxu2  ;;  %v4175_v47 = vld [vmem:[#allocation32_spill] sm:$0xff] }
 0x235   : > { %v2395_v32 = vsel %vm2282_vm8, %v2358_v63, 0.0  ;;  %2497 = vst.msk [vmem:[%s3803_s27 + $0x18] sm:$0xf] %vm2490_vm7, %v2464_v3  ;;  %v2080_v50 = vadd.f32 %v2010_v6, %v1940_v16  ;;  %v1941_v25 = vadd.f32 %v1873_v57, %v1812_v33  ;;  %v388_v19 = vmul.f32 0.0, %v4175_v47 }
 0x236   : > { %v2396_v40 = vadd.f32 %v2395_v32, %v2394_v37  ;;  %v495_v3 = vunpack.c.l.b16 %v423_v4 }
 0x237   : > { %v2214_v27 = vadd.f32 %v2144_v14, %v2080_v50  ;;  %v424_v14 = vpack.c.bf16 %v388_v19, %v388_v19 }
 0x238   : > { %v2147_v41 = vpop.f32.mrf.mxu0 }
 0x239   : > { %v2250_v55 = vadd.f32 %v3790_v43, %v2214_v27  ;;  %2790 = vmatmul.msk.bf16.gmra.mxu3 %vm912_vm5, %v3256_v48  ;;  %v496_v57 = vunpack.c.l.b16 %v424_v14 }
 0x23a   : > { %v1749_v59 = vpop.f32.mrf.mxu1 }
 0x23b   : > { %v2296_v5 = vsel %vm2282_vm8, %v2250_v55, 0.0  ;;  %v2359_v21 = vmul.f32 %v2250_v55, %v2250_v55  ;;  %v2465_v13 = vpack.c.bf16 %v2250_v55, %v2250_v55  ;;  %2807 = vmatmul.msk.bf16.gmra.mxu0 %vm912_vm5, %v3615_v1  ;;  %v1814_v33 = vadd.f32 %v1749_v59, %v3617_v7 }
 0x23c   : > { %v2297_v36 = vadd.f32 %v2296_v5, %v2295_v62  ;;  %v2013_v24 = vpop.f32.mrf.mxu3  ;;  %v1875_v61 = vpop.f32.mrf.mxu2 }
 0x23d   : > { %v2397_v38 = vsel %vm2282_vm8, %v2359_v21, 0.0  ;;  %2498 = vst.msk [vmem:[%s3803_s27 + $0x1c] sm:$0xf] %vm2490_vm7, %v2465_v13  ;;  %v2081_v48 = vadd.f32 %v2013_v24, %v1941_v25  ;;  %2757 = vmatmul.msk.bf16.gmra.mxu1 %vm912_vm5, %v3615_v1  ;;  %v1942_v28 = vadd.f32 %v1875_v61, %v1813_v49 }
 0x23e   : > { %v2398_v37 = vadd.f32 %v2397_v38, %v2396_v40 }
 0x23f   : > { %v2215_v9 = vadd.f32 %v2147_v41, %v2081_v48 }
 0x240   : > { %v2149_v30 = vpop.f32.mrf.mxu0 }
 0x241   : > { %v2251_v16 = vadd.f32 %v3790_v43, %v2215_v9  ;;  %2774 = vmatmul.msk.bf16.gmra.mxu2 %vm912_vm5, %v3320_v53  ;;  %v514_v53 = vpack.c.b16 %v496_v57, %v495_v3 }
 0x242   : > { %v1751_v63 = vpop.f32.mrf.mxu1 }
 0x243   : > { %v2298_v62 = vsel %vm2282_vm8, %v2251_v16, 0.0  ;;  %v2360_v6 = vmul.f32 %v2251_v16, %v2251_v16  ;;  %v2466_v1 = vpack.c.bf16 %v2251_v16, %v2251_v16  ;;  %v635_v13 = vshrl.u32 %v514_v53, 16 }
 0x244   : > { %v2299_v32 = vadd.f32 %v2298_v62, %v2297_v36  ;;  %v2015_v50 = vpop.f32.mrf.mxu3  ;;  %v1878_v40 = vpop.f32.mrf.mxu2  ;;  %v1815_v61 = vadd.f32 %v1751_v63, %v3622_v15  ;;  %v638_v48 = vshll.u32 %v514_v53, 16  ;;  %v1704_v15 = vrot.slane %v3628_v44, 1 }
 0x245   : > { %v2399_v23 = vsel %vm2282_vm8, %v2360_v6, 0.0  ;;  %2499 = vst.msk [vmem:[%s3803_s27 + $0x20] sm:$0xf] %vm2490_vm7, %v2466_v1  ;;  %v2082_v45 = vadd.f32 %v2015_v50, %v1942_v28  ;;  %v1943_v25 = vadd.f32 %v1878_v40, %v1814_v33  ;;  %v637_v38 = vrot.slane %v635_v13, 7 }
 0x246   : > { %v2400_v27 = vadd.f32 %v2399_v23, %v2398_v37  ;;  %v1705_v63 = vrot.slane %v3640_v17, 1 }
 0x247   : > { %v2216_v29 = vadd.f32 %v2149_v30, %v2082_v45 }
 0x248   : > { %v2152_v41 = vpop.f32.mrf.mxu0 }
 0x249   : > { %v2252_v55 = vadd.f32 %v3790_v43, %v2216_v29  ;;  %2791 = vmatmul.msk.bf16.gmra.mxu3 %vm912_vm5, %v3333_v26 }
 0x24a   : > { %v1754_v20 = vpop.f32.mrf.mxu1 }
 0x24b   : > { %v2300_v54 = vsel %vm2282_vm8, %v2252_v55, 0.0  ;;  %v2361_v5 = vmul.f32 %v2252_v55, %v2252_v55  ;;  %v2467_v21 = vpack.c.bf16 %v2252_v55, %v2252_v55  ;;  %2808 = vmatmul.msk.bf16.gmra.mxu0 %vm912_vm5, %v3643_v34  ;;  %v1816_v50 = vadd.f32 %v1754_v20, %v3645_v35 }
 0x24c   : > { %v2301_v47 = vadd.f32 %v2300_v54, %v2299_v32  ;;  %v2018_v7 = vpop.f32.mrf.mxu3  ;;  %v1880_v59 = vpop.f32.mrf.mxu2  ;;  %v715_v35 = vsel %vm3059_vm4, %v637_v38, 0 }
 0x24d   : > { %v2401_v19 = vsel %vm2282_vm8, %v2361_v5, 0.0  ;;  %2500 = vst.msk [vmem:[%s3803_s27 + $0x24] sm:$0xf] %vm2490_vm7, %v2467_v21  ;;  %v2083_v36 = vadd.f32 %v2018_v7, %v1943_v25  ;;  %2758 = vmatmul.msk.bf16.gmra.mxu1 %vm912_vm5, %v3643_v34  ;;  %v1944_v9 = vadd.f32 %v1880_v59, %v1815_v61  ;;  %v640_v34 = vor.u32 %v638_v48, %v637_v38 }
 0x24e   : > { %v2402_v26 = vadd.f32 %v2401_v19, %v2400_v27  ;;  %v1706_v27 = vsel %vm1210_vm6, %v1704_v15, %v1705_v63  ;;  %v1972_v7 = vshll.u32 %v715_v35, 16 }
 0x24f   : > { %v2217_v24 = vadd.f32 %v2152_v41, %v2083_v36  ;;  %v697_v23 = vsel %vm3059_vm4, 0, %v640_v34  ;;  %v2108_v34 = vrot.slane %v715_v35, 1 }
 0x250   : > { %v2154_v37 = vpop.f32.mrf.mxu0  ;;  %v1967_v33 = vshll.u32 %v697_v23, 16  ;;  %v1965_v13 = vshrl.u32 %v697_v23, 16  ;;  %v1974_v38 = vrot.slane %v1972_v7, 1 }
 0x251   : > { %v2253_v4 = vadd.f32 %v3790_v43, %v2217_v24  ;;  %2775 = vmatmul.msk.bf16.gmra.mxu2 %vm912_vm5, %v3628_v44 }
 0x252   : > { %v1756_v49 = vpop.f32.mrf.mxu1 }
 0x253   : > { %v2302_v14 = vsel %vm2282_vm8, %v2253_v4, 0.0  ;;  %v2362_v30 = vmul.f32 %v2253_v4, %v2253_v4  ;;  %v2468_v16 = vpack.c.bf16 %v2253_v4, %v2253_v4  ;;  %v1817_v19 = vadd.f32 %v1756_v49, %v3652_v58 }
 0x254   : > { %v2303_v28 = vadd.f32 %v2302_v14, %v2301_v47  ;;  %v2020_v3 = vpop.f32.mrf.mxu3  ;;  %v1883_v62 = vpop.f32.mrf.mxu2  ;;  %v1969_v47 = vrot.slane %v1967_v33, 1 }
 0x255   : > { %v2403_v6 = vsel %vm2282_vm8, %v2362_v30, 0.0  ;;  %2501 = vst.msk [vmem:[%s3803_s27 + $0x28] sm:$0xf] %vm2490_vm7, %v2468_v16  ;;  %v2084_v1 = vadd.f32 %v2020_v3, %v1944_v9  ;;  %v1945_v17 = vadd.f32 %v1883_v62, %v1816_v50  ;;  %v2107_v16 = vrot.slane %v697_v23, 1 }
 0x256   : > { %v2404_v57 = vadd.f32 %v2403_v6, %v2402_v26  ;;  %v1970_v61 = vor.u32 %v1969_v47, %v1965_v13 }
 0x257   : > { %v2218_v32 = vadd.f32 %v2154_v37, %v2084_v1  ;;  %v2109_v1 = vsel %vm1210_vm6, %v2107_v16, %v2108_v34 }
 0x258   : > { %v2157_v45 = vpop.f32.mrf.mxu0  ;;  %v1975_v15 = vsel %vm717_vm3, %v1970_v61, %v1974_v38 }
 0x259   : > { %v2254_v44 = vadd.f32 %v3790_v43, %v2218_v32  ;;  %2792 = vmatmul.msk.bf16.gmra.mxu3 %vm912_vm5, %v3655_v60 }
 0x25a   : > { %v1759_v29 = vpop.f32.mrf.mxu1 }
 0x25b   : > { %v2304_v53 = vsel %vm2282_vm8, %v2254_v44, 0.0  ;;  %v2363_v41 = vmul.f32 %v2254_v44, %v2254_v44  ;;  %v2469_v55 = vpack.c.bf16 %v2254_v44, %v2254_v44  ;;  %2809 = vmatmul.msk.bf16.gmra.mxu0 %vm912_vm5, %v1706_v27  ;;  %v1818_v62 = vadd.f32 %v1759_v29, %v3664_v39 }
 0x25c   : > { %v2305_v25 = vadd.f32 %v2304_v53, %v2303_v28  ;;  %v2023_v20 = vpop.f32.mrf.mxu3  ;;  %v1885_v54 = vpop.f32.mrf.mxu2 }
 0x25d   : > { %v2405_v5 = vsel %vm2282_vm8, %v2363_v41, 0.0  ;;  %2502 = vst.msk [vmem:[%s3803_s27 + $0x2c] sm:$0xf] %vm2490_vm7, %v2469_v55  ;;  %v2085_v60 = vadd.f32 %v2023_v20, %v1945_v17  ;;  %2759 = vmatmul.msk.bf16.gmra.mxu1 %vm912_vm5, %v1706_v27  ;;  %v1946_v24 = vadd.f32 %v1885_v54, %v1817_v19 }
 0x25e   : > { %v2406_v21 = vadd.f32 %v2405_v5, %v2404_v57 }
 0x25f   : > { %v2219_v59 = vadd.f32 %v2157_v45, %v2085_v60 }
 0x260   : > { %v2159_v36 = vpop.f32.mrf.mxu0 }
 0x261   : > { %v2255_v26 = vadd.f32 %v3790_v43, %v2219_v59  ;;  %2776 = vmatmul.msk.bf16.gmra.mxu2 %vm912_vm5, %v697_v23 }
 0x262   : > { %v1761_v48 = vpop.f32.mrf.mxu1 }
 0x263   : > { %v2306_v37 = vsel %vm2282_vm8, %v2255_v26, 0.0  ;;  %v2364_v4 = vmul.f32 %v2255_v26, %v2255_v26  ;;  %v2470_v9 = vpack.c.bf16 %v2255_v26, %v2255_v26  ;;  %v1819_v41 = vadd.f32 %v1761_v48, %v3669_v22 }
 0x264   : > { %v2307_v14 = vadd.f32 %v2306_v37, %v2305_v25  ;;  %v2025_v30 = vpop.f32.mrf.mxu3  ;;  %v1888_v28 = vpop.f32.mrf.mxu2 }
 0x265   : > { %v2407_v58 = vsel %vm2282_vm8, %v2364_v4, 0.0  ;;  %2503 = vst.msk [vmem:[%s3803_s27 + $0x30] sm:$0xf] %vm2490_vm7, %v2470_v9  ;;  %v2086_v49 = vadd.f32 %v2025_v30, %v1946_v24  ;;  %v1947_v32 = vadd.f32 %v1888_v28, %v1818_v62 }
 0x266   : > { %v2408_v3 = vadd.f32 %v2407_v58, %v2406_v21 }
 0x267   : > { %v2220_v63 = vadd.f32 %v2159_v36, %v2086_v49 }
 0x268   : > { %v2162_v6 = vpop.f32.mrf.mxu0 }
 0x269   : > { %v2256_v57 = vadd.f32 %v3790_v43, %v2220_v63  ;;  %2793 = vmatmul.msk.bf16.gmra.mxu3 %vm912_vm5, %v1975_v15 }
 0x26a   : > { %v1764_v50 = vpop.f32.mrf.mxu1 }
 0x26b   : > { %v2308_v40 = vsel %vm2282_vm8, %v2256_v57, 0.0  ;;  %v2365_v23 = vmul.f32 %v2256_v57, %v2256_v57  ;;  %v2471_v45 = vpack.c.bf16 %v2256_v57, %v2256_v57  ;;  %2810 = vmatmul.msk.bf16.gmra.mxu0 %vm912_vm5, %v2109_v1  ;;  %v1820_v36 = vadd.f32 %v1764_v50, %v3678_v8 }
 0x26c   : > { %v2309_v27 = vadd.f32 %v2308_v40, %v2307_v14  ;;  %v2028_v44 = vpop.f32.mrf.mxu3  ;;  %v1890_v17 = vpop.f32.mrf.mxu2 }
 0x26d   : > { %v2409_v39 = vsel %vm2282_vm8, %v2365_v23, 0.0  ;;  %2504 = vst.msk [vmem:[%s3803_s27 + $0x34] sm:$0xf] %vm2490_vm7, %v2471_v45  ;;  %v2087_v29 = vadd.f32 %v2028_v44, %v1947_v32  ;;  %v1948_v25 = vadd.f32 %v1890_v17, %v1819_v41 }
 0x26e   : > { %v2410_v33 = vadd.f32 %v2409_v39, %v2408_v3 }
 0x26f   : > { %v2221_v53 = vadd.f32 %v2162_v6, %v2087_v29 }
 0x270   : > { %v2164_v55 = vpop.f32.mrf.mxu0 }
 0x271   : > { %v2257_v35 = vadd.f32 %v3790_v43, %v2221_v53 }
 0x272   : > { %v1766_v20 = vpop.f32.mrf.mxu1 }
 0x273   : > { %v2310_v54 = vsel %vm2282_vm8, %v2257_v35, 0.0  ;;  %v2366_v5 = vmul.f32 %v2257_v35, %v2257_v35  ;;  %v2472_v60 = vpack.c.bf16 %v2257_v35, %v2257_v35  ;;  %v1821_v58 = vadd.f32 %v1766_v20, %v3683_v10 }
 0x274   : > { %v2311_v21 = vadd.f32 %v2310_v54, %v2309_v27  ;;  %v2030_v13 = vpop.f32.mrf.mxu3  ;;  %v1893_v47 = vpop.f32.mrf.mxu2 }
 0x275   : > { %v2411_v7 = vsel %vm2282_vm8, %v2366_v5, 0.0  ;;  %2505 = vst.msk [vmem:[%s3803_s27 + $0x38] sm:$0xf] %vm2490_vm7, %v2472_v60  ;;  %v2088_v59 = vadd.f32 %v2030_v13, %v1948_v25  ;;  %v1949_v61 = vadd.f32 %v1893_v47, %v1820_v36 }
 0x276   : > { %v2412_v19 = vadd.f32 %v2411_v7, %v2410_v33 }
 0x277   : > { %v2222_v22 = vadd.f32 %v2164_v55, %v2088_v59 }
 0x278   : > { %v2167_v26 = vpop.f32.mrf.mxu0 }
 0x279   : > { %v2258_v24 = vadd.f32 %v3790_v43, %v2222_v22 }
 0x27a   : > { %v1769_v38 = vpop.f32.mrf.mxu1 }
 0x27b   : > { %v2312_v48 = vsel %vm2282_vm8, %v2258_v24, 0.0  ;;  %v2367_v37 = vmul.f32 %v2258_v24, %v2258_v24  ;;  %v2473_v4 = vpack.c.bf16 %v2258_v24, %v2258_v24  ;;  %v1822_v27 = vadd.f32 %v1769_v38, %v3692_v51 }
 0x27c   : > { %v2313_v9 = vadd.f32 %v2312_v48, %v2311_v21  ;;  %v2033_v14 = vpop.f32.mrf.mxu3  ;;  %v1895_v30 = vpop.f32.mrf.mxu2 }
 0x27d   : > { %v2413_v16 = vsel %vm2282_vm8, %v2367_v37, 0.0  ;;  %2506 = vst.msk [vmem:[%s3803_s27 + $0x3c] sm:$0xf] %vm2490_vm7, %v2473_v4  ;;  %v2089_v34 = vadd.f32 %v2033_v14, %v1949_v61  ;;  %v1950_v15 = vadd.f32 %v1895_v30, %v1821_v58 }
 0x27e   : > { %v2414_v28 = vadd.f32 %v2413_v16, %v2412_v19 }
 0x27f   : > { %v2223_v8 = vadd.f32 %v2167_v26, %v2089_v34 }
 0x280   : > { %v2169_v49 = vpop.f32.mrf.mxu0 }
 0x281   : > { %v2259_v3 = vadd.f32 %v3790_v43, %v2223_v8 }
 0x282   : > { %v1771_v63 = vpop.f32.mrf.mxu1 }
 0x283   : > { %v2314_v62 = vsel %vm2282_vm8, %v2259_v3, 0.0  ;;  %v2368_v6 = vmul.f32 %v2259_v3, %v2259_v3  ;;  %v2474_v1 = vpack.c.bf16 %v2259_v3, %v2259_v3  ;;  %v1823_v60 = vadd.f32 %v1771_v63, %v3697_v11 }
 0x284   : > { %v2315_v57 = vadd.f32 %v2314_v62, %v2313_v9  ;;  %v2035_v32 = vpop.f32.mrf.mxu3  ;;  %v1898_v50 = vpop.f32.mrf.mxu2 }
 0x285   : > { %v2415_v40 = vsel %vm2282_vm8, %v2368_v6, 0.0  ;;  %2507 = vst.msk [vmem:[%s3803_s27 + $0x40] sm:$0xf] %vm2490_vm7, %v2474_v1  ;;  %v2090_v23 = vadd.f32 %v2035_v32, %v1950_v15  ;;  %v1951_v39 = vadd.f32 %v1898_v50, %v1822_v27 }
 0x286   : > { %v2416_v45 = vadd.f32 %v2415_v40, %v2414_v28 }
 0x287   : > { %v2224_v10 = vadd.f32 %v2169_v49, %v2090_v23 }
 0x288   : > { %v2172_v44 = vpop.f32.mrf.mxu0 }
 0x289   : > { %v2260_v17 = vadd.f32 %v3790_v43, %v2224_v10 }
 0x28a   : > { %v1774_v29 = vpop.f32.mrf.mxu1 }
 0x28b   : > { %v2316_v33 = vsel %vm2282_vm8, %v2260_v17, 0.0  ;;  %v2369_v53 = vmul.f32 %v2260_v17, %v2260_v17  ;;  %v2475_v41 = vpack.c.bf16 %v2260_v17, %v2260_v17  ;;  %v1824_v37 = vadd.f32 %v1774_v29, %v3706_v56 }
 0x28c   : > { %v2317_v55 = vadd.f32 %v2316_v33, %v2315_v57  ;;  %v2038_v35 = vpop.f32.mrf.mxu3  ;;  %v1900_v25 = vpop.f32.mrf.mxu2 }
 0x28d   : > { %v2417_v20 = vsel %vm2282_vm8, %v2369_v53, 0.0  ;;  %2508 = vst.msk [vmem:[%s3803_s27 + $0x44] sm:$0xf] %vm2490_vm7, %v2475_v41  ;;  %v2091_v54 = vadd.f32 %v2038_v35, %v1951_v39  ;;  %v1952_v47 = vadd.f32 %v1900_v25, %v1823_v60 }
 0x28e   : > { %v2418_v5 = vadd.f32 %v2417_v20, %v2416_v45 }
 0x28f   : > { %v2225_v51 = vadd.f32 %v2172_v44, %v2091_v54 }
 0x290   : > { %v2174_v21 = vpop.f32.mrf.mxu0 }
 0x291   : > { %v2261_v13 = vadd.f32 %v3790_v43, %v2225_v51 }
 0x292   : > { %v1776_v7 = vpop.f32.mrf.mxu1 }
 0x293   : > { %v2318_v59 = vsel %vm2282_vm8, %v2261_v13, 0.0  ;;  %v2370_v19 = vmul.f32 %v2261_v13, %v2261_v13  ;;  %v2476_v22 = vpack.c.bf16 %v2261_v13, %v2261_v13  ;;  %v1825_v62 = vadd.f32 %v1776_v7, %v3711_v18 }
 0x294   : > { %v2319_v36 = vadd.f32 %v2318_v59, %v2317_v55  ;;  %v2040_v26 = vpop.f32.mrf.mxu3  ;;  %v1903_v24 = vpop.f32.mrf.mxu2 }
 0x295   : > { %v2419_v61 = vsel %vm2282_vm8, %v2370_v19, 0.0  ;;  %2509 = vst.msk [vmem:[%s3803_s27 + $0x48] sm:$0xf] %vm2490_vm7, %v2476_v22  ;;  %v2092_v38 = vadd.f32 %v2040_v26, %v1952_v47  ;;  %v1953_v14 = vadd.f32 %v1903_v24, %v1824_v37 }
 0x296   : > { %v2420_v48 = vadd.f32 %v2419_v61, %v2418_v5 }
 0x297   : > { %v2226_v11 = vadd.f32 %v2174_v21, %v2092_v38 }
 0x298   : > { %v2177_v4 = vpop.f32.mrf.mxu0 }
 0x299   : > { %v2262_v9 = vadd.f32 %v3790_v43, %v2226_v11 }
 0x29a   : > { %v1779_v30 = vpop.f32.mrf.mxu1 }
 0x29b   : > { %v2320_v16 = vsel %vm2282_vm8, %v2262_v9, 0.0  ;;  %v2371_v34 = vmul.f32 %v2262_v9, %v2262_v9  ;;  %v2477_v28 = vpack.c.bf16 %v2262_v9, %v2262_v9  ;;  %v1826_v29 = vadd.f32 %v1779_v30, %v3720_v42  ;;  %v4177_v9 = vld [vmem:[#allocation20_spill] sm:$0xff] }
 0x29c   : > { %v2321_v8 = vadd.f32 %v2320_v16, %v2319_v36  ;;  %v2043_v58 = vpop.f32.mrf.mxu3  ;;  %v1905_v49 = vpop.f32.mrf.mxu2 }
 0x29d   : > { %v2421_v3 = vsel %vm2282_vm8, %v2371_v34, 0.0  ;;  %2510 = vst.msk [vmem:[%s3803_s27 + $0x4c] sm:$0xf] %vm2490_vm7, %v2477_v28  ;;  %v2093_v15 = vadd.f32 %v2043_v58, %v1953_v14  ;;  %v1954_v57 = vadd.f32 %v1905_v49, %v1825_v62 }
 0x29e   : > { %v2422_v63 = vadd.f32 %v2421_v3, %v2420_v48 }
 0x29f   : > { %v2227_v56 = vadd.f32 %v2177_v4, %v2093_v15 }
 0x2a0   : > { %v2179_v6 = vpop.f32.mrf.mxu0 }
 0x2a1   : > { %v2263_v1 = vadd.f32 %v3790_v43, %v2227_v56 }
 0x2a2   : > { %v1781_v32 = vpop.f32.mrf.mxu1 }
 0x2a3   : > { %v2322_v50 = vsel %vm2282_vm8, %v2263_v1, 0.0  ;;  %v2372_v40 = vmul.f32 %v2263_v1, %v2263_v1  ;;  %v2478_v23 = vpack.c.bf16 %v2263_v1, %v2263_v1  ;;  %v1827_v47 = vadd.f32 %v1781_v32, %v3725_v0 }
 0x2a4   : > { %v2323_v45 = vadd.f32 %v2322_v50, %v2321_v8  ;;  %v2045_v10 = vpop.f32.mrf.mxu3  ;;  %v1908_v27 = vpop.f32.mrf.mxu2 }
 0x2a5   : > { %v2423_v44 = vsel %vm2282_vm8, %v2372_v40, 0.0  ;;  %2511 = vst.msk [vmem:[%s3803_s27 + $0x50] sm:$0xf] %vm2490_vm7, %v2478_v23  ;;  %v2094_v17 = vadd.f32 %v2045_v10, %v1954_v57  ;;  %v1955_v41 = vadd.f32 %v1908_v27, %v1826_v29  ;;  %v4178_v57 = vld [vmem:[#allocation4_spill] sm:$0xff] }
 0x2a6   : > { %v2424_v39 = vadd.f32 %v2423_v44, %v2422_v63 }
 0x2a7   : > { %v2228_v18 = vadd.f32 %v2179_v6, %v2094_v17 }
 0x2a8   : > { %v2182_v33 = vpop.f32.mrf.mxu0 }
 0x2a9   : > { %v2264_v53 = vadd.f32 %v3790_v43, %v2228_v18 }
 0x2aa   : > { %v1784_v55 = vpop.f32.mrf.mxu1 }
 0x2ab   : > { %v2324_v35 = vsel %vm2282_vm8, %v2264_v53, 0.0  ;;  %v2373_v25 = vmul.f32 %v2264_v53, %v2264_v53  ;;  %v2479_v20 = vpack.c.bf16 %v2264_v53, %v2264_v53  ;;  %v1828_v14 = vadd.f32 %v1784_v55, %v4177_v9  ;;  %v4179_v55 = vld [vmem:[#allocation13_spill] sm:$0xff] }
 0x2ac   : > { %v2325_v54 = vadd.f32 %v2324_v35, %v2323_v45  ;;  %v2048_v5 = vpop.f32.mrf.mxu3  ;;  %v1910_v51 = vpop.f32.mrf.mxu2 }
 0x2ad   : > { %v2425_v60 = vsel %vm2282_vm8, %v2373_v25, 0.0  ;;  %2512 = vst.msk [vmem:[%s3803_s27 + $0x54] sm:$0xf] %vm2490_vm7, %v2479_v20  ;;  %v2095_v21 = vadd.f32 %v2048_v5, %v1955_v41  ;;  %v1956_v19 = vadd.f32 %v1910_v51, %v1827_v47 }
 0x2ae   : > { %v2426_v13 = vadd.f32 %v2425_v60, %v2424_v39 }
 0x2af   : > { %v2229_v42 = vadd.f32 %v2182_v33, %v2095_v21 }
 0x2b0   : > { %v2184_v7 = vpop.f32.mrf.mxu0 }
 0x2b1   : > { %v2265_v59 = vadd.f32 %v3790_v43, %v2229_v42 }
 0x2b2   : > { %v1786_v22 = vpop.f32.mrf.mxu1 }
 0x2b3   : > { %v2326_v36 = vsel %vm2282_vm8, %v2265_v59, 0.0  ;;  %v2374_v26 = vmul.f32 %v2265_v59, %v2265_v59  ;;  %v2480_v24 = vpack.c.bf16 %v2265_v59, %v2265_v59  ;;  %v1829_v32 = vadd.f32 %v1786_v22, %v4178_v57 }
 0x2b4   : > { %v2327_v61 = vadd.f32 %v2326_v36, %v2325_v54  ;;  %v2050_v38 = vpop.f32.mrf.mxu3  ;;  %v1913_v48 = vpop.f32.mrf.mxu2 }
 0x2b5   : > { %v2427_v11 = vsel %vm2282_vm8, %v2374_v26, 0.0  ;;  %2513 = vst.msk [vmem:[%s3803_s27 + $0x58] sm:$0xf] %vm2490_vm7, %v2480_v24  ;;  %v2096_v37 = vadd.f32 %v2050_v38, %v1956_v19  ;;  %v1957_v34 = vadd.f32 %v1913_v48, %v1828_v14 }
 0x2b6   : > { %v2428_v4 = vadd.f32 %v2427_v11, %v2426_v13 }
 0x2b7   : > { %v2230_v0 = vadd.f32 %v2184_v7, %v2096_v37 }
 0x2b8   : > { %v2187_v30 = vpop.f32.mrf.mxu0 }
 0x2b9   : > { %v2266_v16 = vadd.f32 %v3790_v43, %v2230_v0 }
 0x2ba   : > { %v1789_v28 = vpop.f32.mrf.mxu1 }
 0x2bb   : > { %v2328_v8 = vsel %vm2282_vm8, %v2266_v16, 0.0  ;;  %v2375_v58 = vmul.f32 %v2266_v16, %v2266_v16  ;;  %v2481_v49 = vpack.c.bf16 %v2266_v16, %v2266_v16  ;;  %v1830_v35 = vadd.f32 %v1789_v28, %v4179_v55  ;;  %v2932_v55 = vld [vmem:[%s4075_s2] ss:$0 sm:$0xff] }
 0x2bc   : > { %v2329_v3 = vadd.f32 %v2328_v8, %v2327_v61  ;;  %v2053_v15 = vpop.f32.mrf.mxu3  ;;  %v1915_v63 = vpop.f32.mrf.mxu2 }
 0x2bd   : > { %v2429_v56 = vsel %vm2282_vm8, %v2375_v58, 0.0  ;;  %2514 = vst.msk [vmem:[%s3803_s27 + $0x5c] sm:$0xf] %vm2490_vm7, %v2481_v49  ;;  %v2097_v62 = vadd.f32 %v2053_v15, %v1957_v34  ;;  %v1958_v23 = vadd.f32 %v1915_v63, %v1829_v32  ;;  %v2957_v49 = vmov 0.0  }
 0x2be   : > { %v2430_v6 = vadd.f32 %v2429_v56, %v2428_v4  ;;  %2280 = vst.msk [vmem:[%s4028_s7] sm:$0x3] %vm2279_vm9, %v2957_v49 }
 0x2bf   : > { %v2231_v1 = vadd.f32 %v2187_v30, %v2097_v62 }
 0x2c0   : > { %v2189_v50 = vpop.f32.mrf.mxu0 }
 0x2c1   : > { %v2267_v40 = vadd.f32 %v3790_v43, %v2231_v1 }
 0x2c2   : > { %v1791_v44 = vpop.f32.mrf.mxu1 }
 0x2c3   : > { %v2330_v45 = vsel %vm2282_vm8, %v2267_v40, 0.0  ;;  %v2376_v10 = vmul.f32 %v2267_v40, %v2267_v40  ;;  %v2482_v27 = vpack.c.bf16 %v2267_v40, %v2267_v40  ;;  %v1831_v36 = vadd.f32 %v1791_v44, %v3753_v46 }
 0x2c4   : > { %v2331_v17 = vadd.f32 %v2330_v45, %v2329_v3  ;;  %v2055_v39 = vpop.f32.mrf.mxu3  ;;  %v1918_v18 = vpop.f32.mrf.mxu2 }
 0x2c5   : > { %v2431_v29 = vsel %vm2282_vm8, %v2376_v10, 0.0  ;;  %2515 = vst.msk [vmem:[%s3803_s27 + $0x60] sm:$0xf] %vm2490_vm7, %v2482_v27  ;;  %v2098_v33 = vadd.f32 %v2055_v39, %v1958_v23  ;;  %v1959_v54 = vadd.f32 %v1918_v18, %v1830_v35 }
 0x2c6   : > { %v2432_v53 = vadd.f32 %v2431_v29, %v2430_v6 }
 0x2c7   : > { %v2232_v41 = vadd.f32 %v2189_v50, %v2098_v33 }
 0x2c8   : > { %v2192_v25 = vpop.f32.mrf.mxu0 }
 0x2c9   : > { %v2268_v20 = vadd.f32 %v3790_v43, %v2232_v41 }
 0x2ca   : > { %v1794_v59 = vpop.f32.mrf.mxu1 }
 0x2cb   : > { %v2332_v5 = vsel %vm2282_vm8, %v2268_v20, 0.0  ;;  %v2377_v51 = vmul.f32 %v2268_v20, %v2268_v20  ;;  %v2483_v60 = vpack.c.bf16 %v2268_v20, %v2268_v20  ;;  %v1832_v46 = vadd.f32 %v1794_v59, %v3762_v52 }
 0x2cc   : > { %v2333_v21 = vadd.f32 %v2332_v5, %v2331_v17  ;;  %v2058_v13 = vpop.f32.mrf.mxu3  ;;  %v1920_v42 = vpop.f32.mrf.mxu2 }
 0x2cd   : > { %v2433_v47 = vsel %vm2282_vm8, %v2377_v51, 0.0  ;;  %2516 = vst.msk [vmem:[%s3803_s27 + $0x64] sm:$0xf] %vm2490_vm7, %v2483_v60  ;;  %v2099_v7 = vadd.f32 %v2058_v13, %v1959_v54  ;;  %v1960_v61 = vadd.f32 %v1920_v42, %v1831_v36 }
 0x2ce   : > { %v2434_v19 = vadd.f32 %v2433_v47, %v2432_v53 }
 0x2cf   : > { %v2233_v22 = vadd.f32 %v2192_v25, %v2099_v7 }
 0x2d0   : > { %v2194_v26 = vpop.f32.mrf.mxu0 }
 0x2d1   : > { %v2269_v24 = vadd.f32 %v3790_v43, %v2233_v22 }
 0x2d2   : > { %v1796_v34 = vpop.f32.mrf.mxu1 }
 0x2d3   : > { %v2334_v38 = vsel %vm2282_vm8, %v2269_v24, 0.0  ;;  %v2378_v48 = vmul.f32 %v2269_v24, %v2269_v24  ;;  %v2484_v11 = vpack.c.bf16 %v2269_v24, %v2269_v24  ;;  %v1833_v50 = vadd.f32 %v1796_v34, %v3767_v12 }
 0x2d4   : > { %v2335_v37 = vadd.f32 %v2334_v38, %v2333_v21  ;;  %v2060_v4 = vpop.f32.mrf.mxu3  ;;  %v1923_v0 = vpop.f32.mrf.mxu2 }
 0x2d5   : > { %v2435_v9 = vsel %vm2282_vm8, %v2378_v48, 0.0  ;;  %2517 = vst.msk [vmem:[%s3803_s27 + $0x68] sm:$0xf] %vm2490_vm7, %v2484_v11  ;;  %v2100_v14 = vadd.f32 %v2060_v4, %v1960_v61  ;;  %v1961_v58 = vadd.f32 %v1923_v0, %v1832_v46 }
 0x2d6   : > { %v2436_v30 = vadd.f32 %v2435_v9, %v2434_v19 }
 0x2d7   : > { %v2234_v16 = vadd.f32 %v2194_v26, %v2100_v14 }
 0x2d8   : > { %v2197_v28 = vpop.f32.mrf.mxu0 }
 0x2d9   : > { %v2270_v8 = vadd.f32 %v3790_v43, %v2234_v16 }
 0x2da   : > { %v1799_v45 = vpop.f32.mrf.mxu1 }
 0x2db   : > { %v2336_v3 = vsel %vm2282_vm8, %v2270_v8, 0.0  ;;  %v2379_v15 = vmul.f32 %v2270_v8, %v2270_v8  ;;  %v2485_v52 = vpack.c.bf16 %v2270_v8, %v2270_v8 }
 0x2dc   : > { %v2337_v63 = vadd.f32 %v2336_v3, %v2335_v37  ;;  %v2063_v56 = vpop.f32.mrf.mxu3  ;;  %v1925_v62 = vpop.f32.mrf.mxu2 }
 0x2dd   : > { %v2437_v6 = vsel %vm2282_vm8, %v2379_v15, 0.0  ;;  %2518 = vst.msk [vmem:[%s3803_s27 + $0x6c] sm:$0xf] %vm2490_vm7, %v2485_v52  ;;  %v2101_v1 = vadd.f32 %v2063_v56, %v1961_v58  ;;  %v1962_v23 = vadd.f32 %v1925_v62, %v1833_v50 }
 0x2de   : > { %v2438_v57 = vadd.f32 %v2437_v6, %v2436_v30 }
 0x2df   : > { %v2235_v32 = vadd.f32 %v2197_v28, %v2101_v1  ;;  %v2281_v1 = vld [vmem:[%s4028_s7] sm:$0x3] }
 0x2e0   : > { %v2199_v10 = vpop.f32.mrf.mxu0 }
 0x2e1   : > { %v2271_v40 = vadd.f32 %v3790_v43, %v2235_v32  ;;  %v1834_v43 = vadd.f32 %v1799_v45, %v3776_v31 }
 0x2e2   : > { %v1801_v51 = vpop.f32.mrf.mxu1 }
 0x2e3   : > { %v2338_v27 = vsel %vm2282_vm8, %v2271_v40, 0.0  ;;  %v2380_v44 = vmul.f32 %v2271_v40, %v2271_v40  ;;  %v2486_v17 = vpack.c.bf16 %v2271_v40, %v2271_v40  ;;  %v1835_v19 = vadd.f32 %v1801_v51, %v3781_v2 }
 0x2e4   : > { %v2339_v39 = vadd.f32 %v2338_v27, %v2337_v63  ;;  %v2065_v18 = vpop.f32.mrf.mxu3  ;;  %v1928_v29 = vpop.f32.mrf.mxu2 }
 0x2e5   : > { %v2439_v33 = vsel %vm2282_vm8, %v2380_v44, 0.0  ;;  %2519 = vst.msk [vmem:[%s3803_s27 + $0x70] sm:$0xf] %vm2490_vm7, %v2486_v17  ;;  %v2102_v53 = vadd.f32 %v2065_v18, %v1962_v23  ;;  %v1963_v25 = vadd.f32 %v1928_v29, %v1834_v43 }
 0x2e6   : > { %v2440_v41 = vadd.f32 %v2439_v33, %v2438_v57 }
 0x2e7   : > { %v2236_v12 = vadd.f32 %v2199_v10, %v2102_v53 }
 0x2e8   : > { %v2202_v21 = vpop.f32.mrf.mxu0 }
 0x2e9   : > { %v2272_v35 = vadd.f32 %v2932_v55, %v2236_v12 }
 0x2eb   : > { %v2340_v20 = vsel %vm2282_vm8, %v2272_v35, 0.0  ;;  %v2381_v54 = vmul.f32 %v2272_v35, %v2272_v35  ;;  %v2487_v5 = vpack.c.bf16 %v2272_v35, %v2272_v35 }
 0x2ec   : > { %v2341_v60 = vadd.f32 %v2340_v20, %v2339_v39  ;;  %v2068_v13 = vpop.f32.mrf.mxu3  ;;  %v1930_v7 = vpop.f32.mrf.mxu2 }
 0x2ed   : > { %v2441_v42 = vsel %vm2282_vm8, %v2381_v54, 0.0  ;;  %2520 = vst.msk [vmem:[%s3803_s27 + $0x74] sm:$0xf] %vm2490_vm7, %v2487_v5  ;;  %v2103_v31 = vadd.f32 %v2068_v13, %v1963_v25  ;;  %v1964_v36 = vadd.f32 %v1930_v7, %v1835_v19 }
 0x2ee   : > { %v2442_v47 = vadd.f32 %v2441_v42, %v2440_v41 }
 0x2ef   : > { %v2237_v59 = vadd.f32 %v2202_v21, %v2103_v31 }
 0x2f0   : > { %v2204_v0 = vpop.f32.mrf.mxu0 }
 0x2f1   : > { %v2273_v22 = vadd.f32 %v2932_v55, %v2237_v59 }
 0x2f3   : > { %v2342_v26 = vsel %vm2282_vm8, %v2273_v22, 0.0  ;;  %v2382_v24 = vmul.f32 %v2273_v22, %v2273_v22  ;;  %v2488_v61 = vpack.c.bf16 %v2273_v22, %v2273_v22 }
 0x2f4   : > { %v2343_v38 = vadd.f32 %v2342_v26, %v2341_v60  ;;  %v2070_v48 = vpop.f32.mrf.mxu3 }
 0x2f5   : > { %v2443_v11 = vsel %vm2282_vm8, %v2382_v24, 0.0  ;;  %2521 = vst.msk [vmem:[%s3803_s27 + $0x78] sm:$0xf] %vm2490_vm7, %v2488_v61  ;;  %v2104_v37 = vadd.f32 %v2070_v48, %v1964_v36 }
 0x2f6   : > { %v2444_v4 = vadd.f32 %v2443_v11, %v2442_v47 }
 0x2f7   : > { %v2238_v9 = vadd.f32 %v2204_v0, %v2104_v37 }
 0x2f9   : > { %v2274_v14 = vadd.f32 %v2932_v55, %v2238_v9 }
 0x2fb   : > { %v2344_v2 = vsel %vm2282_vm8, %v2274_v14, 0.0  ;;  %v2383_v30 = vmul.f32 %v2274_v14, %v2274_v14  ;;  %v2489_v16 = vpack.c.bf16 %v2274_v14, %v2274_v14 }
 0x2fc   : > { %v2345_v46 = vadd.f32 %v2344_v2, %v2343_v38 }
 0x2fd   : > { %v2445_v34 = vsel %vm2282_vm8, %v2383_v30, 0.0  ;;  %2522 = vst.msk [vmem:[%s3803_s27 + $0x7c] sm:$0xf] %vm2490_vm7, %v2489_v16 }
 0x2fe   : > { %v2346_v28 = vrot.slane %v2345_v46, 4  ;;  %v2446_v8 = vadd.f32 %v2445_v34, %v2444_v4 }
 0x300   : > { %v2347_v58 = vadd.f32 %v2346_v28, %v2345_v46  ;;  %v2447_v49 = vrot.slane %v2446_v8, 4 }
 0x302   : > { %v2348_v3 = vrot.slane %v2347_v58, 2  ;;  %v2448_v15 = vadd.f32 %v2447_v49, %v2446_v8 }
 0x304   : > { %v2349_v52 = vadd.f32 %v2348_v3, %v2347_v58  ;;  %v2449_v63 = vrot.slane %v2448_v15, 2 }
 0x306   : > { %v2350_v56 = vrot.slane %v2349_v52, 1  ;;  %v2450_v62 = vadd.f32 %v2449_v63, %v2448_v15 }
 0x308   : > { %v2451_v6 = vrot.slane %v2450_v62, 1  ;;  %v2351_v57 = vadd.f32 %v2350_v56, %v2349_v52 }
 0x30a   : > { %v2452_v32 = vadd.f32 %v2451_v6, %v2450_v62 }
 0x30c   : > { %v2454_v50 = vsel %vm677_vm1, %v2351_v57, %v2452_v32 }
 0x30d   : > { %v2455_v40 = vadd.f32 %v2454_v50, %v2281_v1 }
 0x30f   : > { %2457 = vst.msk [vmem:[%s4028_s7] sm:$0x3] %vm2279_vm9, %v2455_v40 }
 0x310 PF: > { %s17_s23 = sadd.s32 1, %s2955_s23   ;;  %s4180_s21 = smov %s2951_s22 }
 0x311   : > { %p14_p5 = scmp.ge.s32.totalorder %s17_s23, 4   ;;  %s4181_s22 = smov %s4183_s3 }
 0x313   :  { %16 = sbr.rel (!%p14_p5) target bundleno = 2 (0x2), region = 97 }

// kernel: vgg_block_pallas.4
= control target key start
LH: loop header
LB: loop body
LE: loop exit
PB: predicated region body
PF: predicated region fallthrough
CT: control target
= control target key end

     0   :  { %s3112_s21 = smov 0   ;;  %s3114_s22 = smov 0   ;;  %s4269_s0 = inlined_call_operand.vmem [shape: bf16[2,16,16,8], index: 0, kind: input, shape index: {}]   ;;  %s4270_s1 = inlined_call_operand.vmem [shape: bf16[9,8,8], index: 1, kind: input, shape index: {}]   ;;  %s4271_s2 = inlined_call_operand.vmem [shape: f32[1,8], index: 2, kind: input, shape index: {}]   ;;  %s4272_s3 = inlined_call_operand.vmem [shape: f32[1,8], index: 3, kind: input, shape index: {}]   ;;  %s4273_s4 = inlined_call_operand.vmem [shape: f32[1,8], index: 4, kind: input, shape index: {}]   ;;  %s4274_s5 = inlined_call_operand.vmem [shape: bf16[2,16,16,8], index: 5, kind: output, shape index: {0}]   ;;  %s4275_s6 = inlined_call_operand.vmem [shape: f32[2,2,8], index: 6, kind: output, shape index: {1}]  }
   0x1   :  { %s3116_s23 = smov 0  }
   0x2 LB: > { %s29_s24 = sadd.s32 1, %s3070_s22  ;;  %p2766_p0 = scmp.ge.s32.totalorder %s3074_s23, 1  ;;  %s3074_s23 = sphi %s3116_s23, %s17_s23   ;;  %s3070_s22 = sphi %s3114_s22, %s4376_s22   ;;  %s3066_s21 = sphi %s3112_s21, %s4375_s21  }
   0x3   : > { %p31_p1 = scmp.ge.s32.totalorder %s29_s24, 2  ;;  %p229_p2 = scmp.lt.s32.totalorder %s3074_s23, 3 }
   0x5   : > { %s4378_s24 = smov (%p31_p1, %s29_s24), 0  ;;  %p230_p3 = pnand %p2766_p0, %p229_p2 }
   0x7   : > { %233 = sbr.rel (%p230_p3) target bundleno = 806 (0x326), region = 40 }
   0xc   : > { %v2774_v0 = vld [vmem:[%s4270_s1 + $0x4] sm:$0xf]  ;;  %vm1077_vm0 = vcmask 1043456   ;;  %p268_p4 = scmp.lt.s32.totalorder %s3066_s21, 1  ;;  %v3147_v2 = vld [vmem:[%s4272_s3] ss:$0 sm:$0xff] }
   0xd   : > { %v1079_v1 = vsel %vm1077_vm0, %v2774_v0, 0  ;;  %v2807_v3 = vld [vmem:[%s4270_s1 + $0x8] sm:$0xf]  ;;  %v3159_v8 = vld [vmem:[%s4273_s4] ss:$0 sm:$0xff]  ;;  %vm793_vm1 = vcmask 1040384  }
   0xe   : > { %3018 = vmatpush.bf16.msra.mxu1 %v1079_v1  ;;  %3019 = vmatpush.bf16.msra.mxu2 %v1079_v1  ;;  %s4380_s21 = smov (!%p268_p4, %s3066_s21), 1  ;;  %v1426_v7 = vsel %vm1077_vm0, %v2807_v3, 0  ;;  %vm794_vm2 = vsmask.f32 256  ;;  %v2824_v50 = vld [vmem:[%s4270_s1 + $0xc] sm:$0xf] }
   0xf   : > { %3020 = vmatpush.bf16.msra.mxu3 %v1079_v1  ;;  %1088 = vmatpush.bf16.msra.mxu0 %v1079_v1  ;;  %s2928_s27 = sshll.u32 %s4380_s21, 7  ;;  %v832_v51 = vld [vmem:[%s4270_s1] sm:$0xf]  ;;  %v2841_v56 = vld [vmem:[%s4270_s1 + $0x10] sm:$0xf]  ;;  %v1555_v63 = vsel %vm1077_vm0, %v2824_v50, 0  ;;  %vm3203_vm4 = vmand %vm793_vm1, %vm794_vm2 }
  0x10   : > { %s3142_s30 = scalar_lea.vmem %s4269_s0, %s2928_s27  ;;  %v1203_v0 = vsel %vm1077_vm0, %v832_v51, 0  ;;  %vm833_vm3 = vsmask.f32 7424  ;;  %vm1028_vm5 = vcmask 64512   ;;  %vm1326_vm6 = vcmask 1046528   ;;  %s3997_s16 = scalar_lea.vmem %s4274_s5, %s2928_s27 }
  0x11   : > { %v3004_v4 = vld [vmem:[%s3142_s30 + $0x18] sm:$0xff]   ;;  %v2931_v13 = vld [vmem:[%s3142_s30] sm:$0xff]   ;;  %vm2605_vm7 = vcmask 60416   ;;  %s2771_s27 = sshll.u32 %s4380_s21, 1  ;;  %vm2395_vm8 = vcmask 58368  }
  0x12   : > { %v3008_v5 = vld [vmem:[%s3142_s30 + $0x38] sm:$0xff]   ;;  %v2948_v9 = vunpack.c.l.bf16 %v3004_v4  ;;  %v2949_v10 = vunpack.c.h.bf16 %v3004_v4  ;;  %1435 = vmatpush.bf16.msrb.mxu2 %v1426_v7  ;;  %v2932_v16 = vunpack.c.l.bf16 %v2931_v13  ;;  %v2933_v17 = vunpack.c.h.bf16 %v2931_v13  ;;  %v3005_v1 = vld [vmem:[%s3142_s30 + $0x20] sm:$0xff]   ;;  %1212 = vmatpush.bf16.msrb.mxu1 %v1203_v0  ;;  %s4224_s19 = scalar_lea.vmem %s4275_s6, %s2771_s27 }
  0x13   : > { %v3012_v6 = vld [vmem:[%s3142_s30 + $0x58] sm:$0xff]   ;;  %v2964_v11 = vunpack.c.l.bf16 %v3008_v5  ;;  %v2965_v12 = vunpack.c.h.bf16 %v3008_v5  ;;  %1564 = vmatpush.bf16.msrb.mxu3 %v1555_v63  ;;  %v3198_v7 = vld [vmem:[%s3142_s30 + $0x40] sm:$0xff]  }
  0x14   : > { %v2980_v14 = vunpack.c.l.bf16 %v3012_v6  ;;  %v2981_v15 = vunpack.c.h.bf16 %v3012_v6  ;;  %v393_v18 = vmul.f32 %v3147_v2, %v2948_v9  ;;  %v394_v19 = vmul.f32 %v3147_v2, %v2949_v10  ;;  %v3013_v0 = vld [vmem:[%s3142_s30 + $0x60] sm:$0xff]  }
  0x15   : > { %v401_v20 = vmul.f32 %v3147_v2, %v2964_v11  ;;  %v402_v21 = vmul.f32 %v3147_v2, %v2965_v12  ;;  %v304_v24 = vmul.f32 %v3147_v2, %v2932_v16  ;;  %v305_v25 = vmul.f32 %v3147_v2, %v2933_v17 }
  0x16   : > { %v409_v22 = vmul.f32 %v3147_v2, %v2980_v14  ;;  %v410_v23 = vmul.f32 %v3147_v2, %v2981_v15  ;;  %v425_v26 = vadd.f32 %v3159_v8, %v393_v18  ;;  %v426_v27 = vadd.f32 %v3159_v8, %v394_v19 }
  0x17   : > { %v433_v28 = vadd.f32 %v3159_v8, %v401_v20  ;;  %v434_v29 = vadd.f32 %v3159_v8, %v402_v21  ;;  %v310_v32 = vadd.f32 %v3159_v8, %v304_v24  ;;  %v311_v33 = vadd.f32 %v3159_v8, %v305_v25 }
  0x18   : > { %v441_v30 = vadd.f32 %v3159_v8, %v409_v22  ;;  %v442_v31 = vadd.f32 %v3159_v8, %v410_v23  ;;  %v457_v34 = vmax.f32 %v425_v26, 0.0  ;;  %v458_v35 = vmax.f32 %v426_v27, 0.0 }
  0x19   : > { %v465_v36 = vmax.f32 %v433_v28, 0.0  ;;  %v466_v37 = vmax.f32 %v434_v29, 0.0  ;;  %v3178_v40 = vmax.f32 %v310_v32, 0.0  ;;  %v3180_v41 = vmax.f32 %v311_v33, 0.0 }
  0x1a   : > { %v473_v38 = vmax.f32 %v441_v30, 0.0  ;;  %v474_v39 = vmax.f32 %v442_v31, 0.0  ;;  %v513_v42 = vpack.c.bf16 %v457_v34, %v457_v34  ;;  %v514_v43 = vpack.c.bf16 %v458_v35, %v458_v35 }
  0x1b   : > { %v521_v44 = vpack.c.bf16 %v465_v36, %v465_v36  ;;  %v522_v45 = vpack.c.bf16 %v466_v37, %v466_v37  ;;  %v318_v48 = vmul.f32 0.0, %v3178_v40  ;;  %v319_v49 = vmul.f32 0.0, %v3180_v41 }
  0x1c   : > { %v529_v46 = vpack.c.bf16 %v473_v38, %v473_v38  ;;  %v530_v47 = vpack.c.bf16 %v474_v39, %v474_v39  ;;  %v585_v52 = vunpack.c.l.b16 %v513_v42  ;;  %v586_v53 = vunpack.c.l.b16 %v514_v43 }
  0x1d   : > { %v593_v54 = vunpack.c.l.b16 %v521_v44  ;;  %v594_v55 = vunpack.c.l.b16 %v522_v45  ;;  %v505_v59 = vpack.c.bf16 %v318_v48, %v318_v48  ;;  %v506_v60 = vpack.c.bf16 %v319_v49, %v319_v49 }
  0x1e   : > { %v601_v57 = vunpack.c.l.b16 %v529_v46  ;;  %v602_v58 = vunpack.c.l.b16 %v530_v47  ;;  %v617_v61 = vpack.c.b16 %v586_v53, %v585_v52  ;;  %v1695_v6 = vsel %vm1077_vm0, %v2841_v56, 0 }
  0x1f   : > { %v621_v62 = vpack.c.b16 %v594_v55, %v593_v54  ;;  %v577_v4 = vunpack.c.l.b16 %v505_v59  ;;  %v578_v5 = vunpack.c.l.b16 %v506_v60  ;;  %1704 = vmatpush.bf16.msrb.mxu0 %v1695_v6  ;;  %v2952_v16 = vunpack.c.l.bf16 %v3005_v1 }
  0x20   : > { %v625_v3 = vpack.c.b16 %v602_v58, %v601_v57  ;;  %v660_v9 = vshrl.u32 %v617_v61, 16  ;;  %v663_v10 = vshll.u32 %v617_v61, 16  ;;  %v2953_v19 = vunpack.c.h.bf16 %v3005_v1 }
  0x21   : > { %v688_v11 = vshrl.u32 %v621_v62, 16  ;;  %v691_v12 = vshll.u32 %v621_v62, 16  ;;  %v613_v15 = vpack.c.b16 %v578_v5, %v577_v4  ;;  %v2968_v20 = vunpack.c.l.bf16 %v3198_v7 }
  0x22   : > { %v716_v13 = vshrl.u32 %v625_v3, 16  ;;  %v719_v14 = vshll.u32 %v625_v3, 16  ;;  %v662_v17 = vrot.slane %v660_v9, 7  ;;  %v4301_v21 = vmov 0 }
  0x23   : > { %v690_v18 = vrot.slane %v688_v11, 7  ;;  %v4302_v21 = vsel %vm3203_vm4, 4294967295, %v4301_v21  ;;  %v632_v23 = vshrl.u32 %v613_v15, 16  ;;  %v635_v24 = vshll.u32 %v613_v15, 16 }
  0x24   : > { %4303 = vst [vmem:[#allocation2_spill] sm:$0xff] %v4302_v21  ;;  %v718_v22 = vrot.slane %v716_v13, 7  ;;  %v395_v25 = vmul.f32 %v3147_v2, %v2952_v16  ;;  %v665_v26 = vor.u32 %v663_v10, %v662_v17  ;;  %v3210_v27 = vsel %vm3203_vm4, %v662_v17, 0 }
  0x25   : > { %v693_v28 = vor.u32 %v691_v12, %v690_v18  ;;  %v3214_v29 = vsel %vm3203_vm4, %v690_v18, 0  ;;  %v890_v30 = vshll.u32 %v3210_v27, 16  ;;  %v634_v37 = vrot.slane %v632_v23, 7 }
  0x26   : > { %v938_v31 = vshll.u32 %v3214_v29, 16  ;;  %v721_v32 = vor.u32 %v719_v14, %v718_v22  ;;  %v3220_v33 = vsel %vm3203_vm4, %v718_v22, 0  ;;  %v3224_v34 = vsel %vm3203_vm4, 0, %v665_v26 }
  0x27   : > { %v3228_v35 = vsel %vm3203_vm4, 0, %v693_v28  ;;  %v986_v36 = vshll.u32 %v3220_v33, 16  ;;  %v883_v38 = vshrl.u32 %v3224_v34, 16  ;;  %v885_v39 = vshll.u32 %v3224_v34, 16 }
  0x28   : > { %4304 = vst [vmem:[#allocation3_spill] sm:$0xff] %v3228_v35  ;;  %v892_v42 = vrot.slane %v890_v30, 1  ;;  %v931_v43 = vshrl.u32 %v3228_v35, 16  ;;  %v933_v44 = vshll.u32 %v3228_v35, 16  ;;  %v940_v45 = vrot.slane %v938_v31, 1 }
  0x29   : > { %v3237_v46 = vsel %vm3203_vm4, 0, %v721_v32  ;;  %v988_v47 = vrot.slane %v986_v36, 1  ;;  %v887_v48 = vrot.slane %v885_v39, 1  ;;  %v637_v51 = vor.u32 %v635_v24, %v634_v37  ;;  %v3006_v24 = vld [vmem:[%s3142_s30 + $0x28] sm:$0xff]  }
  0x2a   : > { %v979_v49 = vshrl.u32 %v3237_v46, 16  ;;  %v981_v50 = vshll.u32 %v3237_v46, 16  ;;  %v935_v52 = vrot.slane %v933_v44, 1  ;;  %v3243_v53 = vsel %vm3203_vm4, %v634_v37, 0 }
  0x2b   : > { %v396_v54 = vmul.f32 %v3147_v2, %v2953_v19  ;;  %v427_v55 = vadd.f32 %v3159_v8, %v395_v25  ;;  %v888_v56 = vor.u32 %v887_v48, %v883_v38  ;;  %v3249_v58 = vsel %vm3203_vm4, 0, %v637_v51 }
  0x2c   : > { %v983_v57 = vrot.slane %v981_v50, 1  ;;  %v842_v59 = vshll.u32 %v3243_v53, 16  ;;  %v936_v60 = vor.u32 %v935_v52, %v931_v43  ;;  %v835_v61 = vshrl.u32 %v3249_v58, 16 }
  0x2d   : > { %v837_v62 = vshll.u32 %v3249_v58, 16  ;;  %v428_v63 = vadd.f32 %v3159_v8, %v396_v54  ;;  %v3257_v1 = vsel %vm833_vm3, %v888_v56, %v892_v42  ;;  %v459_v5 = vmax.f32 %v427_v55, 0.0 }
  0x2e   : > { %v984_v3 = vor.u32 %v983_v57, %v979_v49  ;;  %v844_v4 = vrot.slane %v842_v59, 1  ;;  %2779 = vmatmul.msk.bf16.vlgmr.msra.gmra.mxu1 %vm1028_vm5, %v3257_v1  ;;  %v3262_v6 = vsel %vm833_vm3, %v936_v60, %v940_v45  ;;  %v2969_v11 = vunpack.c.h.bf16 %v3198_v7  ;;  %v3286_v49 = vld [vmem:[%s3142_s30 + $0x48] sm:$0xff]  }
  0x2f   : > { %4305 = vst [vmem:[#allocation4_spill] sm:$0xff] %v3262_v6  ;;  %v839_v9 = vrot.slane %v837_v62, 1  ;;  %v460_v10 = vmax.f32 %v428_v63, 0.0  ;;  %2783 = vmatmul.msk.bf16.vlgmr.msra.gmra.mxu2 %vm1028_vm5, %v3262_v6  ;;  %v515_v13 = vpack.c.bf16 %v459_v5, %v459_v5  ;;  %v403_v14 = vmul.f32 %v3147_v2, %v2968_v20 }
  0x30   : > { %v3268_v12 = vsel %vm833_vm3, %v984_v3, %v988_v47  ;;  %v2984_v15 = vunpack.c.l.bf16 %v3013_v0  ;;  %v404_v18 = vmul.f32 %v3147_v2, %v2969_v11  ;;  %v2985_v19 = vunpack.c.h.bf16 %v3013_v0 }
  0x31   : > { %2787 = vmatmul.msk.bf16.vlgmr.msra.gmra.mxu3 %vm1028_vm5, %v3268_v12  ;;  %v840_v16 = vor.u32 %v839_v9, %v835_v61  ;;  %v516_v17 = vpack.c.bf16 %v460_v10, %v460_v10  ;;  %v587_v22 = vunpack.c.l.b16 %v515_v13  ;;  %v435_v7 = vadd.f32 %v3159_v8, %v403_v14 }
  0x32   : > { %v411_v23 = vmul.f32 %v3147_v2, %v2984_v15  ;;  %v436_v20 = vadd.f32 %v3159_v8, %v404_v18  ;;  %v412_v28 = vmul.f32 %v3147_v2, %v2985_v19  ;;  %v2956_v38 = vunpack.c.l.bf16 %v3006_v24 }
  0x33   : > { %v845_v25 = vsel %vm833_vm3, %v840_v16, %v844_v4  ;;  %v588_v26 = vunpack.c.l.b16 %v516_v17  ;;  %v467_v30 = vmax.f32 %v435_v7, 0.0  ;;  %v507_v43 = vpack.c.bf16 %v3178_v40, %v3178_v40 }
  0x34   : > { %2775 = vmatmul.msk.bf16.vlgmr.msra.gmra.mxu0 %vm1028_vm5, %v845_v25  ;;  %v443_v31 = vadd.f32 %v3159_v8, %v411_v23  ;;  %v468_v36 = vmax.f32 %v436_v20, 0.0  ;;  %v444_v37 = vadd.f32 %v3159_v8, %v412_v28  ;;  %v508_v52 = vpack.c.bf16 %v3180_v41, %v3180_v41 }
  0x35   : > { %v618_v32 = vpack.c.b16 %v588_v26, %v587_v22  ;;  %v523_v39 = vpack.c.bf16 %v467_v30, %v467_v30  ;;  %v579_v54 = vunpack.c.l.b16 %v507_v43  ;;  %v2957_v59 = vunpack.c.h.bf16 %v3006_v24 }
  0x36   : > { %v475_v42 = vmax.f32 %v443_v31, 0.0  ;;  %v524_v47 = vpack.c.bf16 %v468_v36, %v468_v36  ;;  %v476_v48 = vmax.f32 %v444_v37, 0.0  ;;  %v580_v61 = vunpack.c.l.b16 %v508_v52 }
  0x37   : > { %v667_v44 = vshrl.u32 %v618_v32, 16  ;;  %v670_v45 = vshll.u32 %v618_v32, 16  ;;  %v595_v50 = vunpack.c.l.b16 %v523_v39  ;;  %v397_v40 = vmul.f32 %v3147_v2, %v2956_v38 }
  0x38   : > { %v531_v51 = vpack.c.bf16 %v475_v42, %v475_v42  ;;  %v596_v56 = vunpack.c.l.b16 %v524_v47  ;;  %v532_v57 = vpack.c.bf16 %v476_v48, %v476_v48  ;;  %v2972_v62 = vunpack.c.l.bf16 %v3286_v49 }
  0x39   : > { %v669_v55 = vrot.slane %v667_v44, 7  ;;  %v614_v5 = vpack.c.b16 %v580_v61, %v579_v54  ;;  %v398_v9 = vmul.f32 %v3147_v2, %v2957_v59  ;;  %v429_v10 = vadd.f32 %v3159_v8, %v397_v40  ;;  %v3014_v40 = vld [vmem:[%s3142_s30 + $0x68] sm:$0xff]  }
  0x3a   : > { %v603_v60 = vunpack.c.l.b16 %v531_v51  ;;  %v622_v3 = vpack.c.b16 %v596_v56, %v595_v50  ;;  %v604_v4 = vunpack.c.l.b16 %v532_v57  ;;  %v2973_v36 = vunpack.c.h.bf16 %v3286_v49 }
  0x3b   : > { %v672_v63 = vor.u32 %v670_v45, %v669_v55  ;;  %v3294_v0 = vsel %vm3203_vm4, %v669_v55, 0  ;;  %v639_v19 = vshrl.u32 %v614_v5, 16  ;;  %v642_v24 = vshll.u32 %v614_v5, 16 }
  0x3c   : > { %v902_v41 = vshll.u32 %v3294_v0, 16  ;;  %v695_v13 = vshrl.u32 %v622_v3, 16  ;;  %v698_v14 = vshll.u32 %v622_v3, 16  ;;  %v626_v15 = vpack.c.b16 %v604_v4, %v603_v60 }
  0x3d   : > { %v3301_v11 = vsel %vm3203_vm4, 0, %v672_v63  ;;  %v641_v26 = vrot.slane %v639_v19, 7  ;;  %v430_v20 = vadd.f32 %v3159_v8, %v398_v9  ;;  %v461_v28 = vmax.f32 %v429_v10, 0.0 }
  0x3e   : > { %4306 = vst [vmem:[#allocation5_spill] sm:$0xff] %v3301_v11  ;;  %v895_v16 = vshrl.u32 %v3301_v11, 16  ;;  %v897_v17 = vshll.u32 %v3301_v11, 16  ;;  %v904_v18 = vrot.slane %v902_v41, 1  ;;  %v697_v22 = vrot.slane %v695_v13, 7 }
  0x3f   : > { %v723_v7 = vshrl.u32 %v626_v15, 16  ;;  %v726_v23 = vshll.u32 %v626_v15, 16  ;;  %v644_v39 = vor.u32 %v642_v24, %v641_v26  ;;  %v3314_v42 = vsel %vm3203_vm4, %v641_v26, 0 }
  0x40   : > { %v899_v25 = vrot.slane %v897_v17, 1  ;;  %v700_v30 = vor.u32 %v698_v14, %v697_v22  ;;  %v3308_v31 = vsel %vm3203_vm4, %v697_v22, 0  ;;  %v854_v47 = vshll.u32 %v3314_v42, 16 }
  0x41   : > { %v725_v32 = vrot.slane %v723_v7, 7  ;;  %v950_v38 = vshll.u32 %v3308_v31, 16  ;;  %v3339_v55 = vsel %vm3203_vm4, 0, %v644_v39  ;;  %v462_v4 = vmax.f32 %v430_v20, 0.0 }
  0x42   : > { %v900_v37 = vor.u32 %v899_v25, %v895_v16  ;;  %v3318_v43 = vsel %vm3203_vm4, 0, %v700_v30  ;;  %v856_v56 = vrot.slane %v854_v47, 1  ;;  %v847_v61 = vshrl.u32 %v3339_v55, 16 }
  0x43   : > { %v728_v44 = vor.u32 %v726_v23, %v725_v32  ;;  %v3322_v45 = vsel %vm3203_vm4, %v725_v32, 0  ;;  %v943_v49 = vshrl.u32 %v3318_v43, 16  ;;  %v945_v50 = vshll.u32 %v3318_v43, 16 }
  0x44   : > { %v3326_v48 = vsel %vm833_vm3, %v900_v37, %v904_v18  ;;  %v952_v51 = vrot.slane %v950_v38, 1  ;;  %v998_v54 = vshll.u32 %v3322_v45, 16  ;;  %v849_v3 = vshll.u32 %v3339_v55, 16  ;;  %v3002_v18 = vld [vmem:[%s3142_s30 + $0x8] sm:$0xff]  }
  0x45   : > { %4307 = vst [vmem:[#allocation6_spill] sm:$0xff] %v3326_v48  ;;  %2780 = vmatmul.msk.bf16.gmra.mxu1 %vm1028_vm5, %v3326_v48  ;;  %v3334_v52 = vsel %vm3203_vm4, 0, %v728_v44  ;;  %v947_v57 = vrot.slane %v945_v50, 1  ;;  %v517_v41 = vpack.c.bf16 %v461_v28, %v461_v28  ;;  %v405_v10 = vmul.f32 %v3147_v2, %v2972_v62 }
  0x46   : > { %v991_v59 = vshrl.u32 %v3334_v52, 16  ;;  %v993_v60 = vshll.u32 %v3334_v52, 16  ;;  %v1000_v63 = vrot.slane %v998_v54, 1  ;;  %v406_v13 = vmul.f32 %v3147_v2, %v2973_v36 }
  0x47   : > { %v948_v5 = vor.u32 %v947_v57, %v943_v49  ;;  %v851_v14 = vrot.slane %v849_v3, 1  ;;  %v518_v15 = vpack.c.bf16 %v462_v4, %v462_v4  ;;  %v589_v16 = vunpack.c.l.b16 %v517_v41 }
  0x48   : > { %v995_v9 = vrot.slane %v993_v60, 1  ;;  %v2988_v17 = vunpack.c.l.bf16 %v3014_v40  ;;  %v437_v7 = vadd.f32 %v3159_v8, %v405_v10  ;;  %v438_v23 = vadd.f32 %v3159_v8, %v406_v13 }
  0x49   : > { %v3350_v19 = vsel %vm833_vm3, %v948_v5, %v952_v51  ;;  %v852_v24 = vor.u32 %v851_v14, %v847_v61  ;;  %v590_v62 = vunpack.c.l.b16 %v518_v15  ;;  %v2989_v25 = vunpack.c.h.bf16 %v3014_v40  ;;  %v3007_v51 = vld [vmem:[%s3142_s30 + $0x30] sm:$0xff]  }
  0x4a   : > { %v996_v22 = vor.u32 %v995_v9, %v991_v59  ;;  %2784 = vmatmul.msk.bf16.gmra.mxu2 %vm1028_vm5, %v3350_v19  ;;  %v413_v26 = vmul.f32 %v3147_v2, %v2988_v17  ;;  %v469_v28 = vmax.f32 %v437_v7, 0.0  ;;  %v470_v30 = vmax.f32 %v438_v23, 0.0 }
  0x4b   : > { %v2940_v32 = vunpack.c.l.bf16 %v3002_v18  ;;  %v3363_v36 = vsel %vm833_vm3, %v852_v24, %v856_v56  ;;  %v619_v37 = vpack.c.b16 %v590_v62, %v589_v16  ;;  %v414_v38 = vmul.f32 %v3147_v2, %v2989_v25 }
  0x4c   : > { %v3358_v20 = vsel %vm833_vm3, %v996_v22, %v1000_v63  ;;  %v445_v39 = vadd.f32 %v3159_v8, %v413_v26  ;;  %2776 = vmatmul.msk.bf16.gmra.mxu0 %vm1028_vm5, %v3363_v36  ;;  %v525_v44 = vpack.c.bf16 %v469_v28, %v469_v28  ;;  %v526_v47 = vpack.c.bf16 %v470_v30, %v470_v30 }
  0x4d   : > { %2788 = vmatmul.msk.bf16.gmra.mxu3 %vm1028_vm5, %v3358_v20  ;;  %v2941_v49 = vunpack.c.h.bf16 %v3002_v18  ;;  %v389_v50 = vmul.f32 %v3147_v2, %v2940_v32  ;;  %v674_v54 = vshrl.u32 %v619_v37, 16  ;;  %v677_v57 = vshll.u32 %v619_v37, 16 }
  0x4e   : > { %v446_v59 = vadd.f32 %v3159_v8, %v414_v38  ;;  %v477_v56 = vmax.f32 %v445_v39, 0.0  ;;  %v597_v60 = vunpack.c.l.b16 %v525_v44  ;;  %v598_v61 = vunpack.c.l.b16 %v526_v47 }
  0x4f   : > { %v390_v40 = vmul.f32 %v3147_v2, %v2941_v49  ;;  %v421_v63 = vadd.f32 %v3159_v8, %v389_v50  ;;  %v676_v3 = vrot.slane %v674_v54, 7  ;;  %v2960_v5 = vunpack.c.l.bf16 %v3007_v51 }
  0x50   : > { %v478_v4 = vmax.f32 %v446_v59, 0.0  ;;  %v533_v41 = vpack.c.bf16 %v477_v56, %v477_v56  ;;  %v623_v9 = vpack.c.b16 %v598_v61, %v597_v60  ;;  %v2961_v14 = vunpack.c.h.bf16 %v3007_v51 }
  0x51   : > { %v422_v10 = vadd.f32 %v3159_v8, %v390_v40  ;;  %v453_v13 = vmax.f32 %v421_v63, 0.0  ;;  %v679_v15 = vor.u32 %v677_v57, %v676_v3  ;;  %v3377_v16 = vsel %vm3203_vm4, %v676_v3, 0 }
  0x52   : > { %v534_v17 = vpack.c.bf16 %v478_v4, %v478_v4  ;;  %v605_v18 = vunpack.c.l.b16 %v533_v41  ;;  %v914_v22 = vshll.u32 %v3377_v16, 16  ;;  %v702_v7 = vshrl.u32 %v623_v9, 16  ;;  %v3011_v41 = vld [vmem:[%s3142_s30 + $0x50] sm:$0xff]  }
  0x53   : > { %v705_v23 = vshll.u32 %v623_v9, 16  ;;  %v454_v24 = vmax.f32 %v422_v10, 0.0  ;;  %v3382_v62 = vsel %vm3203_vm4, 0, %v679_v15  ;;  %v509_v26 = vpack.c.bf16 %v453_v13, %v453_v13 }
  0x54   : > { %4308 = vst [vmem:[#allocation7_spill] sm:$0xff] %v3382_v62  ;;  %v606_v25 = vunpack.c.l.b16 %v534_v17  ;;  %v399_v28 = vmul.f32 %v3147_v2, %v2960_v5  ;;  %v907_v30 = vshrl.u32 %v3382_v62, 16  ;;  %v909_v32 = vshll.u32 %v3382_v62, 16 }
  0x55   : > { %v916_v37 = vrot.slane %v914_v22, 1  ;;  %v704_v38 = vrot.slane %v702_v7, 7  ;;  %v510_v44 = vpack.c.bf16 %v454_v24, %v454_v24  ;;  %v581_v47 = vunpack.c.l.b16 %v509_v26 }
  0x56   : > { %v627_v39 = vpack.c.b16 %v606_v25, %v605_v18  ;;  %v400_v49 = vmul.f32 %v3147_v2, %v2961_v14  ;;  %v911_v50 = vrot.slane %v909_v32, 1  ;;  %v431_v57 = vadd.f32 %v3159_v8, %v399_v28 }
  0x57   : > { %v707_v51 = vor.u32 %v705_v23, %v704_v38  ;;  %v3390_v54 = vsel %vm3203_vm4, %v704_v38, 0  ;;  %v582_v61 = vunpack.c.l.b16 %v510_v44  ;;  %v2976_v24 = vunpack.c.l.bf16 %v3011_v41  ;;  %v3015_v44 = vld [vmem:[%s3142_s30 + $0x70] sm:$0xff]  }
  0x58   : > { %v962_v59 = vshll.u32 %v3390_v54, 16  ;;  %v730_v56 = vshrl.u32 %v627_v39, 16  ;;  %v733_v60 = vshll.u32 %v627_v39, 16  ;;  %v912_v40 = vor.u32 %v911_v50, %v907_v30 }
  0x59   : > { %v3396_v63 = vsel %vm3203_vm4, 0, %v707_v51  ;;  %v432_v3 = vadd.f32 %v3159_v8, %v400_v49  ;;  %v463_v4 = vmax.f32 %v431_v57, 0.0  ;;  %v615_v15 = vpack.c.b16 %v582_v61, %v581_v47 }
  0x5a   : > { %v955_v5 = vshrl.u32 %v3396_v63, 16  ;;  %v957_v9 = vshll.u32 %v3396_v63, 16  ;;  %v964_v10 = vrot.slane %v962_v59, 1  ;;  %v732_v13 = vrot.slane %v730_v56, 7 }
  0x5b   : > { %v3403_v14 = vsel %vm833_vm3, %v912_v40, %v916_v37  ;;  %v464_v17 = vmax.f32 %v432_v3, 0.0  ;;  %v519_v18 = vpack.c.bf16 %v463_v4, %v463_v4  ;;  %v646_v26 = vshrl.u32 %v615_v15, 16 }
  0x5c   : > { %4309 = vst [vmem:[#allocation8_spill] sm:$0xff] %v3403_v14  ;;  %2781 = vmatmul.msk.bf16.gmra.mxu1 %vm1028_vm5, %v3403_v14  ;;  %v959_v22 = vrot.slane %v957_v9, 1  ;;  %v735_v7 = vor.u32 %v733_v60, %v732_v13  ;;  %v3409_v23 = vsel %vm3203_vm4, %v732_v13, 0  ;;  %v649_v28 = vshll.u32 %v615_v15, 16 }
  0x5d   : > { %4310 = vst [vmem:[#allocation9_spill] sm:$0xff] %v3409_v23  ;;  %v1010_v25 = vshll.u32 %v3409_v23, 16  ;;  %v520_v30 = vpack.c.bf16 %v464_v17, %v464_v17  ;;  %v591_v38 = vunpack.c.l.b16 %v519_v18  ;;  %v2977_v39 = vunpack.c.h.bf16 %v3011_v41 }
  0x5e   : > { %v960_v32 = vor.u32 %v959_v22, %v955_v5  ;;  %v3414_v37 = vsel %vm3203_vm4, 0, %v735_v7  ;;  %v648_v51 = vrot.slane %v646_v26, 7  ;;  %v407_v56 = vmul.f32 %v3147_v2, %v2976_v24  ;;  %v3003_v26 = vld [vmem:[%s3142_s30 + $0x10] sm:$0xff]  }
  0x5f   : > { %v1003_v47 = vshrl.u32 %v3414_v37, 16  ;;  %v1005_v49 = vshll.u32 %v3414_v37, 16  ;;  %v1012_v50 = vrot.slane %v1010_v25, 1  ;;  %v592_v59 = vunpack.c.l.b16 %v520_v30 }
  0x60   : > { %v3420_v57 = vsel %vm833_vm3, %v960_v32, %v964_v10  ;;  %v408_v60 = vmul.f32 %v3147_v2, %v2977_v39  ;;  %v651_v40 = vor.u32 %v649_v28, %v648_v51  ;;  %v3428_v3 = vsel %vm3203_vm4, %v648_v51, 0 }
  0x61   : > { %2785 = vmatmul.msk.bf16.gmra.mxu2 %vm1028_vm5, %v3420_v57  ;;  %v1007_v61 = vrot.slane %v1005_v49, 1  ;;  %v2992_v4 = vunpack.c.l.bf16 %v3015_v44  ;;  %v866_v41 = vshll.u32 %v3428_v3, 16  ;;  %v620_v5 = vpack.c.b16 %v592_v59, %v591_v38 }
  0x62   : > { %v439_v9 = vadd.f32 %v3159_v8, %v407_v56  ;;  %v440_v10 = vadd.f32 %v3159_v8, %v408_v60  ;;  %v3435_v15 = vsel %vm3203_vm4, 0, %v651_v40  ;;  %v2993_v17 = vunpack.c.h.bf16 %v3015_v44 }
  0x63   : > { %v1008_v13 = vor.u32 %v1007_v61, %v1003_v47  ;;  %v415_v18 = vmul.f32 %v3147_v2, %v2992_v4  ;;  %v859_v22 = vshrl.u32 %v3435_v15, 16  ;;  %v861_v7 = vshll.u32 %v3435_v15, 16 }
  0x64   : > { %v868_v24 = vrot.slane %v866_v41, 1  ;;  %v681_v25 = vshrl.u32 %v620_v5, 16  ;;  %v684_v30 = vshll.u32 %v620_v5, 16  ;;  %v471_v32 = vmax.f32 %v439_v9, 0.0 }
  0x65   : > { %v3442_v28 = vsel %vm833_vm3, %v1008_v13, %v1012_v50  ;;  %v472_v38 = vmax.f32 %v440_v10, 0.0  ;;  %v863_v39 = vrot.slane %v861_v7, 1  ;;  %v416_v47 = vmul.f32 %v3147_v2, %v2993_v17 }
  0x66   : > { %4311 = vst [vmem:[#allocation10_spill] sm:$0xff] %v3442_v28  ;;  %2789 = vmatmul.msk.bf16.gmra.mxu3 %vm1028_vm5, %v3442_v28  ;;  %v683_v44 = vrot.slane %v681_v25, 7  ;;  %v447_v49 = vadd.f32 %v3159_v8, %v415_v18  ;;  %v527_v51 = vpack.c.bf16 %v471_v32, %v471_v32  ;;  %v2944_v56 = vunpack.c.l.bf16 %v3003_v26 }
  0x67   : > { %v528_v59 = vpack.c.bf16 %v472_v38, %v472_v38  ;;  %v2945_v60 = vunpack.c.h.bf16 %v3003_v26  ;;  %v864_v61 = vor.u32 %v863_v39, %v859_v22  ;;  %v448_v4 = vadd.f32 %v3159_v8, %v416_v47 }
  0x68   : > { %v686_v40 = vor.u32 %v684_v30, %v683_v44  ;;  %v3450_v50 = vsel %vm3203_vm4, %v683_v44, 0  ;;  %v599_v5 = vunpack.c.l.b16 %v527_v51  ;;  %v479_v10 = vmax.f32 %v447_v49, 0.0 }
  0x69   : > { %v926_v41 = vshll.u32 %v3450_v50, 16  ;;  %v600_v9 = vunpack.c.l.b16 %v528_v59  ;;  %v3455_v13 = vsel %vm833_vm3, %v864_v61, %v868_v24  ;;  %v480_v18 = vmax.f32 %v448_v4, 0.0 }
  0x6a   : > { %v3459_v17 = vsel %vm3203_vm4, 0, %v686_v40  ;;  %v391_v22 = vmul.f32 %v3147_v2, %v2944_v56  ;;  %2777 = vmatmul.msk.bf16.gmra.mxu0 %vm1028_vm5, %v3455_v13  ;;  %v535_v30 = vpack.c.bf16 %v479_v10, %v479_v10  ;;  %v392_v24 = vmul.f32 %v3147_v2, %v2945_v60  ;;  %v2875_v2 = vld [vmem:[%s4270_s1 + $0x18] sm:$0xf] }
  0x6b   : > { %4312 = vst [vmem:[#allocation11_spill] sm:$0xff] %v3459_v17  ;;  %v919_v7 = vshrl.u32 %v3459_v17, 16  ;;  %v921_v25 = vshll.u32 %v3459_v17, 16  ;;  %v624_v26 = vpack.c.b16 %v600_v9, %v599_v5  ;;  %v536_v32 = vpack.c.bf16 %v480_v18, %v480_v18 }
  0x6c   : > { %v423_v38 = vadd.f32 %v3159_v8, %v391_v22  ;;  %v928_v44 = vrot.slane %v926_v41, 1  ;;  %v607_v51 = vunpack.c.l.b16 %v535_v30  ;;  %v424_v56 = vadd.f32 %v3159_v8, %v392_v24 }
  0x6d   : > { %v923_v39 = vrot.slane %v921_v25, 1  ;;  %v709_v47 = vshrl.u32 %v624_v26, 16  ;;  %v712_v49 = vshll.u32 %v624_v26, 16  ;;  %v608_v59 = vunpack.c.l.b16 %v536_v32 }
  0x6e   : > { %v455_v61 = vmax.f32 %v423_v38, 0.0  ;;  %v456_v23 = vmax.f32 %v424_v56, 0.0  ;;  %v1958_v26 = vsel %vm1077_vm0, %v2875_v2, 0 }
  0x6f   : > { %v924_v40 = vor.u32 %v923_v39, %v919_v7  ;;  %v711_v4 = vrot.slane %v709_v47, 7  ;;  %v628_v28 = vpack.c.b16 %v608_v59, %v607_v51  ;;  %1967 = vmatpush.bf16.msra.mxu2 %v1958_v26  ;;  %v2892_v51 = vld [vmem:[%s4270_s1 + $0x1c] sm:$0xf]  ;;  %v2858_v59 = vld [vmem:[%s4270_s1 + $0x14] sm:$0xf] }
  0x70   : > { %v511_v5 = vpack.c.bf16 %v455_v61, %v455_v61  ;;  %v512_v22 = vpack.c.bf16 %v456_v23, %v456_v23 }
  0x71   : > { %v3473_v60 = vsel %vm833_vm3, %v924_v40, %v928_v44  ;;  %v714_v41 = vor.u32 %v712_v49, %v711_v4  ;;  %v3477_v9 = vsel %vm3203_vm4, %v711_v4, 0  ;;  %v737_v10 = vshrl.u32 %v628_v28, 16 }
  0x72   : > { %4313 = vst [vmem:[#allocation12_spill] sm:$0xff] %v3473_v60  ;;  %2782 = vmatmul.msk.bf16.gmra.mxu1 %vm1028_vm5, %v3473_v60  ;;  %v974_v8 = vshll.u32 %v3477_v9, 16  ;;  %v740_v18 = vshll.u32 %v628_v28, 16  ;;  %v583_v25 = vunpack.c.l.b16 %v511_v5  ;;  %v584_v38 = vunpack.c.l.b16 %v512_v22  ;;  %v2909_v5 = vld [vmem:[%s4270_s1 + $0x20] sm:$0xf] }
  0x73   : > { %v3484_v7 = vsel %vm3203_vm4, 0, %v714_v41  ;;  %v739_v24 = vrot.slane %v737_v10, 7  ;;  %v2098_v40 = vsel %vm1077_vm0, %v2892_v51, 0  ;;  %v1829_v4 = vsel %vm1077_vm0, %v2858_v59, 0 }
  0x74   : > { %v967_v30 = vshrl.u32 %v3484_v7, 16  ;;  %v969_v32 = vshll.u32 %v3484_v7, 16  ;;  %v976_v44 = vrot.slane %v974_v8, 1  ;;  %v616_v49 = vpack.c.b16 %v584_v38, %v583_v25  ;;  %2107 = vmatpush.bf16.msra.mxu3 %v2098_v40  ;;  %1838 = vmatpush.bf16.msra.mxu1 %v1829_v4 }
  0x75   : > { %v742_v47 = vor.u32 %v740_v18, %v739_v24  ;;  %v3491_v23 = vsel %vm3203_vm4, %v739_v24, 0  ;;  %v2232_v22 = vsel %vm1077_vm0, %v2909_v5, 0  ;;  %v1327_v40 = vrot.slane %v3249_v58, 1 }
  0x76   : > { %v971_v39 = vrot.slane %v969_v32, 1  ;;  %v1022_v28 = vshll.u32 %v3491_v23, 16  ;;  %v653_v8 = vshrl.u32 %v616_v49, 16  ;;  %v656_v18 = vshll.u32 %v616_v49, 16  ;;  %2241 = vmatpush.bf16.msra.mxu0 %v2232_v22 }
  0x77   : > { %v3502_v61 = vsel %vm3203_vm4, 0, %v742_v47  ;;  %v1328_v4 = vrot.slane %v3243_v53, 1  ;;  %v1331_v53 = vrot.slane %v3314_v42, 1 }
  0x78   : > { %v972_v56 = vor.u32 %v971_v39, %v967_v30  ;;  %v1015_v2 = vshrl.u32 %v3502_v61, 16  ;;  %v1017_v41 = vshll.u32 %v3502_v61, 16  ;;  %v1024_v26 = vrot.slane %v1022_v28, 1 }
  0x79   : > { %v655_v30 = vrot.slane %v653_v8, 7  ;;  %v1333_v8 = vrot.slane %v3435_v15, 1 }
  0x7a   : > { %v3512_v10 = vsel %vm833_vm3, %v972_v56, %v976_v44  ;;  %v1019_v25 = vrot.slane %v1017_v41, 1 }
  0x7b   : > { %2786 = vmatmul.msk.bf16.gmra.mxu2 %vm1028_vm5, %v3512_v10  ;;  %v658_v24 = vor.u32 %v656_v18, %v655_v30  ;;  %v817_v38 = vsel %vm3203_vm4, %v655_v30, 0  ;;  %v1339_v30 = vrot.slane %v3224_v34, 1 }
  0x7c   : > { %v1020_v32 = vor.u32 %v1019_v25, %v1015_v2  ;;  %v878_v39 = vshll.u32 %v817_v38, 16  ;;  %v1329_v2 = vsel %vm1326_vm6, %v1327_v40, %v1328_v4  ;;  %v1343_v40 = vrot.slane %v3294_v0, 1 }
  0x7d   : > { %v3524_v44 = vsel %vm3203_vm4, 0, %v658_v24 }
  0x7e   : > { %v3520_v47 = vsel %vm833_vm3, %v1020_v32, %v1024_v26  ;;  %v871_v28 = vshrl.u32 %v3524_v44, 16  ;;  %v873_v49 = vshll.u32 %v3524_v44, 16  ;;  %v880_v59 = vrot.slane %v878_v39, 1 }
  0x7f   : > { %2790 = vmatmul.msk.bf16.gmra.mxu3 %vm1028_vm5, %v3520_v47  ;;  %v1336_v18 = vrot.slane %v3524_v44, 1  ;;  %v1340_v32 = vrot.slane %v3210_v27, 1 }
  0x80   : > { %v875_v51 = vrot.slane %v873_v49, 1 }
  0x82   : > { %2791 = vmatmul.msk.bf16.vlgmr.msrb.gmra.mxu1 %vm1028_vm5, %v3249_v58  ;;  %v876_v56 = vor.u32 %v875_v51, %v871_v28  ;;  %v1330_v58 = vrot.slane %v3339_v55, 1  ;;  %v3598_v28 = vsel %vm1326_vm6, %v1339_v30, %v1340_v32 }
  0x83   : > { %4315 = vst [vmem:[#allocation14_spill] sm:$0xff] %v3598_v28 }
  0x84   : > { %v3535_v5 = vsel %vm833_vm3, %v876_v56, %v880_v59  ;;  %v3550_v41 = vsel %vm1326_vm6, %v1330_v58, %v1331_v53  ;;  %v1342_v56 = vrot.slane %v3301_v11, 1 }
  0x85   : > { %2778 = vmatmul.msk.bf16.gmra.mxu0 %vm1028_vm5, %v3535_v5 }
  0x8b   : > { %2808 = vmatmul.msk.bf16.vlgmr.msrb.gmra.mxu2 %vm1028_vm5, %v1329_v2  ;;  %v3621_v2 = vsel %vm1326_vm6, %v1342_v56, %v1343_v40 }
  0x8c   : > { %4317 = vst [vmem:[#allocation16_spill] sm:$0xff] %v3621_v2 }
  0x8f   : > { %2825 = vmatmul.msk.bf16.vlgmr.msrb.gmra.mxu3 %vm1028_vm5, %v3339_v55 }
  0x92   : > { %2792 = vmatmul.msk.bf16.gmra.mxu1 %vm1028_vm5, %v3339_v55  ;;  %v1334_v55 = vrot.slane %v3428_v3, 1  ;;  %v1337_v3 = vrot.slane %v817_v38, 1 }
  0x94   : > { %v3563_v42 = vsel %vm1326_vm6, %v1333_v8, %v1334_v55  ;;  %v3577_v22 = vsel %vm1326_vm6, %v1336_v18, %v1337_v3  ;;  %v1345_v55 = vrot.slane %v3382_v62, 1  ;;  %v1346_v18 = vrot.slane %v3377_v16, 1 }
  0x95   : > { %2842 = vmatmul.msk.bf16.vlgmr.msrb.gmra.mxu0 %vm1028_vm5, %v3363_v36 }
  0x96   : > { %v3644_v56 = vsel %vm1326_vm6, %v1345_v55, %v1346_v18  ;;  %v1348_v55 = vrot.slane %v3459_v17, 1  ;;  %v1349_v18 = vrot.slane %v3450_v50, 1 }
  0x97   : > { %4320 = vst [vmem:[#allocation19_spill] sm:$0xff] %v3644_v56 }
  0x9b   : > { %2809 = vmatmul.msk.bf16.gmra.mxu2 %vm1028_vm5, %v3550_v41 }
  0x9f   : > { %2826 = vmatmul.msk.bf16.gmra.mxu3 %vm1028_vm5, %v3435_v15 }
  0xa2   : > { %2793 = vmatmul.msk.bf16.gmra.mxu1 %vm1028_vm5, %v3435_v15 }
  0xa5   : > { %2843 = vmatmul.msk.bf16.gmra.mxu0 %vm1028_vm5, %v3455_v13 }
  0xab   : > { %2810 = vmatmul.msk.bf16.gmra.mxu2 %vm1028_vm5, %v3563_v42  ;;  %v3571_v36 = vpop.f32.mrf.mxu1 }
  0xaf   : > { %2827 = vmatmul.msk.bf16.gmra.mxu3 %vm1028_vm5, %v3524_v44 }
  0xb1   : > { %v1090_v39 = vpop.f32.mrf.mxu0 }
  0xb2   : > { %2794 = vmatmul.msk.bf16.gmra.mxu1 %vm1028_vm5, %v3524_v44  ;;  %v3587_v26 = vpop.f32.mrf.mxu2 }
  0xb3   : > { %v3581_v25 = vpop.f32.mrf.mxu1 }
  0xb4   : > { %v3593_v24 = vpop.f32.mrf.mxu3 }
  0xb5   : > { %2844 = vmatmul.msk.bf16.gmra.mxu0 %vm1028_vm5, %v3535_v5  ;;  %4314 = vst [vmem:[#allocation13_spill] sm:$0xff] %v3593_v24 }
  0xb9   : > { %v3610_v59 = vpop.f32.mrf.mxu0 }
  0xba   : > { %v3602_v49 = vpop.f32.mrf.mxu2 }
  0xbb   : > { %2811 = vmatmul.msk.bf16.gmra.mxu2 %vm1028_vm5, %v3577_v22 }
  0xbc   : > { %v3606_v27 = vpop.f32.mrf.mxu3 }
  0xbd   : > { %4316 = vst [vmem:[#allocation15_spill] sm:$0xff] %v3606_v27 }
  0xbf   : > { %2828 = vmatmul.msk.bf16.gmra.mxu3 %vm1028_vm5, %v3224_v34 }
  0xc2   : > { %2795 = vmatmul.msk.bf16.gmra.mxu1 %vm1028_vm5, %v3224_v34  ;;  %v3595_v38 = vpop.f32.mrf.mxu1 }
  0xc5   : > { %2845 = vmatmul.msk.bf16.gmra.mxu0 %vm1028_vm5, %v3257_v1 }
  0xc9   : > { %v1095_v8 = vpop.f32.mrf.mxu0 }
  0xca   : > { %v3608_v51 = vpop.f32.mrf.mxu1 }
  0xcb   : > { %2812 = vmatmul.msk.bf16.gmra.mxu2 %vm1028_vm5, %v3598_v28 }
  0xcd   : > { %v3616_v4 = vpop.f32.mrf.mxu2 }
  0xcf   : > { %2829 = vmatmul.msk.bf16.gmra.mxu3 %vm1028_vm5, %v3301_v11 }
  0xd0   : > { %v3625_v58 = vpop.f32.mrf.mxu3 }
  0xd1   : > { %4318 = vst [vmem:[#allocation17_spill] sm:$0xff] %v3625_v58  ;;  %v1097_v32 = vpop.f32.mrf.mxu0 }
  0xd2   : > { %2796 = vmatmul.msk.bf16.gmra.mxu1 %vm1028_vm5, %v3301_v11 }
  0xd5   : > { %2846 = vmatmul.msk.bf16.gmra.mxu0 %vm1028_vm5, %v3326_v48  ;;  %v3631_v0 = vpop.f32.mrf.mxu2 }
  0xd8   : > { %v3637_v3 = vpop.f32.mrf.mxu3 }
  0xd9   : > { %v3627_v53 = vpop.f32.mrf.mxu1  ;;  %4319 = vst [vmem:[#allocation18_spill] sm:$0xff] %v3637_v3 }
  0xdb   : > { %2813 = vmatmul.msk.bf16.gmra.mxu2 %vm1028_vm5, %v3621_v2 }
  0xdf   : > { %2830 = vmatmul.msk.bf16.gmra.mxu3 %vm1028_vm5, %v3382_v62 }
  0xe1   : > { %v3639_v30 = vpop.f32.mrf.mxu1 }
  0xe2   : > { %2797 = vmatmul.msk.bf16.gmra.mxu1 %vm1028_vm5, %v3382_v62 }
  0xe4   : > { %v3646_v40 = vpop.f32.mrf.mxu2 }
  0xe5   : > { %2847 = vmatmul.msk.bf16.gmra.mxu0 %vm1028_vm5, %v3403_v14 }
  0xe7   : > { %v1100_v16 = vpop.f32.mrf.mxu0 }
  0xe9   : > { %v3650_v58 = vpop.f32.mrf.mxu3 }
  0xea   : > { %4321 = vst [vmem:[#allocation20_spill] sm:$0xff] %v3650_v58  ;;  %v3667_v58 = vsel %vm1326_vm6, %v1348_v55, %v1349_v18  ;;  %v1351_v55 = vrot.slane %v3228_v35, 1  ;;  %v1352_v18 = vrot.slane %v3214_v29, 1 }
  0xeb   : > { %2814 = vmatmul.msk.bf16.gmra.mxu2 %vm1028_vm5, %v3644_v56  ;;  %4323 = vst [vmem:[#allocation22_spill] sm:$0xff] %v3667_v58 }
  0xec   : > { %v3658_v3 = vpop.f32.mrf.mxu2 }
  0xed   : > { %4322 = vst [vmem:[#allocation21_spill] sm:$0xff] %v3658_v3 }
  0xef   : > { %v3652_v27 = vpop.f32.mrf.mxu1  ;;  %2831 = vmatmul.msk.bf16.gmra.mxu3 %vm1028_vm5, %v3459_v17  ;;  %v1102_v24 = vpop.f32.mrf.mxu0 }
  0xf1   : > { %v3669_v14 = vpop.f32.mrf.mxu3 }
  0xf2   : > { %2798 = vmatmul.msk.bf16.gmra.mxu1 %vm1028_vm5, %v3459_v17  ;;  %4324 = vst [vmem:[#allocation23_spill] sm:$0xff] %v3669_v14  ;;  %v3688_v17 = vsel %vm1326_vm6, %v1351_v55, %v1352_v18 }
  0xf3   : > { %4328 = vst [vmem:[#allocation27_spill] sm:$0xff] %v3688_v17 }
  0xf5   : > { %2848 = vmatmul.msk.bf16.gmra.mxu0 %vm1028_vm5, %v3473_v60 }
  0xf7   : > { %v3664_v56 = vpop.f32.mrf.mxu1 }
  0xfb   : > { %2815 = vmatmul.msk.bf16.gmra.mxu2 %vm1028_vm5, %v3667_v58 }
  0xfe   : > { %v3673_v62 = vpop.f32.mrf.mxu2 }
  0xff   : > { %4325 = vst [vmem:[#allocation24_spill] sm:$0xff] %v3673_v62  ;;  %v1214_v2 = vpop.f32.mrf.mxu1  ;;  %2832 = vmatmul.msk.bf16.gmra.mxu3 %vm1028_vm5, %v3228_v35 }
 0x100   : > { %v1215_v62 = vadd.f32 %v1214_v2, %v1090_v39 }
 0x102   : > { %2799 = vmatmul.msk.bf16.gmra.mxu1 %vm1028_vm5, %v3228_v35  ;;  %v3679_v50 = vpop.f32.mrf.mxu3  ;;  %v1105_v60 = vpop.f32.mrf.mxu0 }
 0x103   : > { %4326 = vst [vmem:[#allocation25_spill] sm:$0xff] %v3679_v50 }
 0x105   : > { %2849 = vmatmul.msk.bf16.gmra.mxu0 %vm1028_vm5, %v3262_v6 }
 0x106   : > { %v3683_v14 = vpop.f32.mrf.mxu2 }
 0x107   : > { %4327 = vst [vmem:[#allocation26_spill] sm:$0xff] %v3683_v14  ;;  %v1216_v58 = vpop.f32.mrf.mxu1 }
 0x108   : > { %v1217_v3 = vadd.f32 %v1216_v58, %v3610_v59 }
 0x10a   : > { %v3690_v48 = vpop.f32.mrf.mxu3  ;;  %v3694_v50 = vpop.f32.mrf.mxu0 }
 0x10b   : > { %4329 = vst [vmem:[#allocation28_spill] sm:$0xff] %v3690_v48  ;;  %2816 = vmatmul.msk.bf16.gmra.mxu2 %vm1028_vm5, %v3688_v17  ;;  %v1354_v48 = vrot.slane %v3318_v43, 1  ;;  %v1355_v17 = vrot.slane %v3308_v31, 1 }
 0x10e   : > { %v1437_v35 = vpop.f32.mrf.mxu2 }
 0x10f   : > { %v1517_v11 = vadd.f32 %v1437_v35, %v1215_v62  ;;  %v1219_v29 = vpop.f32.mrf.mxu1  ;;  %2833 = vmatmul.msk.bf16.gmra.mxu3 %vm1028_vm5, %v3318_v43 }
 0x110   : > { %v1220_v14 = vadd.f32 %v1219_v29, %v1095_v8  ;;  %v3708_v8 = vsel %vm1326_vm6, %v1354_v48, %v1355_v17 }
 0x112   : > { %2800 = vmatmul.msk.bf16.gmra.mxu1 %vm1028_vm5, %v3318_v43  ;;  %v1566_v55 = vpop.f32.mrf.mxu3  ;;  %v1706_v18 = vpop.f32.mrf.mxu0 }
 0x113   : > { %v1646_v6 = vadd.f32 %v1566_v55, %v1517_v11 }
 0x115   : > { %v3703_v2 = vadd.f32 %v1706_v18, %v1646_v6  ;;  %2850 = vmatmul.msk.bf16.gmra.mxu0 %vm1028_vm5, %v3350_v19  ;;  %v1357_v18 = vrot.slane %v3396_v63, 1 }
 0x116   : > { %v1439_v39 = vpop.f32.mrf.mxu2 }
 0x117   : > { %v1518_v35 = vadd.f32 %v1439_v39, %v1217_v3  ;;  %v1221_v62 = vpop.f32.mrf.mxu1  ;;  %v1358_v39 = vrot.slane %v3390_v54, 1 }
 0x118   : > { %v1222_v29 = vadd.f32 %v1221_v62, %v1097_v32 }
 0x11a   : > { %v1568_v28 = vpop.f32.mrf.mxu3  ;;  %v1708_v11 = vpop.f32.mrf.mxu0 }
 0x11b   : > { %2817 = vmatmul.msk.bf16.gmra.mxu2 %vm1028_vm5, %v3708_v8  ;;  %v1647_v31 = vadd.f32 %v1568_v28, %v1518_v35 }
 0x11d   : > { %v3712_v59 = vadd.f32 %v1708_v11, %v1647_v31 }
 0x11e   : > { %v1442_v55 = vpop.f32.mrf.mxu2 }
 0x11f   : > { %v1519_v6 = vadd.f32 %v1442_v55, %v1220_v14  ;;  %v1224_v58 = vpop.f32.mrf.mxu1  ;;  %2834 = vmatmul.msk.bf16.gmra.mxu3 %vm1028_vm5, %v3396_v63 }
 0x120   : > { %v1225_v3 = vadd.f32 %v1224_v58, %v1100_v16  ;;  %v3725_v16 = vsel %vm1326_vm6, %v1357_v18, %v1358_v39  ;;  %v1360_v39 = vrot.slane %v3484_v7, 1 }
 0x122   : > { %2801 = vmatmul.msk.bf16.gmra.mxu1 %vm1028_vm5, %v3396_v63  ;;  %v1571_v48 = vpop.f32.mrf.mxu3  ;;  %v1711_v17 = vpop.f32.mrf.mxu0 }
 0x123   : > { %v1648_v32 = vadd.f32 %v1571_v48, %v1519_v6 }
 0x125   : > { %v3720_v35 = vadd.f32 %v1711_v17, %v1648_v32  ;;  %2851 = vmatmul.msk.bf16.gmra.mxu0 %vm1028_vm5, %v3420_v57 }
 0x126   : > { %v1444_v28 = vpop.f32.mrf.mxu2 }
 0x127   : > { %v1520_v14 = vadd.f32 %v1444_v28, %v1222_v29  ;;  %v1226_v62 = vpop.f32.mrf.mxu1  ;;  %v1361_v28 = vrot.slane %v3477_v9, 1 }
 0x128   : > { %v1227_v11 = vadd.f32 %v1226_v62, %v1102_v24 }
 0x12a   : > { %v1573_v31 = vpop.f32.mrf.mxu3  ;;  %v1713_v55 = vpop.f32.mrf.mxu0 }
 0x12b   : > { %2818 = vmatmul.msk.bf16.gmra.mxu2 %vm1028_vm5, %v3725_v16  ;;  %v1649_v6 = vadd.f32 %v1573_v31, %v1520_v14 }
 0x12d   : > { %v3729_v54 = vadd.f32 %v1713_v55, %v1649_v6 }
 0x12e   : > { %v1447_v58 = vpop.f32.mrf.mxu2 }
 0x12f   : > { %v1521_v48 = vadd.f32 %v1447_v58, %v1225_v3  ;;  %v1229_v17 = vpop.f32.mrf.mxu1  ;;  %2835 = vmatmul.msk.bf16.gmra.mxu3 %vm1028_vm5, %v3484_v7 }
 0x130   : > { %v1230_v29 = vadd.f32 %v1229_v17, %v1105_v60  ;;  %v3742_v60 = vsel %vm1326_vm6, %v1360_v39, %v1361_v28  ;;  %v1363_v39 = vrot.slane %v3237_v46, 1  ;;  %v1364_v28 = vrot.slane %v3220_v33, 1 }
 0x132   : > { %2802 = vmatmul.msk.bf16.gmra.mxu1 %vm1028_vm5, %v3484_v7  ;;  %v1576_v32 = vpop.f32.mrf.mxu3  ;;  %v1716_v24 = vpop.f32.mrf.mxu0 }
 0x133   : > { %v1650_v18 = vadd.f32 %v1576_v32, %v1521_v48 }
 0x135   : > { %v3737_v62 = vadd.f32 %v1716_v24, %v1650_v18  ;;  %2852 = vmatmul.msk.bf16.gmra.mxu0 %vm1028_vm5, %v3512_v10 }
 0x136   : > { %v1449_v14 = vpop.f32.mrf.mxu2 }
 0x137   : > { %v1522_v3 = vadd.f32 %v1449_v14, %v1227_v11  ;;  %v1231_v31 = vpop.f32.mrf.mxu1 }
 0x138   : > { %v1232_v55 = vadd.f32 %v1231_v31, %v3694_v50 }
 0x13a   : > { %v1578_v6 = vpop.f32.mrf.mxu3  ;;  %v1718_v58 = vpop.f32.mrf.mxu0 }
 0x13b   : > { %2819 = vmatmul.msk.bf16.gmra.mxu2 %vm1028_vm5, %v3742_v60  ;;  %v1651_v48 = vadd.f32 %v1578_v6, %v1522_v3  ;;  %v3760_v6 = vsel %vm1326_vm6, %v1363_v39, %v1364_v28  ;;  %v3049_v39 = vld [vmem:[%s4272_s3] ss:$0 sm:$0xff] }
 0x13d   : > { %v3747_v17 = vadd.f32 %v1718_v58, %v1651_v48  ;;  %v3016_v58 = vld [vmem:[%s3142_s30 + $0x78] sm:$0xff]  }
 0x13e   : > { %v1452_v9 = vpop.f32.mrf.mxu2 }
 0x13f   : > { %4330 = vst [vmem:[#allocation29_spill] sm:$0xff] %v3747_v17  ;;  %v1523_v32 = vadd.f32 %v1452_v9, %v1230_v29  ;;  %v1234_v24 = vpop.f32.mrf.mxu1  ;;  %2836 = vmatmul.msk.bf16.gmra.mxu3 %vm1028_vm5, %v3237_v46 }
 0x140   : > { %v1235_v33 = vadd.f32 %v1234_v24, %v3571_v36 }
 0x142   : > { %2803 = vmatmul.msk.bf16.gmra.mxu1 %vm1028_vm5, %v3237_v46  ;;  %v1581_v11 = vpop.f32.mrf.mxu3  ;;  %v1721_v50 = vpop.f32.mrf.mxu0 }
 0x143   : > { %v1652_v18 = vadd.f32 %v1581_v11, %v1523_v32  ;;  %v2996_v11 = vunpack.c.l.bf16 %v3016_v58 }
 0x145   : > { %v3755_v3 = vadd.f32 %v1721_v50, %v1652_v18  ;;  %2853 = vmatmul.msk.bf16.gmra.mxu0 %vm1028_vm5, %v3268_v12  ;;  %v2997_v50 = vunpack.c.h.bf16 %v3016_v58  ;;  %v417_v28 = vmul.f32 %v3049_v39, %v2996_v11  ;;  %v1366_v58 = vrot.slane %v3334_v52, 1 }
 0x146   : > { %v1454_v14 = vpop.f32.mrf.mxu2 }
 0x147   : > { %4331 = vst [vmem:[#allocation30_spill] sm:$0xff] %v3755_v3  ;;  %v1524_v29 = vadd.f32 %v1454_v14, %v1232_v55  ;;  %v1236_v31 = vpop.f32.mrf.mxu1  ;;  %v418_v14 = vmul.f32 %v3049_v39, %v2997_v50 }
 0x14a   : > { %v1583_v48 = vpop.f32.mrf.mxu3  ;;  %v1723_v9 = vpop.f32.mrf.mxu0 }
 0x14b   : > { %2820 = vmatmul.msk.bf16.gmra.mxu2 %vm1028_vm5, %v3760_v6  ;;  %v1653_v32 = vadd.f32 %v1583_v48, %v1524_v29  ;;  %v1367_v48 = vrot.slane %v3322_v45, 1 }
 0x14d   : > { %v3766_v3 = vadd.f32 %v1723_v9, %v1653_v32  ;;  %v1237_v9 = vadd.f32 %v1236_v31, %v3581_v25  ;;  %v3050_v32 = vld [vmem:[%s4273_s4] ss:$0 sm:$0xff] }
 0x14e   : > { %v1457_v18 = vpop.f32.mrf.mxu2 }
 0x14f   : > { %4332 = vst [vmem:[#allocation31_spill] sm:$0xff] %v3766_v3  ;;  %v1525_v17 = vadd.f32 %v1457_v18, %v1235_v33  ;;  %v1239_v55 = vpop.f32.mrf.mxu1  ;;  %2837 = vmatmul.msk.bf16.gmra.mxu3 %vm1028_vm5, %v3334_v52  ;;  %v449_v33 = vadd.f32 %v3050_v32, %v417_v28  ;;  %v450_v18 = vadd.f32 %v3050_v32, %v418_v14 }
 0x151   : > { %v3788_v45 = vmax.f32 %v449_v33, 0.0  ;;  %v3790_v25 = vmax.f32 %v450_v18, 0.0 }
 0x152   : > { %2804 = vmatmul.msk.bf16.gmra.mxu1 %vm1028_vm5, %v3334_v52  ;;  %v1586_v36 = vpop.f32.mrf.mxu3  ;;  %v1726_v24 = vpop.f32.mrf.mxu0 }
 0x153   : > { %v1654_v29 = vadd.f32 %v1586_v36, %v1525_v17  ;;  %v3786_v36 = vsel %vm1326_vm6, %v1366_v58, %v1367_v48  ;;  %4334 = vst [vmem:[#allocation33_spill] sm:$0xff] %v3788_v45 }
 0x154   : > { %4335 = vst [vmem:[#allocation34_spill] sm:$0xff] %v3790_v25 }
 0x155   : > { %v3781_v50 = vadd.f32 %v1726_v24, %v1654_v29  ;;  %2854 = vmatmul.msk.bf16.gmra.mxu0 %vm1028_vm5, %v3358_v20  ;;  %v1240_v24 = vadd.f32 %v1239_v55, %v3595_v38  ;;  %v537_v29 = vpack.c.bf16 %v3788_v45, %v3788_v45  ;;  %v4337_v45 = vld [vmem:[#allocation9_spill] sm:$0xff] }
 0x156   : > { %v1459_v11 = vpop.f32.mrf.mxu2 }
 0x157   : > { %4333 = vst [vmem:[#allocation32_spill] sm:$0xff] %v3781_v50  ;;  %v1526_v39 = vadd.f32 %v1459_v11, %v1237_v9  ;;  %v1241_v17 = vpop.f32.mrf.mxu1  ;;  %v538_v9 = vpack.c.bf16 %v3790_v25, %v3790_v25  ;;  %v609_v18 = vunpack.c.l.b16 %v537_v29  ;;  %v1370_v25 = vrot.slane %v4337_v45, 1 }
 0x159   : > { %v610_v11 = vunpack.c.l.b16 %v538_v9 }
 0x15a   : > { %v1588_v31 = vpop.f32.mrf.mxu3  ;;  %v1728_v28 = vpop.f32.mrf.mxu0 }
 0x15b   : > { %2821 = vmatmul.msk.bf16.gmra.mxu2 %vm1028_vm5, %v3786_v36  ;;  %v1655_v14 = vadd.f32 %v1588_v31, %v1526_v39  ;;  %v1369_v31 = vrot.slane %v3414_v37, 1 }
 0x15d   : > { %v3799_v48 = vadd.f32 %v1728_v28, %v1655_v14  ;;  %v1242_v28 = vadd.f32 %v1241_v17, %v3608_v51  ;;  %v629_v14 = vpack.c.b16 %v610_v11, %v609_v18  ;;  %v3813_v50 = vsel %vm1326_vm6, %v1369_v31, %v1370_v25 }
 0x15e   : > { %v1462_v58 = vpop.f32.mrf.mxu2 }
 0x15f   : > { %4336 = vst [vmem:[#allocation35_spill] sm:$0xff] %v3799_v48  ;;  %v1527_v32 = vadd.f32 %v1462_v58, %v1240_v24  ;;  %v1244_v33 = vpop.f32.mrf.mxu1  ;;  %2838 = vmatmul.msk.bf16.gmra.mxu3 %vm1028_vm5, %v3414_v37  ;;  %v4339_v48 = vld [vmem:[#allocation10_spill] sm:$0xff]  ;;  %v744_v3 = vshrl.u32 %v629_v14, 16  ;;  %v747_v18 = vshll.u32 %v629_v14, 16 }
 0x160   : > { %v1245_v51 = vadd.f32 %v1244_v33, %v3627_v53  ;;  %v1373_v53 = vrot.slane %v3491_v23, 1 }
 0x161   : > { %v746_v17 = vrot.slane %v744_v3, 7 }
 0x162   : > { %2805 = vmatmul.msk.bf16.gmra.mxu1 %vm1028_vm5, %v3414_v37  ;;  %v1591_v38 = vpop.f32.mrf.mxu3  ;;  %v1731_v55 = vpop.f32.mrf.mxu0 }
 0x163   : > { %v1656_v39 = vadd.f32 %v1591_v38, %v1527_v32  ;;  %v749_v25 = vor.u32 %v747_v18, %v746_v17  ;;  %v3841_v23 = vsel %vm3203_vm4, %v746_v17, 0 }
 0x165   : > { %v3808_v58 = vadd.f32 %v1731_v55, %v1656_v39  ;;  %2855 = vmatmul.msk.bf16.gmra.mxu0 %vm1028_vm5, %v4339_v48  ;;  %v3829_v33 = vsel %vm3203_vm4, 0, %v749_v25  ;;  %v1685_v25 = vshll.u32 %v3841_v23, 16 }
 0x166   : > { %v1464_v24 = vpop.f32.mrf.mxu2  ;;  %v1680_v18 = vshll.u32 %v3829_v33, 16 }
 0x167   : > { %4338 = vst [vmem:[#allocation9_spill] sm:$0xff] %v3808_v58  ;;  %v1528_v29 = vadd.f32 %v1464_v24, %v1242_v28  ;;  %v1246_v9 = vpop.f32.mrf.mxu1 }
 0x168   : > { %v1247_v3 = vadd.f32 %v1246_v9, %v3639_v30 }
 0x16a   : > { %v1593_v32 = vpop.f32.mrf.mxu3  ;;  %v1733_v45 = vpop.f32.mrf.mxu0 }
 0x16b   : > { %2822 = vmatmul.msk.bf16.gmra.mxu2 %vm1028_vm5, %v3813_v50  ;;  %v1657_v38 = vadd.f32 %v1593_v32, %v1528_v29  ;;  %v1372_v29 = vrot.slane %v3502_v61, 1 }
 0x16d   : > { %v3818_v55 = vadd.f32 %v1733_v45, %v1657_v38 }
 0x16e   : > { %v1467_v11 = vpop.f32.mrf.mxu2 }
 0x16f   : > { %v1529_v39 = vadd.f32 %v1467_v11, %v1245_v51  ;;  %v1249_v28 = vpop.f32.mrf.mxu1  ;;  %2839 = vmatmul.msk.bf16.gmra.mxu3 %vm1028_vm5, %v3502_v61  ;;  %v3836_v51 = vsel %vm1326_vm6, %v1372_v29, %v1373_v53  ;;  %v1678_v11 = vshrl.u32 %v3829_v33, 16 }
 0x172   : > { %2806 = vmatmul.msk.bf16.gmra.mxu1 %vm1028_vm5, %v3502_v61  ;;  %v1596_v31 = vpop.f32.mrf.mxu3  ;;  %v1736_v24 = vpop.f32.mrf.mxu0 }
 0x173   : > { %v1658_v58 = vadd.f32 %v1596_v31, %v1529_v39  ;;  %v1682_v39 = vrot.slane %v1680_v18, 1  ;;  %v1250_v31 = vadd.f32 %v1249_v28, %v3652_v27 }
 0x175   : > { %v3831_v32 = vadd.f32 %v1736_v24, %v1658_v58  ;;  %2856 = vmatmul.msk.bf16.gmra.mxu0 %vm1028_vm5, %v3520_v47  ;;  %v1683_v17 = vor.u32 %v1682_v39, %v1678_v11 }
 0x176   : > { %v1469_v14 = vpop.f32.mrf.mxu2 }
 0x177   : > { %v1530_v45 = vadd.f32 %v1469_v14, %v1247_v3  ;;  %v1251_v38 = vpop.f32.mrf.mxu1  ;;  %v1687_v14 = vrot.slane %v1685_v25, 1 }
 0x178   : > { %v1252_v27 = vadd.f32 %v1251_v38, %v3664_v56 }
 0x179   : > { %v3855_v18 = vsel %vm833_vm3, %v1683_v17, %v1687_v14 }
 0x17a   : > { %v1598_v30 = vpop.f32.mrf.mxu3  ;;  %v1738_v58 = vpop.f32.mrf.mxu0 }
 0x17b   : > { %2823 = vmatmul.msk.bf16.gmra.mxu2 %vm1028_vm5, %v3836_v51  ;;  %v1659_v9 = vadd.f32 %v1598_v30, %v1530_v45 }
 0x17d   : > { %v3848_v29 = vadd.f32 %v1738_v58, %v1659_v9 }
 0x17e   : > { %v1472_v24 = vpop.f32.mrf.mxu2 }
 0x17f   : > { %v1531_v53 = vadd.f32 %v1472_v24, %v1250_v31  ;;  %v1254_v3 = vpop.f32.mrf.mxu1  ;;  %2840 = vmatmul.msk.bf16.gmra.mxu3 %vm1028_vm5, %v3829_v33 }
 0x180   : > { %v1255_v31 = vadd.f32 %v1254_v3, %v3587_v26 }
 0x182   : > { %2859 = vmatmul.msk.bf16.vlgmr.msra.gmra.mxu1 %vm1028_vm5, %v3550_v41  ;;  %v1601_v45 = vpop.f32.mrf.mxu3  ;;  %v1741_v30 = vpop.f32.mrf.mxu0 }
 0x183   : > { %v1660_v21 = vadd.f32 %v1601_v45, %v1531_v53 }
 0x185   : > { %v3858_v58 = vadd.f32 %v1741_v30, %v1660_v21  ;;  %2857 = vmatmul.msk.bf16.gmra.mxu0 %vm1028_vm5, %v3855_v18 }
 0x186   : > { %v1474_v28 = vpop.f32.mrf.mxu2 }
 0x187   : > { %v1532_v9 = vadd.f32 %v1474_v28, %v1252_v27  ;;  %v1256_v11 = vpop.f32.mrf.mxu1 }
 0x18a   : > { %v1603_v39 = vpop.f32.mrf.mxu3  ;;  %v1743_v41 = vpop.f32.mrf.mxu0 }
 0x18b   : > { %2876 = vmatmul.msk.bf16.vlgmr.msra.gmra.mxu2 %vm1028_vm5, %v3435_v15  ;;  %v1661_v25 = vadd.f32 %v1603_v39, %v1532_v9  ;;  %v1257_v15 = vadd.f32 %v1256_v11, %v3602_v49 }
 0x18d   : > { %v3865_v53 = vadd.f32 %v1743_v41, %v1661_v25 }
 0x18e   : > { %v1477_v24 = vpop.f32.mrf.mxu2 }
 0x18f   : > { %v1533_v56 = vadd.f32 %v1477_v24, %v1255_v31  ;;  %v1259_v38 = vpop.f32.mrf.mxu1  ;;  %2893 = vmatmul.msk.bf16.vlgmr.msra.gmra.mxu3 %vm1028_vm5, %v3455_v13 }
 0x190   : > { %v1260_v9 = vadd.f32 %v1259_v38, %v3616_v4 }
 0x192   : > { %2860 = vmatmul.msk.bf16.gmra.mxu1 %vm1028_vm5, %v3563_v42  ;;  %v1606_v21 = vpop.f32.mrf.mxu3  ;;  %v1746_v17 = vpop.f32.mrf.mxu0 }
 0x193   : > { %v1662_v14 = vadd.f32 %v1606_v21, %v1533_v56 }
 0x195   : > { %v3872_v30 = vadd.f32 %v1746_v17, %v1662_v14  ;;  %2910 = vmatmul.msk.bf16.vlgmr.msra.gmra.mxu0 %vm1028_vm5, %v3563_v42 }
 0x196   : > { %v1479_v45 = vpop.f32.mrf.mxu2 }
 0x197   : > { %v1534_v26 = vadd.f32 %v1479_v45, %v1257_v15  ;;  %v1261_v3 = vpop.f32.mrf.mxu1 }
 0x19a   : > { %v1608_v27 = vpop.f32.mrf.mxu3  ;;  %v1748_v13 = vpop.f32.mrf.mxu0 }
 0x19b   : > { %2877 = vmatmul.msk.bf16.gmra.mxu2 %vm1028_vm5, %v3524_v44  ;;  %v1663_v28 = vadd.f32 %v1608_v27, %v1534_v26  ;;  %v1262_v44 = vadd.f32 %v1261_v3, %v3631_v0  ;;  %v4340_v3 = vld [vmem:[#allocation14_spill] sm:$0xff] }
 0x19d   : > { %v3879_v41 = vadd.f32 %v1748_v13, %v1663_v28  ;;  %v4341_v28 = vld [vmem:[#allocation21_spill] sm:$0xff] }
 0x19e   : > { %v1482_v39 = vpop.f32.mrf.mxu2 }
 0x19f   : > { %v1535_v49 = vadd.f32 %v1482_v39, %v1260_v9  ;;  %v1264_v11 = vpop.f32.mrf.mxu1  ;;  %2894 = vmatmul.msk.bf16.gmra.mxu3 %vm1028_vm5, %v3535_v5 }
 0x1a0   : > { %v1265_v14 = vadd.f32 %v1264_v11, %v3646_v40 }
 0x1a2   : > { %2861 = vmatmul.msk.bf16.gmra.mxu1 %vm1028_vm5, %v3577_v22  ;;  %v1611_v42 = vpop.f32.mrf.mxu3  ;;  %v1751_v25 = vpop.f32.mrf.mxu0 }
 0x1a3   : > { %v1664_v31 = vadd.f32 %v1611_v42, %v1535_v49  ;;  %v4342_v42 = vld [vmem:[#allocation5_spill] sm:$0xff] }
 0x1a5   : > { %v3886_v56 = vadd.f32 %v1751_v25, %v1664_v31  ;;  %2911 = vmatmul.msk.bf16.gmra.mxu0 %vm1028_vm5, %v3577_v22  ;;  %v4343_v31 = vld [vmem:[#allocation24_spill] sm:$0xff] }
 0x1a6   : > { %v1484_v24 = vpop.f32.mrf.mxu2 }
 0x1a7   : > { %v1536_v4 = vadd.f32 %v1484_v24, %v1262_v44  ;;  %v1266_v38 = vpop.f32.mrf.mxu1 }
 0x1aa   : > { %v1613_v21 = vpop.f32.mrf.mxu3  ;;  %v1753_v5 = vpop.f32.mrf.mxu0 }
 0x1ab   : > { %2878 = vmatmul.msk.bf16.gmra.mxu2 %vm1028_vm5, %v3224_v34  ;;  %v1665_v17 = vadd.f32 %v1613_v21, %v1536_v4  ;;  %v1267_v34 = vadd.f32 %v1266_v38, %v4341_v28 }
 0x1ad   : > { %v3893_v45 = vadd.f32 %v1753_v5, %v1665_v17  ;;  %v4344_v5 = vld [vmem:[#allocation6_spill] sm:$0xff]  ;;  %v4345_v17 = vld [vmem:[#allocation16_spill] sm:$0xff] }
 0x1ae   : > { %v1487_v15 = vpop.f32.mrf.mxu2 }
 0x1af   : > { %v1537_v0 = vadd.f32 %v1487_v15, %v1265_v14  ;;  %v1269_v26 = vpop.f32.mrf.mxu1  ;;  %2895 = vmatmul.msk.bf16.gmra.mxu3 %vm1028_vm5, %v3257_v1 }
 0x1b0   : > { %v1270_v44 = vadd.f32 %v1269_v26, %v4343_v31 }
 0x1b2   : > { %2862 = vmatmul.msk.bf16.gmra.mxu1 %vm1028_vm5, %v4340_v3  ;;  %v1616_v22 = vpop.f32.mrf.mxu3  ;;  %v1756_v27 = vpop.f32.mrf.mxu0 }
 0x1b3   : > { %v1666_v13 = vadd.f32 %v1616_v22, %v1537_v0 }
 0x1b5   : > { %v3900_v39 = vadd.f32 %v1756_v27, %v1666_v13  ;;  %2912 = vmatmul.msk.bf16.gmra.mxu0 %vm1028_vm5, %v4340_v3  ;;  %v4346_v3 = vld [vmem:[#allocation26_spill] sm:$0xff] }
 0x1b6   : > { %v1489_v9 = vpop.f32.mrf.mxu2 }
 0x1b7   : > { %v1538_v40 = vadd.f32 %v1489_v9, %v1267_v34  ;;  %v1271_v49 = vpop.f32.mrf.mxu1  ;;  %v4347_v9 = vld [vmem:[#allocation7_spill] sm:$0xff] }
 0x1b8   : > { %v1272_v22 = vadd.f32 %v1271_v49, %v4346_v3 }
 0x1ba   : > { %v1618_v11 = vpop.f32.mrf.mxu3  ;;  %v1758_v1 = vpop.f32.mrf.mxu0 }
 0x1bb   : > { %2879 = vmatmul.msk.bf16.gmra.mxu2 %vm1028_vm5, %v4342_v42  ;;  %v1667_v25 = vadd.f32 %v1618_v11, %v1538_v40  ;;  %v4348_v42 = vld [vmem:[#allocation13_spill] sm:$0xff] }
 0x1bd   : > { %v3907_v4 = vadd.f32 %v1758_v1, %v1667_v25 }
 0x1be   : > { %v1492_v24 = vpop.f32.mrf.mxu2 }
 0x1bf   : > { %v1539_v38 = vadd.f32 %v1492_v24, %v1270_v44  ;;  %v1274_v21 = vpop.f32.mrf.mxu1  ;;  %2896 = vmatmul.msk.bf16.gmra.mxu3 %vm1028_vm5, %v4344_v5  ;;  %v4349_v24 = vld [vmem:[#allocation8_spill] sm:$0xff] }
 0x1c0   : > { %v1275_v1 = vadd.f32 %v1274_v21, %v4348_v42 }
 0x1c2   : > { %2863 = vmatmul.msk.bf16.gmra.mxu1 %vm1028_vm5, %v4345_v17  ;;  %v1621_v14 = vpop.f32.mrf.mxu3  ;;  %v1761_v15 = vpop.f32.mrf.mxu0 }
 0x1c3   : > { %v1668_v0 = vadd.f32 %v1621_v14, %v1539_v38  ;;  %v4350_v38 = vld [vmem:[#allocation19_spill] sm:$0xff] }
 0x1c5   : > { %v3914_v13 = vadd.f32 %v1761_v15, %v1668_v0  ;;  %2913 = vmatmul.msk.bf16.gmra.mxu0 %vm1028_vm5, %v4345_v17  ;;  %v4351_v15 = vld [vmem:[#allocation15_spill] sm:$0xff] }
 0x1c6   : > { %v1494_v27 = vpop.f32.mrf.mxu2 }
 0x1c7   : > { %v1540_v26 = vadd.f32 %v1494_v27, %v1272_v22  ;;  %v1276_v28 = vpop.f32.mrf.mxu1 }
 0x1c8   : > { %v1277_v0 = vadd.f32 %v1276_v28, %v4351_v15  ;;  %v4356_v15 = vld [vmem:[#allocation18_spill] sm:$0xff] }
 0x1ca   : > { %v1623_v34 = vpop.f32.mrf.mxu3  ;;  %v1763_v40 = vpop.f32.mrf.mxu0 }
 0x1cb   : > { %2880 = vmatmul.msk.bf16.gmra.mxu2 %vm1028_vm5, %v4347_v9  ;;  %v1669_v11 = vadd.f32 %v1623_v34, %v1540_v26  ;;  %v4352_v34 = vld [vmem:[#allocation11_spill] sm:$0xff] }
 0x1cd   : > { %v3921_v31 = vadd.f32 %v1763_v40, %v1669_v11  ;;  %v4353_v11 = vld [vmem:[#allocation17_spill] sm:$0xff] }
 0x1ce   : > { %v1497_v25 = vpop.f32.mrf.mxu2 }
 0x1cf   : > { %v1541_v49 = vadd.f32 %v1497_v25, %v1275_v1  ;;  %v1279_v44 = vpop.f32.mrf.mxu1  ;;  %2897 = vmatmul.msk.bf16.gmra.mxu3 %vm1028_vm5, %v4349_v24  ;;  %v4354_v24 = vld [vmem:[#allocation12_spill] sm:$0xff] }
 0x1d0   : > { %v1280_v42 = vadd.f32 %v1279_v44, %v4353_v11 }
 0x1d2   : > { %2864 = vmatmul.msk.bf16.gmra.mxu1 %vm1028_vm5, %v4350_v38  ;;  %v1626_v5 = vpop.f32.mrf.mxu3  ;;  %v1766_v17 = vpop.f32.mrf.mxu0 }
 0x1d3   : > { %v1670_v14 = vadd.f32 %v1626_v5, %v1541_v49  ;;  %v4355_v5 = vld [vmem:[#allocation22_spill] sm:$0xff] }
 0x1d5   : > { %v3928_v22 = vadd.f32 %v1766_v17, %v1670_v14  ;;  %2914 = vmatmul.msk.bf16.gmra.mxu0 %vm1028_vm5, %v4350_v38 }
 0x1d6   : > { %v1499_v3 = vpop.f32.mrf.mxu2 }
 0x1d7   : > { %v1542_v21 = vadd.f32 %v1499_v3, %v1277_v0  ;;  %v1281_v27 = vpop.f32.mrf.mxu1 }
 0x1d8   : > { %v1282_v0 = vadd.f32 %v1281_v27, %v4356_v15 }
 0x1da   : > { %v1628_v26 = vpop.f32.mrf.mxu3  ;;  %v1768_v9 = vpop.f32.mrf.mxu0 }
 0x1db   : > { %2881 = vmatmul.msk.bf16.gmra.mxu2 %vm1028_vm5, %v4352_v34  ;;  %v1671_v40 = vadd.f32 %v1628_v26, %v1542_v21 }
 0x1dd   : > { %v3935_v25 = vadd.f32 %v1768_v9, %v1671_v40  ;;  %v4358_v9 = vld [vmem:[#allocation3_spill] sm:$0xff] }
 0x1de   : > { %v1502_v1 = vpop.f32.mrf.mxu2 }
 0x1df   : > { %v1543_v28 = vadd.f32 %v1502_v1, %v1280_v42  ;;  %v1284_v49 = vpop.f32.mrf.mxu1  ;;  %2898 = vmatmul.msk.bf16.gmra.mxu3 %vm1028_vm5, %v4354_v24  ;;  %v4359_v42 = vld [vmem:[#allocation20_spill] sm:$0xff] }
 0x1e0   : > { %v1285_v1 = vadd.f32 %v1284_v49, %v4359_v42 }
 0x1e2   : > { %2865 = vmatmul.msk.bf16.gmra.mxu1 %vm1028_vm5, %v4355_v5  ;;  %v1631_v38 = vpop.f32.mrf.mxu3  ;;  %v1771_v17 = vpop.f32.mrf.mxu0 }
 0x1e3   : > { %v1672_v14 = vadd.f32 %v1631_v38, %v1543_v28 }
 0x1e5   : > { %v3942_v21 = vadd.f32 %v1771_v17, %v1672_v14  ;;  %2915 = vmatmul.msk.bf16.gmra.mxu0 %vm1028_vm5, %v4355_v5  ;;  %v4360_v17 = vld [vmem:[#allocation4_spill] sm:$0xff]  ;;  %v4361_v14 = vld [vmem:[#allocation27_spill] sm:$0xff] }
 0x1e6   : > { %v1504_v3 = vpop.f32.mrf.mxu2 }
 0x1e7   : > { %4357 = vst [vmem:[#allocation10_spill] sm:$0xff] %v3942_v21  ;;  %v1544_v44 = vadd.f32 %v1504_v3, %v1282_v0  ;;  %v1286_v26 = vpop.f32.mrf.mxu1  ;;  %v4362_v3 = vld [vmem:[#allocation23_spill] sm:$0xff] }
 0x1ea   : > { %v1633_v34 = vpop.f32.mrf.mxu3  ;;  %v1773_v40 = vpop.f32.mrf.mxu0 }
 0x1eb   : > { %2882 = vmatmul.msk.bf16.gmra.mxu2 %vm1028_vm5, %v4358_v9  ;;  %v1673_v11 = vadd.f32 %v1633_v34, %v1544_v44  ;;  %v1287_v9 = vadd.f32 %v1286_v26, %v4362_v3 }
 0x1ed   : > { %v3949_v28 = vadd.f32 %v1773_v40, %v1673_v11 }
 0x1ee   : > { %v1507_v24 = vpop.f32.mrf.mxu2 }
 0x1ef   : > { %v1545_v27 = vadd.f32 %v1507_v24, %v1285_v1  ;;  %v1289_v38 = vpop.f32.mrf.mxu1  ;;  %2899 = vmatmul.msk.bf16.gmra.mxu3 %vm1028_vm5, %v4360_v17  ;;  %v4363_v1 = vld [vmem:[#allocation25_spill] sm:$0xff] }
 0x1f0   : > { %v1290_v24 = vadd.f32 %v1289_v38, %v4363_v1 }
 0x1f2   : > { %2866 = vmatmul.msk.bf16.gmra.mxu1 %vm1028_vm5, %v4361_v14  ;;  %v1636_v5 = vpop.f32.mrf.mxu3  ;;  %v1776_v15 = vpop.f32.mrf.mxu0 }
 0x1f3   : > { %v1674_v0 = vadd.f32 %v1636_v5, %v1545_v27 }
 0x1f5   : > { %v3956_v44 = vadd.f32 %v1776_v15, %v1674_v0  ;;  %2916 = vmatmul.msk.bf16.gmra.mxu0 %vm1028_vm5, %v4361_v14  ;;  %v4364_v0 = vld [vmem:[#allocation28_spill] sm:$0xff] }
 0x1f6   : > { %v1509_v21 = vpop.f32.mrf.mxu2 }
 0x1f7   : > { %v1546_v49 = vadd.f32 %v1509_v21, %v1287_v9  ;;  %v1291_v34 = vpop.f32.mrf.mxu1 }
 0x1fa   : > { %v1638_v40 = vpop.f32.mrf.mxu3  ;;  %v1778_v11 = vpop.f32.mrf.mxu0 }
 0x1fb   : > { %2883 = vmatmul.msk.bf16.gmra.mxu2 %vm1028_vm5, %v3318_v43  ;;  %v1675_v42 = vadd.f32 %v1638_v40, %v1546_v49  ;;  %v1292_v43 = vadd.f32 %v1291_v34, %v4364_v0 }
 0x1fd   : > { %v3963_v27 = vadd.f32 %v1778_v11, %v1675_v42 }
 0x1fe   : > { %v1512_v17 = vpop.f32.mrf.mxu2 }
 0x1ff   : > { %v1547_v26 = vadd.f32 %v1512_v17, %v1290_v24  ;;  %v1840_v5 = vpop.f32.mrf.mxu1  ;;  %2900 = vmatmul.msk.bf16.gmra.mxu3 %vm1028_vm5, %v3350_v19 }
 0x200   : > { %v1920_v42 = vadd.f32 %v1840_v5, %v3703_v2 }
 0x202   : > { %2867 = vmatmul.msk.bf16.gmra.mxu1 %vm1028_vm5, %v3708_v8  ;;  %v1641_v21 = vpop.f32.mrf.mxu3  ;;  %v1781_v14 = vpop.f32.mrf.mxu0 }
 0x203   : > { %v1676_v15 = vadd.f32 %v1641_v21, %v1547_v26 }
 0x205   : > { %v3970_v9 = vadd.f32 %v1781_v14, %v1676_v15  ;;  %2917 = vmatmul.msk.bf16.gmra.mxu0 %vm1028_vm5, %v3708_v8 }
 0x206   : > { %v1514_v3 = vpop.f32.mrf.mxu2 }
 0x207   : > { %v1548_v38 = vadd.f32 %v1514_v3, %v1292_v43  ;;  %v1842_v49 = vpop.f32.mrf.mxu1 }
 0x208   : > { %v1921_v5 = vadd.f32 %v1842_v49, %v3712_v59 }
 0x20a   : > { %v1643_v40 = vpop.f32.mrf.mxu3  ;;  %v1783_v19 = vpop.f32.mrf.mxu0 }
 0x20b   : > { %2884 = vmatmul.msk.bf16.gmra.mxu2 %vm1028_vm5, %v3396_v63  ;;  %v1677_v11 = vadd.f32 %v1643_v40, %v1548_v38  ;;  %v3986_v63 = vld [vmem:[%s4271_s2] ss:$0 sm:$0xff] }
 0x20d   : > { %v3977_v24 = vadd.f32 %v1783_v19, %v1677_v11 }
 0x20e   : > { %v1969_v1 = vpop.f32.mrf.mxu2 }
 0x20f   : > { %v1845_v34 = vpop.f32.mrf.mxu1  ;;  %2901 = vmatmul.msk.bf16.gmra.mxu3 %vm1028_vm5, %v3420_v57  ;;  %v2049_v17 = vadd.f32 %v1969_v1, %v1920_v42 }
 0x210   : > { %v1922_v49 = vadd.f32 %v1845_v34, %v3720_v35 }
 0x212   : > { %2868 = vmatmul.msk.bf16.gmra.mxu1 %vm1028_vm5, %v3725_v16  ;;  %v2109_v8 = vpop.f32.mrf.mxu3  ;;  %v2243_v26 = vpop.f32.mrf.mxu0 }
 0x213   : > { %v2189_v21 = vadd.f32 %v2109_v8, %v2049_v17 }
 0x215   : > { %v2323_v2 = vadd.f32 %v2243_v26, %v2189_v21  ;;  %2918 = vmatmul.msk.bf16.gmra.mxu0 %vm1028_vm5, %v3725_v16 }
 0x216   : > { %v1971_v14 = vpop.f32.mrf.mxu2 }
 0x217   : > { %v1847_v57 = vpop.f32.mrf.mxu1  ;;  %v2359_v15 = vadd.f32 %v3986_v63, %v2323_v2  ;;  %v2050_v0 = vadd.f32 %v1971_v14, %v1921_v5 }
 0x219   : > { %v2573_v43 = vpack.c.bf16 %v2359_v15, %v2359_v15  ;;  %v2467_v11 = vmul.f32 %v2359_v15, %v2359_v15  ;;  %v2398_v17 = vsel %vm1028_vm5, %v2359_v15, 0.0 }
 0x21a   : > { %v2111_v3 = vpop.f32.mrf.mxu3  ;;  %v2245_v59 = vpop.f32.mrf.mxu0 }
 0x21b   : > { %2885 = vmatmul.msk.bf16.gmra.mxu2 %vm1028_vm5, %v3484_v7  ;;  %2606 = vst.msk [vmem:[%s3997_s16] sm:$0xf] %vm2605_vm7, %v2573_v43  ;;  %v2190_v16 = vadd.f32 %v2111_v3, %v2050_v0  ;;  %v2499_v21 = vsel %vm1028_vm5, %v2467_v11, 0.0  ;;  %v1923_v0 = vadd.f32 %v1847_v57, %v3729_v54 }
 0x21d   : > { %v2324_v38 = vadd.f32 %v2245_v59, %v2190_v16 }
 0x21e   : > { %v1974_v40 = vpop.f32.mrf.mxu2 }
 0x21f   : > { %v1850_v19 = vpop.f32.mrf.mxu1  ;;  %v2360_v42 = vadd.f32 %v3986_v63, %v2324_v38  ;;  %2902 = vmatmul.msk.bf16.gmra.mxu3 %vm1028_vm5, %v3512_v10  ;;  %v2051_v1 = vadd.f32 %v1974_v40, %v1922_v49 }
 0x221   : > { %v2399_v7 = vsel %vm1028_vm5, %v2360_v42, 0.0  ;;  %v2468_v8 = vmul.f32 %v2360_v42, %v2360_v42  ;;  %v2574_v26 = vpack.c.bf16 %v2360_v42, %v2360_v42 }
 0x222   : > { %2869 = vmatmul.msk.bf16.gmra.mxu1 %vm1028_vm5, %v3742_v60  ;;  %v2400_v35 = vadd.f32 %v2399_v7, %v2398_v17  ;;  %v2114_v34 = vpop.f32.mrf.mxu3  ;;  %v2248_v5 = vpop.f32.mrf.mxu0  ;;  %v1924_v7 = vadd.f32 %v1850_v19, %v3737_v62 }
 0x223   : > { %v2500_v2 = vsel %vm1028_vm5, %v2468_v8, 0.0  ;;  %2607 = vst.msk [vmem:[%s3997_s16 + $0x4] sm:$0xf] %vm2605_vm7, %v2574_v26  ;;  %v2191_v10 = vadd.f32 %v2114_v34, %v2051_v1 }
 0x224   : > { %v2501_v14 = vadd.f32 %v2500_v2, %v2499_v21 }
 0x225   : > { %v2325_v15 = vadd.f32 %v2248_v5, %v2191_v10  ;;  %2919 = vmatmul.msk.bf16.gmra.mxu0 %vm1028_vm5, %v3742_v60 }
 0x226   : > { %v1976_v43 = vpop.f32.mrf.mxu2 }
 0x227   : > { %v1852_v3 = vpop.f32.mrf.mxu1  ;;  %v2361_v59 = vadd.f32 %v3986_v63, %v2325_v15  ;;  %v2052_v16 = vadd.f32 %v1976_v43, %v1923_v0 }
 0x229   : > { %v2401_v38 = vsel %vm1028_vm5, %v2361_v59, 0.0  ;;  %v2469_v49 = vmul.f32 %v2361_v59, %v2361_v59  ;;  %v2575_v40 = vpack.c.bf16 %v2361_v59, %v2361_v59 }
 0x22a   : > { %v2402_v11 = vadd.f32 %v2401_v38, %v2400_v35  ;;  %v2116_v42 = vpop.f32.mrf.mxu3  ;;  %v2250_v54 = vpop.f32.mrf.mxu0 }
 0x22b   : > { %2886 = vmatmul.msk.bf16.gmra.mxu2 %vm1028_vm5, %v3237_v46  ;;  %v2502_v1 = vsel %vm1028_vm5, %v2469_v49, 0.0  ;;  %2608 = vst.msk [vmem:[%s3997_s16 + $0x8] sm:$0xf] %vm2605_vm7, %v2575_v40  ;;  %v2192_v57 = vadd.f32 %v2116_v42, %v2052_v16 }
 0x22c   : > { %v2503_v60 = vadd.f32 %v2502_v1, %v2501_v14 }
 0x22d   : > { %v2326_v17 = vadd.f32 %v2250_v54, %v2192_v57 }
 0x22e   : > { %v1979_v8 = vpop.f32.mrf.mxu2 }
 0x22f   : > { %v1855_v26 = vpop.f32.mrf.mxu1  ;;  %v2362_v34 = vadd.f32 %v3986_v63, %v2326_v17  ;;  %2903 = vmatmul.msk.bf16.gmra.mxu3 %vm1028_vm5, %v3268_v12  ;;  %v2053_v35 = vadd.f32 %v1979_v8, %v1924_v7  ;;  %v4365_v12 = vld [vmem:[#allocation29_spill] sm:$0xff]  ;;  %v4366_v7 = vld [vmem:[#allocation30_spill] sm:$0xff] }
 0x230   : > { %v1925_v43 = vadd.f32 %v1852_v3, %v4365_v12  ;;  %v1926_v8 = vadd.f32 %v1855_v26, %v4366_v7 }
 0x231   : > { %v2403_v46 = vsel %vm1028_vm5, %v2362_v34, 0.0  ;;  %v2470_v21 = vmul.f32 %v2362_v34, %v2362_v34  ;;  %v2576_v2 = vpack.c.bf16 %v2362_v34, %v2362_v34 }
 0x232   : > { %2870 = vmatmul.msk.bf16.gmra.mxu1 %vm1028_vm5, %v3760_v6  ;;  %v2404_v5 = vadd.f32 %v2403_v46, %v2402_v11  ;;  %v2119_v10 = vpop.f32.mrf.mxu3  ;;  %v2253_v62 = vpop.f32.mrf.mxu0 }
 0x233   : > { %v2504_v14 = vsel %vm1028_vm5, %v2470_v21, 0.0  ;;  %2609 = vst.msk [vmem:[%s3997_s16 + $0xc] sm:$0xf] %vm2605_vm7, %v2576_v2  ;;  %v2193_v19 = vadd.f32 %v2119_v10, %v2053_v35 }
 0x234   : > { %v2505_v15 = vadd.f32 %v2504_v14, %v2503_v60 }
 0x235   : > { %v2327_v0 = vadd.f32 %v2253_v62, %v2193_v19  ;;  %2920 = vmatmul.msk.bf16.gmra.mxu0 %vm1028_vm5, %v3760_v6 }
 0x236   : > { %v1981_v59 = vpop.f32.mrf.mxu2 }
 0x237   : > { %v1857_v16 = vpop.f32.mrf.mxu1  ;;  %v2363_v38 = vadd.f32 %v3986_v63, %v2327_v0  ;;  %v2054_v49 = vadd.f32 %v1981_v59, %v1925_v43 }
 0x239   : > { %v2405_v40 = vsel %vm1028_vm5, %v2363_v38, 0.0  ;;  %v2471_v11 = vmul.f32 %v2363_v38, %v2363_v38  ;;  %v2577_v42 = vpack.c.bf16 %v2363_v38, %v2363_v38 }
 0x23a   : > { %v2406_v1 = vadd.f32 %v2405_v40, %v2404_v5  ;;  %v2121_v54 = vpop.f32.mrf.mxu3  ;;  %v2255_v3 = vpop.f32.mrf.mxu0 }
 0x23b   : > { %2887 = vmatmul.msk.bf16.gmra.mxu2 %vm1028_vm5, %v3334_v52  ;;  %v2506_v57 = vsel %vm1028_vm5, %v2471_v11, 0.0  ;;  %2610 = vst.msk [vmem:[%s3997_s16 + $0x10] sm:$0xf] %vm2605_vm7, %v2577_v42  ;;  %v2194_v60 = vadd.f32 %v2121_v54, %v2054_v49 }
 0x23c   : > { %v2507_v6 = vadd.f32 %v2506_v57, %v2505_v15 }
 0x23d   : > { %v2328_v17 = vadd.f32 %v2255_v3, %v2194_v60 }
 0x23e   : > { %v1984_v34 = vpop.f32.mrf.mxu2 }
 0x23f   : > { %v1860_v35 = vpop.f32.mrf.mxu1  ;;  %v2364_v46 = vadd.f32 %v3986_v63, %v2328_v17  ;;  %2904 = vmatmul.msk.bf16.gmra.mxu3 %vm1028_vm5, %v3358_v20  ;;  %v2055_v21 = vadd.f32 %v1984_v34, %v1926_v8  ;;  %v4367_v20 = vld [vmem:[#allocation31_spill] sm:$0xff] }
 0x240   : > { %v1927_v12 = vadd.f32 %v1857_v16, %v4367_v20 }
 0x241   : > { %v2407_v52 = vsel %vm1028_vm5, %v2364_v46, 0.0  ;;  %v2472_v2 = vmul.f32 %v2364_v46, %v2364_v46  ;;  %v2578_v5 = vpack.c.bf16 %v2364_v46, %v2364_v46 }
 0x242   : > { %2871 = vmatmul.msk.bf16.gmra.mxu1 %vm1028_vm5, %v3786_v36  ;;  %v2408_v10 = vadd.f32 %v2407_v52, %v2406_v1  ;;  %v2124_v14 = vpop.f32.mrf.mxu3  ;;  %v2258_v26 = vpop.f32.mrf.mxu0 }
 0x243   : > { %v2508_v62 = vsel %vm1028_vm5, %v2472_v2, 0.0  ;;  %2611 = vst.msk [vmem:[%s3997_s16 + $0x14] sm:$0xf] %vm2605_vm7, %v2578_v5  ;;  %v2195_v19 = vadd.f32 %v2124_v14, %v2055_v21 }
 0x244   : > { %v2509_v15 = vadd.f32 %v2508_v62, %v2507_v6  ;;  %v4368_v6 = vld [vmem:[#allocation32_spill] sm:$0xff] }
 0x245   : > { %v2329_v0 = vadd.f32 %v2258_v26, %v2195_v19  ;;  %2921 = vmatmul.msk.bf16.gmra.mxu0 %vm1028_vm5, %v3786_v36  ;;  %v1928_v17 = vadd.f32 %v1860_v35, %v4368_v6 }
 0x246   : > { %v1986_v43 = vpop.f32.mrf.mxu2 }
 0x247   : > { %v1862_v59 = vpop.f32.mrf.mxu1  ;;  %v2365_v38 = vadd.f32 %v3986_v63, %v2329_v0  ;;  %v2056_v49 = vadd.f32 %v1986_v43, %v1927_v12  ;;  %v4371_v12 = vld [vmem:[#allocation35_spill] sm:$0xff] }
 0x248   : > { %v1929_v43 = vadd.f32 %v1862_v59, %v4371_v12 }
 0x249   : > { %v2409_v40 = vsel %vm1028_vm5, %v2365_v38, 0.0  ;;  %v2473_v11 = vmul.f32 %v2365_v38, %v2365_v38  ;;  %v2579_v42 = vpack.c.bf16 %v2365_v38, %v2365_v38 }
 0x24a   : > { %v2410_v1 = vadd.f32 %v2409_v40, %v2408_v10  ;;  %v2126_v54 = vpop.f32.mrf.mxu3  ;;  %v2260_v16 = vpop.f32.mrf.mxu0  ;;  %v4370_v10 = vld [vmem:[#allocation34_spill] sm:$0xff] }
 0x24b   : > { %2888 = vmatmul.msk.bf16.gmra.mxu2 %vm1028_vm5, %v3414_v37  ;;  %v2510_v57 = vsel %vm1028_vm5, %v2473_v11, 0.0  ;;  %2612 = vst.msk [vmem:[%s3997_s16 + $0x18] sm:$0xf] %vm2605_vm7, %v2579_v42  ;;  %v2196_v3 = vadd.f32 %v2126_v54, %v2056_v49  ;;  %v4369_v37 = vld [vmem:[#allocation33_spill] sm:$0xff]  ;;  %v504_v14 = vmul.f32 0.0, %v4370_v10 }
 0x24c   : > { %v2511_v36 = vadd.f32 %v2510_v57, %v2509_v15  ;;  %v503_v21 = vmul.f32 0.0, %v4369_v37 }
 0x24d   : > { %v2330_v60 = vadd.f32 %v2260_v16, %v2196_v3  ;;  %v540_v49 = vpack.c.bf16 %v504_v14, %v504_v14 }
 0x24e   : > { %v1989_v7 = vpop.f32.mrf.mxu2  ;;  %v539_v0 = vpack.c.bf16 %v503_v21, %v503_v21 }
 0x24f   : > { %v1865_v8 = vpop.f32.mrf.mxu1  ;;  %v2366_v34 = vadd.f32 %v3986_v63, %v2330_v60  ;;  %2905 = vmatmul.msk.bf16.gmra.mxu3 %vm1028_vm5, %v4339_v48  ;;  %v2057_v46 = vadd.f32 %v1989_v7, %v1928_v17  ;;  %v612_v3 = vunpack.c.l.b16 %v540_v49 }
 0x251   : > { %v2411_v52 = vsel %vm1028_vm5, %v2366_v34, 0.0  ;;  %v2474_v2 = vmul.f32 %v2366_v34, %v2366_v34  ;;  %v2580_v5 = vpack.c.bf16 %v2366_v34, %v2366_v34  ;;  %v4372_v34 = vld [vmem:[#allocation9_spill] sm:$0xff] }
 0x252   : > { %2872 = vmatmul.msk.bf16.gmra.mxu1 %vm1028_vm5, %v3813_v50  ;;  %v2412_v35 = vadd.f32 %v2411_v52, %v2410_v1  ;;  %v2129_v62 = vpop.f32.mrf.mxu3  ;;  %v2263_v19 = vpop.f32.mrf.mxu0  ;;  %v611_v1 = vunpack.c.l.b16 %v539_v0 }
 0x253   : > { %v2512_v26 = vsel %vm1028_vm5, %v2474_v2, 0.0  ;;  %2613 = vst.msk [vmem:[%s3997_s16 + $0x1c] sm:$0xf] %vm2605_vm7, %v2580_v5  ;;  %v2197_v48 = vadd.f32 %v2129_v62, %v2057_v46  ;;  %v1930_v46 = vadd.f32 %v1865_v8, %v4372_v34 }
 0x254   : > { %v2513_v15 = vadd.f32 %v2512_v26, %v2511_v36  ;;  %v630_v21 = vpack.c.b16 %v612_v3, %v611_v1 }
 0x255   : > { %v2331_v20 = vadd.f32 %v2263_v19, %v2197_v48  ;;  %2922 = vmatmul.msk.bf16.gmra.mxu0 %vm1028_vm5, %v3813_v50 }
 0x256   : > { %v1991_v38 = vpop.f32.mrf.mxu2 }
 0x257   : > { %v1867_v40 = vpop.f32.mrf.mxu1  ;;  %v2367_v11 = vadd.f32 %v3986_v63, %v2331_v20  ;;  %v2058_v42 = vadd.f32 %v1991_v38, %v1929_v43  ;;  %v754_v43 = vshll.u32 %v630_v21, 16 }
 0x259   : > { %v2413_v54 = vsel %vm1028_vm5, %v2367_v11, 0.0  ;;  %v2475_v57 = vmul.f32 %v2367_v11, %v2367_v11  ;;  %v2581_v16 = vpack.c.bf16 %v2367_v11, %v2367_v11 }
 0x25a   : > { %v2414_v36 = vadd.f32 %v2413_v54, %v2412_v35  ;;  %v2131_v60 = vpop.f32.mrf.mxu3  ;;  %v2265_v50 = vpop.f32.mrf.mxu0  ;;  %v751_v35 = vshrl.u32 %v630_v21, 16 }
 0x25b   : > { %2889 = vmatmul.msk.bf16.gmra.mxu2 %vm1028_vm5, %v3502_v61  ;;  %v2514_v59 = vsel %vm1028_vm5, %v2475_v57, 0.0  ;;  %2614 = vst.msk [vmem:[%s3997_s16 + $0x20] sm:$0xf] %vm2605_vm7, %v2581_v16  ;;  %v2198_v6 = vadd.f32 %v2131_v60, %v2058_v42  ;;  %v1820_v60 = vrot.slane %v3829_v33, 1 }
 0x25c   : > { %v2515_v17 = vadd.f32 %v2514_v59, %v2513_v15  ;;  %v753_v12 = vrot.slane %v751_v35, 7  ;;  %v1821_v59 = vrot.slane %v3841_v23, 1 }
 0x25d   : > { %v2332_v7 = vadd.f32 %v2265_v50, %v2198_v6 }
 0x25e   : > { %v1994_v37 = vpop.f32.mrf.mxu2  ;;  %v756_v57 = vor.u32 %v754_v43, %v753_v12 }
 0x25f   : > { %v1870_v52 = vpop.f32.mrf.mxu1  ;;  %v2368_v2 = vadd.f32 %v3986_v63, %v2332_v7  ;;  %2906 = vmatmul.msk.bf16.gmra.mxu3 %vm1028_vm5, %v3520_v47  ;;  %v2059_v61 = vadd.f32 %v1994_v37, %v1930_v46  ;;  %v1931_v47 = vadd.f32 %v1867_v40, %v3818_v55 }
 0x260   : > { %v1932_v6 = vadd.f32 %v1870_v52, %v3831_v32  ;;  %v813_v34 = vsel %vm3203_vm4, 0, %v756_v57  ;;  %v831_v32 = vsel %vm3203_vm4, %v753_v12, 0 }
 0x261   : > { %v2415_v5 = vsel %vm1028_vm5, %v2368_v2, 0.0  ;;  %v2476_v10 = vmul.f32 %v2368_v2, %v2368_v2  ;;  %v2582_v14 = vpack.c.bf16 %v2368_v2, %v2368_v2  ;;  %v1822_v2 = vsel %vm1326_vm6, %v1820_v60, %v1821_v59 }
 0x262   : > { %2873 = vmatmul.msk.bf16.gmra.mxu1 %vm1028_vm5, %v3836_v51  ;;  %v2416_v62 = vadd.f32 %v2415_v5, %v2414_v36  ;;  %v2134_v26 = vpop.f32.mrf.mxu3  ;;  %v2268_v19 = vpop.f32.mrf.mxu0 }
 0x263   : > { %v2516_v8 = vsel %vm1028_vm5, %v2476_v10, 0.0  ;;  %2615 = vst.msk [vmem:[%s3997_s16 + $0x24] sm:$0xf] %vm2605_vm7, %v2582_v14  ;;  %v2199_v48 = vadd.f32 %v2134_v26, %v2059_v61  ;;  %v2081_v26 = vshrl.u32 %v813_v34, 16 }
 0x264   : > { %v2517_v15 = vadd.f32 %v2516_v8, %v2515_v17 }
 0x265   : > { %v2333_v0 = vadd.f32 %v2268_v19, %v2199_v48  ;;  %2923 = vmatmul.msk.bf16.gmra.mxu0 %vm1028_vm5, %v3836_v51  ;;  %v2088_v19 = vshll.u32 %v831_v32, 16 }
 0x266   : > { %v1996_v20 = vpop.f32.mrf.mxu2 }
 0x267   : > { %v1872_v38 = vpop.f32.mrf.mxu1  ;;  %v2369_v49 = vadd.f32 %v3986_v63, %v2333_v0  ;;  %v2060_v11 = vadd.f32 %v1996_v20, %v1931_v47 }
 0x269   : > { %v2417_v42 = vsel %vm1028_vm5, %v2369_v49, 0.0  ;;  %v2477_v1 = vmul.f32 %v2369_v49, %v2369_v49  ;;  %v2583_v54 = vpack.c.bf16 %v2369_v49, %v2369_v49  ;;  %v2090_v49 = vrot.slane %v2088_v19, 1 }
 0x26a   : > { %v2418_v16 = vadd.f32 %v2417_v42, %v2416_v62  ;;  %v2136_v3 = vpop.f32.mrf.mxu3  ;;  %v2270_v40 = vpop.f32.mrf.mxu0 }
 0x26b   : > { %2890 = vmatmul.msk.bf16.gmra.mxu2 %vm1028_vm5, %v3829_v33  ;;  %v2518_v55 = vsel %vm1028_vm5, %v2477_v1, 0.0  ;;  %2616 = vst.msk [vmem:[%s3997_s16 + $0x28] sm:$0xf] %vm2605_vm7, %v2583_v54  ;;  %v2200_v51 = vadd.f32 %v2136_v3, %v2060_v11  ;;  %v2083_v33 = vshll.u32 %v813_v34, 16 }
 0x26c   : > { %v2519_v36 = vadd.f32 %v2518_v55, %v2517_v15  ;;  %v1933_v15 = vadd.f32 %v1872_v38, %v3848_v29 }
 0x26d   : > { %v2334_v50 = vadd.f32 %v2270_v40, %v2200_v51  ;;  %v2085_v8 = vrot.slane %v2083_v33, 1 }
 0x26e   : > { %v1999_v17 = vpop.f32.mrf.mxu2 }
 0x26f   : > { %v1875_v46 = vpop.f32.mrf.mxu1  ;;  %v2370_v37 = vadd.f32 %v3986_v63, %v2334_v50  ;;  %2907 = vmatmul.msk.bf16.gmra.mxu3 %vm1028_vm5, %v3855_v18  ;;  %v2061_v21 = vadd.f32 %v1999_v17, %v1932_v6  ;;  %v2086_v43 = vor.u32 %v2085_v8, %v2081_v26  ;;  %v2223_v50 = vrot.slane %v813_v34, 1 }
 0x270   : > { %v1934_v51 = vadd.f32 %v1875_v46, %v3858_v58  ;;  %v2224_v6 = vrot.slane %v831_v32, 1 }
 0x271   : > { %v2419_v23 = vsel %vm1028_vm5, %v2370_v37, 0.0  ;;  %v2478_v61 = vmul.f32 %v2370_v37, %v2370_v37  ;;  %v2584_v5 = vpack.c.bf16 %v2370_v37, %v2370_v37  ;;  %v2091_v55 = vsel %vm833_vm3, %v2086_v43, %v2090_v49 }
 0x272   : > { %2874 = vmatmul.msk.bf16.gmra.mxu1 %vm1028_vm5, %v1822_v2  ;;  %v2420_v52 = vadd.f32 %v2419_v23, %v2418_v16  ;;  %v2139_v10 = vpop.f32.mrf.mxu3  ;;  %v2273_v18 = vpop.f32.mrf.mxu0  ;;  %v2225_v46 = vsel %vm1326_vm6, %v2223_v50, %v2224_v6 }
 0x273   : > { %v2520_v14 = vsel %vm1028_vm5, %v2478_v61, 0.0  ;;  %2617 = vst.msk [vmem:[%s3997_s16 + $0x2c] sm:$0xf] %vm2605_vm7, %v2584_v5  ;;  %v2201_v35 = vadd.f32 %v2139_v10, %v2061_v21 }
 0x274   : > { %v2521_v62 = vadd.f32 %v2520_v14, %v2519_v36 }
 0x275   : > { %v2335_v48 = vadd.f32 %v2273_v18, %v2201_v35  ;;  %2924 = vmatmul.msk.bf16.gmra.mxu0 %vm1028_vm5, %v1822_v2 }
 0x276   : > { %v2001_v0 = vpop.f32.mrf.mxu2 }
 0x277   : > { %v1877_v47 = vpop.f32.mrf.mxu1  ;;  %v2371_v20 = vadd.f32 %v3986_v63, %v2335_v48  ;;  %v2062_v12 = vadd.f32 %v2001_v0, %v1933_v15 }
 0x278   : > { %v1935_v32 = vadd.f32 %v1877_v47, %v3865_v53 }
 0x279   : > { %v2421_v11 = vsel %vm1028_vm5, %v2371_v20, 0.0  ;;  %v2479_v42 = vmul.f32 %v2371_v20, %v2371_v20  ;;  %v2585_v1 = vpack.c.bf16 %v2371_v20, %v2371_v20 }
 0x27a   : > { %v2422_v54 = vadd.f32 %v2421_v11, %v2420_v52  ;;  %v2141_v57 = vpop.f32.mrf.mxu3  ;;  %v2275_v29 = vpop.f32.mrf.mxu0 }
 0x27b   : > { %2891 = vmatmul.msk.bf16.gmra.mxu2 %vm1028_vm5, %v813_v34  ;;  %v2522_v16 = vsel %vm1028_vm5, %v2479_v42, 0.0  ;;  %2618 = vst.msk [vmem:[%s3997_s16 + $0x30] sm:$0xf] %vm2605_vm7, %v2585_v1  ;;  %v2202_v38 = vadd.f32 %v2141_v57, %v2062_v12 }
 0x27c   : > { %v2523_v3 = vadd.f32 %v2522_v16, %v2521_v62 }
 0x27d   : > { %v2336_v40 = vadd.f32 %v2275_v29, %v2202_v38 }
 0x27e   : > { %v2004_v36 = vpop.f32.mrf.mxu2 }
 0x27f   : > { %v1880_v60 = vpop.f32.mrf.mxu1  ;;  %v2372_v59 = vadd.f32 %v3986_v63, %v2336_v40  ;;  %2908 = vmatmul.msk.bf16.gmra.mxu3 %vm1028_vm5, %v2091_v55  ;;  %v2063_v17 = vadd.f32 %v2004_v36, %v1934_v51 }
 0x280   : > { %v1936_v20 = vadd.f32 %v1880_v60, %v3872_v30 }
 0x281   : > { %v2423_v7 = vsel %vm1028_vm5, %v2372_v59, 0.0  ;;  %v2480_v37 = vmul.f32 %v2372_v59, %v2372_v59  ;;  %v2586_v21 = vpack.c.bf16 %v2372_v59, %v2372_v59 }
 0x282   : > { %v2424_v2 = vadd.f32 %v2423_v7, %v2422_v54  ;;  %v2144_v33 = vpop.f32.mrf.mxu3  ;;  %v2278_v58 = vpop.f32.mrf.mxu0 }
 0x283   : > { %v2524_v23 = vsel %vm1028_vm5, %v2480_v37, 0.0  ;;  %2619 = vst.msk [vmem:[%s3997_s16 + $0x34] sm:$0xf] %vm2605_vm7, %v2586_v21  ;;  %v2203_v61 = vadd.f32 %v2144_v33, %v2063_v17 }
 0x284   : > { %v2525_v34 = vadd.f32 %v2524_v23, %v2523_v3 }
 0x285   : > { %v2337_v5 = vadd.f32 %v2278_v58, %v2203_v61  ;;  %2925 = vmatmul.msk.bf16.gmra.mxu0 %vm1028_vm5, %v2225_v46 }
 0x286   : > { %v2006_v52 = vpop.f32.mrf.mxu2 }
 0x287   : > { %v1882_v10 = vpop.f32.mrf.mxu1  ;;  %v2373_v14 = vadd.f32 %v3986_v63, %v2337_v5  ;;  %v2064_v18 = vadd.f32 %v2006_v52, %v1935_v32 }
 0x288   : > { %v1937_v40 = vadd.f32 %v1882_v10, %v3879_v41 }
 0x289   : > { %v2425_v35 = vsel %vm1028_vm5, %v2373_v14, 0.0  ;;  %v2481_v62 = vmul.f32 %v2373_v14, %v2373_v14  ;;  %v2587_v26 = vpack.c.bf16 %v2373_v14, %v2373_v14 }
 0x28a   : > { %v2426_v8 = vadd.f32 %v2425_v35, %v2424_v2  ;;  %v2146_v19 = vpop.f32.mrf.mxu3  ;;  %v2280_v15 = vpop.f32.mrf.mxu0 }
 0x28b   : > { %v2526_v48 = vsel %vm1028_vm5, %v2481_v62, 0.0  ;;  %2620 = vst.msk [vmem:[%s3997_s16 + $0x38] sm:$0xf] %vm2605_vm7, %v2587_v26  ;;  %v2204_v53 = vadd.f32 %v2146_v19, %v2064_v18 }
 0x28c   : > { %v2527_v0 = vadd.f32 %v2526_v48, %v2525_v34 }
 0x28d   : > { %v2338_v47 = vadd.f32 %v2280_v15, %v2204_v53 }
 0x28e   : > { %v2009_v12 = vpop.f32.mrf.mxu2 }
 0x28f   : > { %v1885_v43 = vpop.f32.mrf.mxu1  ;;  %v2374_v49 = vadd.f32 %v3986_v63, %v2338_v47  ;;  %v2065_v11 = vadd.f32 %v2009_v12, %v1936_v20 }
 0x290   : > { %v1938_v58 = vadd.f32 %v1885_v43, %v3886_v56 }
 0x291   : > { %v2427_v42 = vsel %vm1028_vm5, %v2374_v49, 0.0  ;;  %v2482_v1 = vmul.f32 %v2374_v49, %v2374_v49  ;;  %v2588_v54 = vpack.c.bf16 %v2374_v49, %v2374_v49 }
 0x292   : > { %v2428_v57 = vadd.f32 %v2427_v42, %v2426_v8  ;;  %v2149_v16 = vpop.f32.mrf.mxu3  ;;  %v2283_v38 = vpop.f32.mrf.mxu0 }
 0x293   : > { %v2528_v29 = vsel %vm1028_vm5, %v2482_v1, 0.0  ;;  %2621 = vst.msk [vmem:[%s3997_s16 + $0x3c] sm:$0xf] %vm2605_vm7, %v2588_v54  ;;  %v2205_v3 = vadd.f32 %v2149_v16, %v2065_v11 }
 0x294   : > { %v2529_v55 = vadd.f32 %v2528_v29, %v2527_v0 }
 0x295   : > { %v2339_v30 = vadd.f32 %v2283_v38, %v2205_v3 }
 0x296   : > { %v2011_v51 = vpop.f32.mrf.mxu2 }
 0x297   : > { %v1887_v36 = vpop.f32.mrf.mxu1  ;;  %v2375_v60 = vadd.f32 %v3986_v63, %v2339_v30  ;;  %v2066_v59 = vadd.f32 %v2011_v51, %v1937_v40 }
 0x298   : > { %v1939_v19 = vadd.f32 %v1887_v36, %v3893_v45 }
 0x299   : > { %v2429_v50 = vsel %vm1028_vm5, %v2375_v60, 0.0  ;;  %v2483_v6 = vmul.f32 %v2375_v60, %v2375_v60  ;;  %v2589_v17 = vpack.c.bf16 %v2375_v60, %v2375_v60 }
 0x29a   : > { %v2430_v7 = vadd.f32 %v2429_v50, %v2428_v57  ;;  %v2151_v37 = vpop.f32.mrf.mxu3  ;;  %v2285_v2 = vpop.f32.mrf.mxu0 }
 0x29b   : > { %v2530_v21 = vsel %vm1028_vm5, %v2483_v6, 0.0  ;;  %2622 = vst.msk [vmem:[%s3997_s16 + $0x40] sm:$0xf] %vm2605_vm7, %v2589_v17  ;;  %v2206_v33 = vadd.f32 %v2151_v37, %v2066_v59 }
 0x29c   : > { %v2531_v23 = vadd.f32 %v2530_v21, %v2529_v55 }
 0x29d   : > { %v2340_v41 = vadd.f32 %v2285_v2, %v2206_v33 }
 0x29e   : > { %v2014_v46 = vpop.f32.mrf.mxu2 }
 0x29f   : > { %v1890_v61 = vpop.f32.mrf.mxu1  ;;  %v2376_v34 = vadd.f32 %v3986_v63, %v2340_v41  ;;  %v2067_v5 = vadd.f32 %v2014_v46, %v1938_v58 }
 0x2a0   : > { %v1940_v57 = vadd.f32 %v1890_v61, %v3900_v39 }
 0x2a1   : > { %v2431_v32 = vsel %vm1028_vm5, %v2376_v34, 0.0  ;;  %v2484_v52 = vmul.f32 %v2376_v34, %v2376_v34  ;;  %v2590_v10 = vpack.c.bf16 %v2376_v34, %v2376_v34 }
 0x2a2   : > { %v2432_v14 = vadd.f32 %v2431_v32, %v2430_v7  ;;  %v2154_v18 = vpop.f32.mrf.mxu3  ;;  %v2288_v62 = vpop.f32.mrf.mxu0 }
 0x2a3   : > { %v2532_v35 = vsel %vm1028_vm5, %v2484_v52, 0.0  ;;  %2623 = vst.msk [vmem:[%s3997_s16 + $0x44] sm:$0xf] %vm2605_vm7, %v2590_v10  ;;  %v2207_v26 = vadd.f32 %v2154_v18, %v2067_v5 }
 0x2a4   : > { %v2533_v8 = vadd.f32 %v2532_v35, %v2531_v23 }
 0x2a5   : > { %v2341_v56 = vadd.f32 %v2288_v62, %v2207_v26 }
 0x2a6   : > { %v2016_v48 = vpop.f32.mrf.mxu2 }
 0x2a7   : > { %v1892_v15 = vpop.f32.mrf.mxu1  ;;  %v2377_v53 = vadd.f32 %v3986_v63, %v2341_v56  ;;  %v2068_v0 = vadd.f32 %v2016_v48, %v1939_v19 }
 0x2a8   : > { %v1941_v17 = vadd.f32 %v1892_v15, %v3907_v4 }
 0x2a9   : > { %v2433_v47 = vsel %vm1028_vm5, %v2377_v53, 0.0  ;;  %v2485_v20 = vmul.f32 %v2377_v53, %v2377_v53  ;;  %v2591_v12 = vpack.c.bf16 %v2377_v53, %v2377_v53 }
 0x2aa   : > { %v2434_v43 = vadd.f32 %v2433_v47, %v2432_v14  ;;  %v2156_v49 = vpop.f32.mrf.mxu3  ;;  %v2290_v42 = vpop.f32.mrf.mxu0 }
 0x2ab   : > { %v2534_v11 = vsel %vm1028_vm5, %v2485_v20, 0.0  ;;  %2624 = vst.msk [vmem:[%s3997_s16 + $0x48] sm:$0xf] %vm2605_vm7, %v2591_v12  ;;  %v2208_v1 = vadd.f32 %v2156_v49, %v2068_v0 }
 0x2ac   : > { %v2535_v54 = vadd.f32 %v2534_v11, %v2533_v8 }
 0x2ad   : > { %v2342_v45 = vadd.f32 %v2290_v42, %v2208_v1 }
 0x2ae   : > { %v2019_v16 = vpop.f32.mrf.mxu2 }
 0x2af   : > { %v1895_v29 = vpop.f32.mrf.mxu1  ;;  %v2378_v38 = vadd.f32 %v3986_v63, %v2342_v45  ;;  %v2069_v3 = vadd.f32 %v2019_v16, %v1940_v57 }
 0x2b0   : > { %v1942_v52 = vadd.f32 %v1895_v29, %v3914_v13 }
 0x2b1   : > { %v2435_v55 = vsel %vm1028_vm5, %v2378_v38, 0.0  ;;  %v2486_v30 = vmul.f32 %v2378_v38, %v2378_v38  ;;  %v2592_v40 = vpack.c.bf16 %v2378_v38, %v2378_v38 }
 0x2b2   : > { %v2436_v51 = vadd.f32 %v2435_v55, %v2434_v43  ;;  %v2159_v36 = vpop.f32.mrf.mxu3  ;;  %v2293_v59 = vpop.f32.mrf.mxu0 }
 0x2b3   : > { %v2536_v60 = vsel %vm1028_vm5, %v2486_v30, 0.0  ;;  %2625 = vst.msk [vmem:[%s3997_s16 + $0x4c] sm:$0xf] %vm2605_vm7, %v2592_v40  ;;  %v2209_v50 = vadd.f32 %v2159_v36, %v2069_v3 }
 0x2b4   : > { %v2537_v6 = vadd.f32 %v2536_v60, %v2535_v54 }
 0x2b5   : > { %v2343_v39 = vadd.f32 %v2293_v59, %v2209_v50 }
 0x2b6   : > { %v2021_v7 = vpop.f32.mrf.mxu2 }
 0x2b7   : > { %v1897_v37 = vpop.f32.mrf.mxu1  ;;  %v2379_v21 = vadd.f32 %v3986_v63, %v2343_v39  ;;  %v2070_v2 = vadd.f32 %v2021_v7, %v1941_v17 }
 0x2b8   : > { %v1943_v47 = vadd.f32 %v1897_v37, %v3921_v31 }
 0x2b9   : > { %v2437_v33 = vsel %vm1028_vm5, %v2379_v21, 0.0  ;;  %v2487_v23 = vmul.f32 %v2379_v21, %v2379_v21  ;;  %v2593_v41 = vpack.c.bf16 %v2379_v21, %v2379_v21 }
 0x2ba   : > { %v2438_v58 = vadd.f32 %v2437_v33, %v2436_v51  ;;  %v2161_v46 = vpop.f32.mrf.mxu3  ;;  %v2295_v34 = vpop.f32.mrf.mxu0 }
 0x2bb   : > { %v2538_v61 = vsel %vm1028_vm5, %v2487_v23, 0.0  ;;  %2626 = vst.msk [vmem:[%s3997_s16 + $0x50] sm:$0xf] %vm2605_vm7, %v2593_v41  ;;  %v2210_v5 = vadd.f32 %v2161_v46, %v2070_v2 }
 0x2bc   : > { %v2539_v32 = vadd.f32 %v2538_v61, %v2537_v6 }
 0x2bd   : > { %v2344_v4 = vadd.f32 %v2295_v34, %v2210_v5 }
 0x2be   : > { %v2024_v10 = vpop.f32.mrf.mxu2 }
 0x2bf   : > { %v1900_v14 = vpop.f32.mrf.mxu1  ;;  %v2380_v18 = vadd.f32 %v3986_v63, %v2344_v4  ;;  %v2071_v35 = vadd.f32 %v2024_v10, %v1942_v52 }
 0x2c0   : > { %v1944_v3 = vadd.f32 %v1900_v14, %v3928_v22  ;;  %v4374_v14 = vld [vmem:[#allocation10_spill] sm:$0xff] }
 0x2c1   : > { %v2439_v62 = vsel %vm1028_vm5, %v2380_v18, 0.0  ;;  %v2488_v26 = vmul.f32 %v2380_v18, %v2380_v18  ;;  %v2594_v8 = vpack.c.bf16 %v2380_v18, %v2380_v18 }
 0x2c2   : > { %v2440_v56 = vadd.f32 %v2439_v62, %v2438_v58  ;;  %v2164_v19 = vpop.f32.mrf.mxu3  ;;  %v2298_v15 = vpop.f32.mrf.mxu0 }
 0x2c3   : > { %v2540_v48 = vsel %vm1028_vm5, %v2488_v26, 0.0  ;;  %2627 = vst.msk [vmem:[%s3997_s16 + $0x54] sm:$0xf] %vm2605_vm7, %v2594_v8  ;;  %v2211_v53 = vadd.f32 %v2164_v19, %v2071_v35 }
 0x2c4   : > { %v2541_v0 = vadd.f32 %v2540_v48, %v2539_v32 }
 0x2c5   : > { %v2345_v13 = vadd.f32 %v2298_v15, %v2211_v53 }
 0x2c6   : > { %v2026_v20 = vpop.f32.mrf.mxu2 }
 0x2c7   : > { %v1902_v12 = vpop.f32.mrf.mxu1  ;;  %v2381_v43 = vadd.f32 %v3986_v63, %v2345_v13  ;;  %v2072_v49 = vadd.f32 %v2026_v20, %v1943_v47 }
 0x2c8   : > { %v1945_v21 = vadd.f32 %v1902_v12, %v3935_v25 }
 0x2c9   : > { %v2441_v11 = vsel %vm1028_vm5, %v2381_v43, 0.0  ;;  %v2489_v42 = vmul.f32 %v2381_v43, %v2381_v43  ;;  %v2595_v1 = vpack.c.bf16 %v2381_v43, %v2381_v43 }
 0x2ca   : > { %v2442_v54 = vadd.f32 %v2441_v11, %v2440_v56  ;;  %v2166_v45 = vpop.f32.mrf.mxu3  ;;  %v2300_v16 = vpop.f32.mrf.mxu0 }
 0x2cb   : > { %v2542_v57 = vsel %vm1028_vm5, %v2489_v42, 0.0  ;;  %2628 = vst.msk [vmem:[%s3997_s16 + $0x58] sm:$0xf] %vm2605_vm7, %v2595_v1  ;;  %v2212_v29 = vadd.f32 %v2166_v45, %v2072_v49 }
 0x2cc   : > { %v2543_v38 = vadd.f32 %v2542_v57, %v2541_v0 }
 0x2cd   : > { %v2346_v31 = vadd.f32 %v2300_v16, %v2212_v29 }
 0x2ce   : > { %v2029_v55 = vpop.f32.mrf.mxu2 }
 0x2cf   : > { %v2382_v30 = vadd.f32 %v3986_v63, %v2346_v31  ;;  %v2073_v40 = vadd.f32 %v2029_v55, %v1944_v3  ;;  %v1905_v51 = vpop.f32.mrf.mxu1 }
 0x2d0   : > { %v1946_v18 = vadd.f32 %v1905_v51, %v4374_v14 }
 0x2d1   : > { %v2443_v36 = vsel %vm1028_vm5, %v2382_v30, 0.0  ;;  %v2490_v60 = vmul.f32 %v2382_v30, %v2382_v30  ;;  %v2596_v59 = vpack.c.bf16 %v2382_v30, %v2382_v30 }
 0x2d2   : > { %v2444_v50 = vadd.f32 %v2443_v36, %v2442_v54  ;;  %v2169_v6 = vpop.f32.mrf.mxu3  ;;  %v2303_v17 = vpop.f32.mrf.mxu0 }
 0x2d3   : > { %v2544_v39 = vsel %vm1028_vm5, %v2490_v60, 0.0  ;;  %2629 = vst.msk [vmem:[%s3997_s16 + $0x5c] sm:$0xf] %vm2605_vm7, %v2596_v59  ;;  %v2213_v7 = vadd.f32 %v2169_v6, %v2073_v40  ;;  %v3076_v60 = vmov 0.0  }
 0x2d4   : > { %v2545_v37 = vadd.f32 %v2544_v39, %v2543_v38  ;;  %2396 = vst.msk [vmem:[%s4224_s19] sm:$0x3] %vm2395_vm8, %v3076_v60 }
 0x2d5   : > { %v2347_v22 = vadd.f32 %v2303_v17, %v2213_v7 }
 0x2d6   : > { %v2031_v2 = vpop.f32.mrf.mxu2 }
 0x2d7   : > { %v2383_v33 = vadd.f32 %v3986_v63, %v2347_v22  ;;  %v2074_v23 = vadd.f32 %v2031_v2, %v1945_v21  ;;  %v1907_v5 = vpop.f32.mrf.mxu1 }
 0x2d8   : > { %v1947_v43 = vadd.f32 %v1907_v5, %v3949_v28 }
 0x2d9   : > { %v2445_v41 = vsel %vm1028_vm5, %v2383_v33, 0.0  ;;  %v2491_v58 = vmul.f32 %v2383_v33, %v2383_v33  ;;  %v2597_v46 = vpack.c.bf16 %v2383_v33, %v2383_v33 }
 0x2da   : > { %v2446_v61 = vadd.f32 %v2445_v41, %v2444_v50  ;;  %v2171_v34 = vpop.f32.mrf.mxu3  ;;  %v2305_v4 = vpop.f32.mrf.mxu0 }
 0x2db   : > { %v2546_v32 = vsel %vm1028_vm5, %v2491_v58, 0.0  ;;  %2630 = vst.msk [vmem:[%s3997_s16 + $0x60] sm:$0xf] %vm2605_vm7, %v2597_v46  ;;  %v2214_v52 = vadd.f32 %v2171_v34, %v2074_v23 }
 0x2dc   : > { %v2547_v10 = vadd.f32 %v2546_v32, %v2545_v37 }
 0x2dd   : > { %v2348_v25 = vadd.f32 %v2305_v4, %v2214_v52 }
 0x2de   : > { %v2034_v35 = vpop.f32.mrf.mxu2 }
 0x2df   : > { %v2384_v62 = vadd.f32 %v3986_v63, %v2348_v25  ;;  %v2075_v26 = vadd.f32 %v2034_v35, %v1946_v18  ;;  %v1910_v20 = vpop.f32.mrf.mxu1  ;;  %v3051_v18 = vld [vmem:[%s4271_s2] ss:$0 sm:$0xff] }
 0x2e0   : > { %v1948_v28 = vadd.f32 %v1910_v20, %v3956_v44 }
 0x2e1   : > { %v2447_v8 = vsel %vm1028_vm5, %v2384_v62, 0.0  ;;  %v2492_v56 = vmul.f32 %v2384_v62, %v2384_v62  ;;  %v2598_v19 = vpack.c.bf16 %v2384_v62, %v2384_v62 }
 0x2e2   : > { %v2448_v48 = vadd.f32 %v2447_v8, %v2446_v61  ;;  %v2174_v15 = vpop.f32.mrf.mxu3  ;;  %v2308_v0 = vpop.f32.mrf.mxu0 }
 0x2e3   : > { %v2548_v53 = vsel %vm1028_vm5, %v2492_v56, 0.0  ;;  %2631 = vst.msk [vmem:[%s3997_s16 + $0x64] sm:$0xf] %vm2605_vm7, %v2598_v19  ;;  %v2215_v13 = vadd.f32 %v2174_v15, %v2075_v26 }
 0x2e4   : > { %v2549_v47 = vadd.f32 %v2548_v53, %v2547_v10 }
 0x2e5   : > { %v2349_v12 = vadd.f32 %v2308_v0, %v2215_v13 }
 0x2e6   : > { %v2036_v49 = vpop.f32.mrf.mxu2 }
 0x2e7   : > { %v2385_v11 = vadd.f32 %v3986_v63, %v2349_v12  ;;  %v2076_v42 = vadd.f32 %v2036_v49, %v1947_v43  ;;  %v1912_v40 = vpop.f32.mrf.mxu1 }
 0x2e8   : > { %v1949_v2 = vadd.f32 %v1912_v40, %v3963_v27 }
 0x2e9   : > { %v2449_v1 = vsel %vm1028_vm5, %v2385_v11, 0.0  ;;  %v2493_v54 = vmul.f32 %v2385_v11, %v2385_v11  ;;  %v2599_v45 = vpack.c.bf16 %v2385_v11, %v2385_v11 }
 0x2ea   : > { %v2450_v57 = vadd.f32 %v2449_v1, %v2448_v48  ;;  %v2176_v16 = vpop.f32.mrf.mxu3  ;;  %v2310_v38 = vpop.f32.mrf.mxu0 }
 0x2eb   : > { %v2550_v29 = vsel %vm1028_vm5, %v2493_v54, 0.0  ;;  %2632 = vst.msk [vmem:[%s3997_s16 + $0x68] sm:$0xf] %vm2605_vm7, %v2599_v45  ;;  %v2216_v31 = vadd.f32 %v2176_v16, %v2076_v42 }
 0x2ec   : > { %v2551_v3 = vadd.f32 %v2550_v29, %v2549_v47 }
 0x2ed   : > { %v2350_v55 = vadd.f32 %v2310_v38, %v2216_v31 }
 0x2ee   : > { %v2039_v30 = vpop.f32.mrf.mxu2 }
 0x2ef   : > { %v2386_v51 = vadd.f32 %v3986_v63, %v2350_v55  ;;  %v2077_v36 = vadd.f32 %v2039_v30, %v1948_v28  ;;  %v1915_v58 = vpop.f32.mrf.mxu1 }
 0x2f0   : > { %v1950_v14 = vadd.f32 %v1915_v58, %v3970_v9 }
 0x2f1   : > { %v2451_v59 = vsel %vm1028_vm5, %v2386_v51, 0.0  ;;  %v2494_v50 = vmul.f32 %v2386_v51, %v2386_v51  ;;  %v2600_v6 = vpack.c.bf16 %v2386_v51, %v2386_v51 }
 0x2f2   : > { %v2452_v44 = vadd.f32 %v2451_v59, %v2450_v57  ;;  %v2179_v39 = vpop.f32.mrf.mxu3  ;;  %v2313_v7 = vpop.f32.mrf.mxu0 }
 0x2f3   : > { %v2552_v17 = vsel %vm1028_vm5, %v2494_v50, 0.0  ;;  %2633 = vst.msk [vmem:[%s3997_s16 + $0x6c] sm:$0xf] %vm2605_vm7, %v2600_v6  ;;  %v2217_v37 = vadd.f32 %v2179_v39, %v2077_v36 }
 0x2f4   : > { %v2553_v22 = vadd.f32 %v2552_v17, %v2551_v3 }
 0x2f5   : > { %v2351_v21 = vadd.f32 %v2313_v7, %v2217_v37 }
 0x2f6   : > { %v2041_v33 = vpop.f32.mrf.mxu2 }
 0x2f7   : > { %v2387_v23 = vadd.f32 %v3986_v63, %v2351_v21  ;;  %v2078_v41 = vadd.f32 %v2041_v33, %v1949_v2  ;;  %v1917_v15 = vpop.f32.mrf.mxu1 }
 0x2f8   : > { %v1951_v20 = vadd.f32 %v1917_v15, %v3977_v24 }
 0x2f9   : > { %v2453_v46 = vsel %vm1028_vm5, %v2387_v23, 0.0  ;;  %v2495_v61 = vmul.f32 %v2387_v23, %v2387_v23  ;;  %v2601_v34 = vpack.c.bf16 %v2387_v23, %v2387_v23 }
 0x2fa   : > { %v2454_v5 = vadd.f32 %v2453_v46, %v2452_v44  ;;  %v2181_v32 = vpop.f32.mrf.mxu3  ;;  %v2315_v52 = vpop.f32.mrf.mxu0 }
 0x2fb   : > { %v2554_v4 = vsel %vm1028_vm5, %v2495_v61, 0.0  ;;  %2634 = vst.msk [vmem:[%s3997_s16 + $0x70] sm:$0xf] %vm2605_vm7, %v2601_v34  ;;  %v2218_v10 = vadd.f32 %v2181_v32, %v2078_v41 }
 0x2fc   : > { %v2555_v25 = vadd.f32 %v2554_v4, %v2553_v22  ;;  %v2397_v22 = vld [vmem:[%s4224_s19] sm:$0x3] }
 0x2fd   : > { %v2352_v27 = vadd.f32 %v2315_v52, %v2218_v10 }
 0x2fe   : > { %v2044_v63 = vpop.f32.mrf.mxu2 }
 0x2ff   : > { %v2388_v35 = vadd.f32 %v3051_v18, %v2352_v27  ;;  %v2079_v62 = vadd.f32 %v2044_v63, %v1950_v14 }
 0x301   : > { %v2455_v26 = vsel %vm1028_vm5, %v2388_v35, 0.0  ;;  %v2496_v8 = vmul.f32 %v2388_v35, %v2388_v35  ;;  %v2602_v56 = vpack.c.bf16 %v2388_v35, %v2388_v35 }
 0x302   : > { %v2456_v19 = vadd.f32 %v2455_v26, %v2454_v5  ;;  %v2184_v48 = vpop.f32.mrf.mxu3  ;;  %v2318_v9 = vpop.f32.mrf.mxu0 }
 0x303   : > { %v2556_v53 = vsel %vm1028_vm5, %v2496_v8, 0.0  ;;  %2635 = vst.msk [vmem:[%s3997_s16 + $0x74] sm:$0xf] %vm2605_vm7, %v2602_v56  ;;  %v2219_v0 = vadd.f32 %v2184_v48, %v2079_v62 }
 0x304   : > { %v2557_v13 = vadd.f32 %v2556_v53, %v2555_v25 }
 0x305   : > { %v2353_v47 = vadd.f32 %v2318_v9, %v2219_v0 }
 0x306   : > { %v2046_v12 = vpop.f32.mrf.mxu2 }
 0x307   : > { %v2389_v43 = vadd.f32 %v3051_v18, %v2353_v47  ;;  %v2080_v49 = vadd.f32 %v2046_v12, %v1951_v20 }
 0x309   : > { %v2457_v11 = vsel %vm1028_vm5, %v2389_v43, 0.0  ;;  %v2497_v42 = vmul.f32 %v2389_v43, %v2389_v43  ;;  %v2603_v1 = vpack.c.bf16 %v2389_v43, %v2389_v43 }
 0x30a   : > { %v2458_v54 = vadd.f32 %v2457_v11, %v2456_v19  ;;  %v2186_v45 = vpop.f32.mrf.mxu3  ;;  %v2320_v38 = vpop.f32.mrf.mxu0 }
 0x30b   : > { %v2558_v57 = vsel %vm1028_vm5, %v2497_v42, 0.0  ;;  %2636 = vst.msk [vmem:[%s3997_s16 + $0x78] sm:$0xf] %vm2605_vm7, %v2603_v1  ;;  %v2220_v16 = vadd.f32 %v2186_v45, %v2080_v49 }
 0x30c   : > { %v2559_v29 = vadd.f32 %v2558_v57, %v2557_v13 }
 0x30d   : > { %v2354_v31 = vadd.f32 %v2320_v38, %v2220_v16 }
 0x30f   : > { %v2390_v3 = vadd.f32 %v3051_v18, %v2354_v31 }
 0x311   : > { %v2459_v24 = vsel %vm1028_vm5, %v2390_v3, 0.0  ;;  %v2498_v55 = vmul.f32 %v2390_v3, %v2390_v3  ;;  %v2604_v28 = vpack.c.bf16 %v2390_v3, %v2390_v3 }
 0x312   : > { %v2460_v30 = vadd.f32 %v2459_v24, %v2458_v54 }
 0x313   : > { %v2560_v40 = vsel %vm1028_vm5, %v2498_v55, 0.0  ;;  %2637 = vst.msk [vmem:[%s3997_s16 + $0x7c] sm:$0xf] %vm2605_vm7, %v2604_v28 }
 0x314   : > { %v2461_v51 = vrot.slane %v2460_v30, 4  ;;  %v2561_v36 = vadd.f32 %v2560_v40, %v2559_v29 }
 0x316   : > { %v2462_v60 = vadd.f32 %v2461_v51, %v2460_v30  ;;  %v2562_v59 = vrot.slane %v2561_v36, 4 }
 0x318   : > { %v2463_v50 = vrot.slane %v2462_v60, 2  ;;  %v2563_v6 = vadd.f32 %v2562_v59, %v2561_v36 }
 0x31a   : > { %v2464_v44 = vadd.f32 %v2463_v50, %v2462_v60  ;;  %v2564_v39 = vrot.slane %v2563_v6, 2 }
 0x31c   : > { %v2465_v17 = vrot.slane %v2464_v44, 1  ;;  %v2565_v7 = vadd.f32 %v2564_v39, %v2563_v6 }
 0x31e   : > { %v2566_v37 = vrot.slane %v2565_v7, 1  ;;  %v2466_v21 = vadd.f32 %v2465_v17, %v2464_v44 }
 0x320   : > { %v2567_v2 = vadd.f32 %v2566_v37, %v2565_v7 }
 0x322   : > { %v2569_v33 = vsel %vm793_vm1, %v2466_v21, %v2567_v2 }
 0x323   : > { %v2570_v23 = vadd.f32 %v2569_v33, %v2397_v22 }
 0x325   : > { %2572 = vst.msk [vmem:[%s4224_s19] sm:$0x3] %vm2395_vm8, %v2570_v23 }
 0x326 PF: > { %s17_s23 = sadd.s32 1, %s3074_s23   ;;  %s4375_s21 = smov %s3070_s22 }
 0x327   : > { %p14_p5 = scmp.ge.s32.totalorder %s17_s23, 4   ;;  %s4376_s22 = smov %s4378_s24 }
 0x329   :  { %16 = sbr.rel (!%p14_p5) target bundleno = 2 (0x2), region = 97 }

</bundles_post_ra>
